<compile_context>
chip_gen: v5e
topology: v5e:2x2
jax: 0.10.0
libtpu: 0.0.40
codegen_flags: <defaults>
</compile_context>

<pallas_src>
import functools

import numpy as np
import jax
import jax.numpy as jnp
from jax.experimental import pallas as pl
from jax.experimental.pallas import tpu as pltpu

_BF16 = jnp.bfloat16


def _round_up(x, m):
    return (x + m - 1) // m * m


# ------------------------------ Pallas kernels ------------------------------ #
def _patches(xm_ref, xh_ref, offs, tm):
    """Rebuild the (16*Cin, tm) im2col block in VMEM from phase-split inputs.

    xm_ref: (4, Cin, tm) main block, xh_ref: (4, Cin, 128) halo block.
    offs are the 4 static flat offsets (0, 1, OWp, OWp+1) of the sub-taps.
    """
    xcat = jnp.concatenate([xm_ref[...], xh_ref[...]], axis=-1)  # (4, Cin, tm+128)
    pieces = []
    for p in range(4):                       # phase (kh%2, kw%2)
        xp = xcat[p]                         # (Cin, tm+128)
        for off in offs:                     # sub-tap (kh//2, kw//2)
            pieces.append(xp[:, off:off + tm])
    return jnp.concatenate(pieces, axis=0)   # (16*Cin, tm), K ordered (tap, c)


def _conv_lrelu_kernel(xm_ref, xh_ref, w_ref, o_ref, *, offs, tm):
    """Conv(4x4, s=2, p=1, bias=False) + LeakyReLU(0.2) for one M block."""
    xall = _patches(xm_ref, xh_ref, offs, tm)                       # (K, tm) bf16
    acc = jnp.dot(w_ref[...], xall, preferred_element_type=jnp.float32)
    acc = jnp.where(acc > 0, acc, 0.2 * acc)                        # LeakyReLU
    o_ref[...] = acc.astype(o_ref.dtype)


def _conv4_out_kernel(xm_ref, xh_ref, w_ref, wm_ref, sel_ref, o_ref, acc_ref,
                      *, offs, tm):
    """Fused tail: conv4 + LeakyReLU + 'out' 4x4 conv + sigmoid.

    wm:  'out' weights scattered onto conv4's loose column grid (zeros on junk
         columns), so the out-layer is (elementwise mul) + (channel sum).
    sel: (tm, 128) per-batch column-sum selector -> out[n] via a tiny matmul.
    """
    j = pl.program_id(0)

    @pl.when(j == 0)
    def _init():
        acc_ref[...] = jnp.zeros_like(acc_ref)

    xall = _patches(xm_ref, xh_ref, offs, tm)
    h = jnp.dot(w_ref[...], xall, preferred_element_type=jnp.float32)
    h = jnp.where(h > 0, h, 0.2 * h)                                # conv4 act
    col = jnp.sum(h * wm_ref[...], axis=0, keepdims=True)           # (1, tm)
    acc_ref[...] += jnp.dot(col, sel_ref[...],
                            preferred_element_type=jnp.float32)     # (1, 128)

    @pl.when(j == pl.num_programs(0) - 1)
    def _fin():
        o_ref[...] = jax.nn.sigmoid(acc_ref[...])


# ------------------------------ XLA-side glue ------------------------------- #
def _flat_phases(x_dense, Mp):
    """(C, N, H, W) -> (4, C, Mp) stride-2 phase split of the zero-padded input."""
    C, N, H, W = x_dense.shape
    OHp, OWp = H // 2 + 1, W // 2 + 1
    xp = jnp.pad(x_dense, ((0, 0), (0, 0), (1, 1), (1, 1)))
    ph = jnp.stack([xp[:, :, a::2, b::2] for a in range(2) for b in range(2)],
                   axis=0)                                  # (4, C, N, OHp, OWp)
    ph = ph.reshape(4, C, N * OHp * OWp)
    return jnp.pad(ph, ((0, 0), (0, 0), (0, Mp - N * OHp * OWp)))


def _pick_tm(Mvalid, per_col_bytes, fixed_bytes=0, budget_bytes=6 << 20,
             target_steps=8):
    """128-aligned M tile: ~target_steps pipeline steps, capped by VMEM budget."""
    m128 = _round_up(Mvalid, 128)
    want = _round_up(max(1, Mvalid // target_steps), 128)
    avail = max(budget_bytes - fixed_bytes, 128 * per_col_bytes)
    cap = (avail // per_col_bytes) // 128 * 128
    return int(min(m128, max(128, min(want, cap))))


def conv4x4_s2_lrelu(x_dense, wmat):
    """Conv2d(k=4, s=2, p=1, bias=False) + LeakyReLU(0.2), channels-major."""
    Cin0 = x_dense.shape[0]
    Cin = _round_up(Cin0, 8)
    if Cin != Cin0:                                   # pad K (e.g. 112 -> 128)
        x_dense = jnp.pad(x_dense, ((0, Cin - Cin0), (0, 0), (0, 0), (0, 0)))
    _, N, H, W = x_dense.shape
    assert H % 2 == 0 and W % 2 == 0
    Cout, K = wmat.shape
    assert K == 16 * Cin
    OH, OW = H // 2, W // 2
    OHp, OWp = OH + 1, OW + 1
    assert OWp + 1 < 128, "halo block assumes feature-map width < 254"

    Mvalid = N * OHp * OWp
    per_col = 16 * Cin + 6 * Cout + 2 * K            # VMEM bytes per M column
    tm = _pick_tm(Mvalid, per_col, fixed_bytes=4 * Cout * K)
    Mout = _round_up(Mvalid, tm)
    Mp = Mout + 128
    gm = Mout // tm
    nhalo = tm // 128
    offs = (0, 1, OWp, OWp + 1)

    phases = _flat_phases(x_dense, Mp)
    cost = pl.CostEstimate(
        flops=2 * Cout * K * Mout, transcendentals=0,
        bytes_accessed=2 * (4 * Cin * Mp + Cout * K + Cout * Mout))

    loose = pl.pallas_call(
        functools.partial(_conv_lrelu_kernel, offs=offs, tm=tm),
        out_shape=jax.ShapeDtypeStruct((Cout, Mout), _BF16),
        grid=(gm,),
        in_specs=[
            pl.BlockSpec((4, Cin, tm), lambda j: (0, 0, j)),
            pl.BlockSpec((4, Cin, 128), lambda j: (0, 0, (j + 1) * nhalo)),
            pl.BlockSpec((Cout, K), lambda j: (0, 0)),
        ],
        out_specs=pl.BlockSpec((Cout, tm), lambda j: (0, j)),
        compiler_params=pltpu.CompilerParams(dimension_semantics=("parallel",)),
        cost_estimate=cost,
    )(phases, phases, wmat)

    # valid output extraction is a cheap strided copy (same linear order, no transpose)
    return loose[:, :Mvalid].reshape(Cout, N, OHp, OWp)[:, :, :OH, :OW]


def conv4_out_sigmoid(x_dense, w4mat, w_out_f32):
    """Fused conv4 (k4 s2 p1) + LeakyReLU + 'out' (k4 s1 p0) + sigmoid -> (N,)."""
    Cin0 = x_dense.shape[0]
    Cin = _round_up(Cin0, 8)
    if Cin != Cin0:
        x_dense = jnp.pad(x_dense, ((0, Cin - Cin0), (0, 0), (0, 0), (0, 0)))
    _, N, H, W = x_dense.shape
    Cout, K = w4mat.shape
    assert K == 16 * Cin
    OH, OW = H // 2, W // 2
    assert (OH, OW) == (4, 4), "final 4x4 conv expects a 4x4 feature map (64x64 input)"
    assert N <= 128  # TODO(synk): tile the fused per-batch reduction for batch > 128
    assert w_out_f32.shape == (1, Cout, 4, 4)
    OHp, OWp = OH + 1, OW + 1                                   # 5, 5

    Mvalid = N * OHp * OWp
    per_col = 16 * Cin + 6 * Cout + 2 * K + 8 * Cout + 8 * 128
    tm = _pick_tm(Mvalid, per_col, fixed_bytes=4 * Cout * K)
    Mout = _round_up(Mvalid, tm)
    Mp = Mout + 128
    gm = Mout // tm
    nhalo = tm // 128
    offs = (0, 1, OWp, OWp + 1)

    phases = _flat_phases(x_dense, Mp)

    # 'out' weight scattered onto conv4's loose column grid (zeros elsewhere).
    w16 = w_out_f32.reshape(1, Cout, 16)[0]                     # (Cout, oh*4+ow)
    cols = np.array([n * OHp * OWp + oh * OWp + ow
                     for n in range(N) for oh in range(4) for ow in range(4)],
                    dtype=np.int32)
    wm = jnp.zeros((Cout, Mout), jnp.float32).at[:, cols].set(
        jnp.tile(w16.astype(jnp.float32), (1, N)))
    sel_np = np.zeros((Mout, 128), np.float32)                  # per-batch column sum
    for n in range(N):
        sel_np[n * OHp * OWp:(n + 1) * OHp * OWp, n] = 1.0
    sel = jnp.asarray(sel_np)

    cost = pl.CostEstimate(
        flops=2 * Cout * K * Mout + 2 * Mout * 128,
        transcendentals=128,
        bytes_accessed=2 * (4 * Cin * Mp + Cout * K)
        + 4 * (Cout * Mout + Mout * 128 + 128))

    out = pl.pallas_call(
        functools.partial(_conv4_out_kernel, offs=offs, tm=tm),
        out_shape=jax.ShapeDtypeStruct((1, 128), jnp.float32),
        grid=(gm,),
        in_specs=[
            pl.BlockSpec((4, Cin, tm), lambda j: (0, 0, j)),
            pl.BlockSpec((4, Cin, 128), lambda j: (0, 0, (j + 1) * nhalo)),
            pl.BlockSpec((Cout, K), lambda j: (0, 0)),
            pl.BlockSpec((Cout, tm), lambda j: (0, j)),
            pl.BlockSpec((tm, 128), lambda j: (j, 0)),
        ],
        out_specs=pl.BlockSpec((1, 128), lambda j: (0, 0)),
        scratch_shapes=[pltpu.VMEM((1, 128), jnp.float32)],
        compiler_params=pltpu.CompilerParams(dimension_semantics=("arbitrary",)),
        cost_estimate=cost,
    )(phases, phases, w4mat, wm, sel)

    return out[0, :N]                                           # == x.view(-1)


# --------------------- one-time weight preprocessing ------------------------ #
def _merged_conv1_oihw(w11, w12):
    """Block-diagonal weight computing cat([conv1_1(x), conv1_2(y)], C) in one GEMM."""
    Co1, C1, KH, KW = w11.shape
    Co2, C2, _, _ = w12.shape
    top = jnp.concatenate([w11, jnp.zeros((Co1, C2, KH, KW), w11.dtype)], axis=1)
    bot = jnp.concatenate([jnp.zeros((Co2, C1, KH, KW), w12.dtype), w12], axis=1)
    return jnp.concatenate([top, bot], axis=0)      # (Co1+Co2, C1+C2, 4, 4)


def prep_conv_weight(w_oihw):
    """(Cout, Cin, 4, 4) -> (Cout, 16*Cin_pad) bf16, K ordered (phase, sub-tap, cin)."""
    Cout, Cin, KH, KW = w_oihw.shape
    assert (KH, KW) == (4, 4)
    Cin_p = _round_up(Cin, 8)
    if Cin_p != Cin:
        w_oihw = jnp.pad(w_oihw, ((0, 0), (0, Cin_p - Cin), (0, 0), (0, 0)))
    cols = []
    for ph in range(2):
        for pw in range(2):
            for qh in range(2):
                for qw in range(2):
                    cols.append(w_oihw[:, :, 2 * qh + ph, 2 * qw + pw])
    return jnp.concatenate(cols, axis=1).astype(_BF16)


def prepare_params(params):
    """Hoisted out of the jitted forward: merge conv1, flatten taps, cast to bf16.

    NOTE: the block-diagonal conv1 merge is only kept while Cout1+Cout2 stays
    well below the MXU row width (fine up to ndf ~ 128-256); otherwise split.
    """
    w1 = _merged_conv1_oihw(params["conv1_1"], params["conv1_2"])
    return {
        "w1": prep_conv_weight(w1),
        "w2": prep_conv_weight(params["conv2"]),
        "w3": prep_conv_weight(params["conv3"]),
        "w4": prep_conv_weight(params["conv4"]),
        "w_out": params["out"].astype(jnp.float32),
    }


# --------------------------------- forward ---------------------------------- #
def cnet_d1_forward(prep, input_nchw, label_nchw):
    # Single layout change at the boundary: NCHW -> channels-major (C, N, H, W).
    x = jnp.concatenate([input_nchw, label_nchw], axis=1)
    x = jnp.transpose(x, (1, 0, 2, 3)).astype(_BF16)
    h = conv4x4_s2_lrelu(x, prep["w1"])   # merged conv1_1/conv1_2 + LeakyReLU + concat
    h = conv4x4_s2_lrelu(h, prep["w2"])   # Dropout(0.4) == identity (eval)
    h = conv4x4_s2_lrelu(h, prep["w3"])
    return conv4_out_sigmoid(h, prep["w4"], prep["w_out"])   # conv4+out+sigmoid fused


# ---------------------------- pure-JAX reference ---------------------------- #
def _conv_ref(x_nchw, w, stride, pad):
    return jax.lax.conv_general_dilated(
        x_nchw, w, window_strides=(stride, stride),
        padding=((pad, pad), (pad, pad)),
        dimension_numbers=("NCHW", "OIHW", "NCHW"),
        precision=jax.lax.Precision.HIGHEST)


def _lrelu(x):
    return jnp.where(x > 0, x, 0.2 * x)


def cnet_d1_reference(params, inp, lab):
    x = _lrelu(_conv_ref(inp, params["conv1_1"], 2, 1))
    y = _lrelu(_conv_ref(lab, params["conv1_2"], 2, 1))
    h = jnp.concatenate([x, y], axis=1)
    h = _lrelu(_conv_ref(h, params["conv2"], 2, 1))
    h = _lrelu(_conv_ref(h, params["conv3"], 2, 1))
    h = _lrelu(_conv_ref(h, params["conv4"], 2, 1))
    h = jax.nn.sigmoid(_conv_ref(h, params["out"], 1, 0))
    return h.reshape(-1)


# ----------------------------------- main ----------------------------------- #
if __name__ == "__main__":
    # Architecture-consistent small sizes: 64x64 input -> four stride-2 convs
    # -> 4x4 -> final 4x4 valid conv -> 1x1.
    N, nc, num_classes, ndf, S = 2, 3, 4, 8, 64

    key = jax.random.PRNGKey(0)
    ks = jax.random.split(key, 8)

    def w_init(k, shape):
        return (0.02 * jax.random.normal(k, shape)).astype(jnp.float32)

    params = {
        "conv1_1": w_init(ks[0], (ndf // 2, nc, 4, 4)),
        "conv1_2": w_init(ks[1], (ndf // 2, num_classes, 4, 4)),
        "conv2":   w_init(ks[2], (ndf * 2, ndf, 4, 4)),
        "conv3":   w_init(ks[3], (ndf * 4, ndf * 2, 4, 4)),
        "conv4":   w_init(ks[4], (ndf * 8, ndf * 4, 4, 4)),
        "out":     w_init(ks[5], (1, ndf * 8, 4, 4)),
    }

    x = jax.random.normal(ks[6], (N, nc, S, S), dtype=jnp.float32)
    label = jax.random.normal(ks[7], (N, num_classes, S, S), dtype=jnp.float32)

    prep = prepare_params(params)             # weight prep hoisted out of jit
    fwd = jax.jit(cnet_d1_forward)
    out = jax.block_until_ready(fwd(prep, x, label))

    ref = jax.block_until_ready(cnet_d1_reference(params, x, label))
    assert out.shape == (N,), out.shape
    # NOTE: kernels run bf16 MXU / f32 accumulate (intentional precision change
    # vs the f32 HIGHEST-precision reference); tolerance reflects that.
    max_diff = float(jnp.max(jnp.abs(out - ref)))
    assert max_diff < 5e-2, f"mismatch vs reference: {max_diff}"

    print("KERNEL_OK")
</pallas_src>

<mosaic_0001>
module attributes {stable_mosaic.version = 11 : i64} {
  func.func @_conv_lrelu_kernel(%arg0: i32, %arg1: memref<4x8x384xbf16, #tpu.memory_space<vmem>>, %arg2: memref<4x8x128xbf16, #tpu.memory_space<vmem>>, %arg3: memref<8x128xbf16, #tpu.memory_space<vmem>>, %arg4: memref<8x384xbf16, #tpu.memory_space<vmem>>) attributes {dimension_semantics = [#tpu.dimension_semantics<parallel>], iteration_bounds = array<i64: 6>, scalar_prefetch = 0 : i64, scratch_operands = 0 : i64, tpu.core_type = #tpu.core_type<tc>, window_params = [{transform_indices = @transform_0, window_bounds = array<i64: 4, 8, 384>}, {transform_indices = @transform_1, window_bounds = array<i64: 4, 8, 128>}, {pipeline_mode = #tpu.pipeline_mode<synchronous>, transform_indices = @transform_2, window_bounds = array<i64: 8, 128>}, {transform_indices = @transform_3, window_bounds = array<i64: 8, 384>}]} {
    %c0 = arith.constant 0 : index
    %c0_0 = arith.constant 0 : index
    %c0_1 = arith.constant 0 : index
    %0 = vector.load %arg1[%c0, %c0_0, %c0_1] : memref<4x8x384xbf16, #tpu.memory_space<vmem>>, vector<4x8x384xbf16>
    %c0_2 = arith.constant 0 : index
    %c0_3 = arith.constant 0 : index
    %c0_4 = arith.constant 0 : index
    %1 = vector.load %arg2[%c0_2, %c0_3, %c0_4] : memref<4x8x128xbf16, #tpu.memory_space<vmem>>, vector<4x8x128xbf16>
    %2 = tpu.concatenate %0, %1 in 2 : vector<4x8x384xbf16>, vector<4x8x128xbf16> -> vector<4x8x512xbf16>
    %3 = vector.extract_strided_slice %2 {offsets = [0, 0, 0], sizes = [1, 8, 512], strides = [1, 1, 1]} : vector<4x8x512xbf16> to vector<1x8x512xbf16>
    %4 = vector.shape_cast %3 : vector<1x8x512xbf16> to vector<8x512xbf16>
    %5 = vector.extract_strided_slice %4 {offsets = [0, 0], sizes = [8, 384], strides = [1, 1]} : vector<8x512xbf16> to vector<8x384xbf16>
    %6 = vector.extract_strided_slice %4 {offsets = [0, 1], sizes = [8, 384], strides = [1, 1]} : vector<8x512xbf16> to vector<8x384xbf16>
    %7 = vector.extract_strided_slice %4 {offsets = [0, 33], sizes = [8, 384], strides = [1, 1]} : vector<8x512xbf16> to vector<8x384xbf16>
    %8 = vector.extract_strided_slice %4 {offsets = [0, 34], sizes = [8, 384], strides = [1, 1]} : vector<8x512xbf16> to vector<8x384xbf16>
    %9 = vector.extract_strided_slice %2 {offsets = [1, 0, 0], sizes = [1, 8, 512], strides = [1, 1, 1]} : vector<4x8x512xbf16> to vector<1x8x512xbf16>
    %10 = vector.shape_cast %9 : vector<1x8x512xbf16> to vector<8x512xbf16>
    %11 = vector.extract_strided_slice %10 {offsets = [0, 0], sizes = [8, 384], strides = [1, 1]} : vector<8x512xbf16> to vector<8x384xbf16>
    %12 = vector.extract_strided_slice %10 {offsets = [0, 1], sizes = [8, 384], strides = [1, 1]} : vector<8x512xbf16> to vector<8x384xbf16>
    %13 = vector.extract_strided_slice %10 {offsets = [0, 33], sizes = [8, 384], strides = [1, 1]} : vector<8x512xbf16> to vector<8x384xbf16>
    %14 = vector.extract_strided_slice %10 {offsets = [0, 34], sizes = [8, 384], strides = [1, 1]} : vector<8x512xbf16> to vector<8x384xbf16>
    %15 = vector.extract_strided_slice %2 {offsets = [2, 0, 0], sizes = [1, 8, 512], strides = [1, 1, 1]} : vector<4x8x512xbf16> to vector<1x8x512xbf16>
    %16 = vector.shape_cast %15 : vector<1x8x512xbf16> to vector<8x512xbf16>
    %17 = vector.extract_strided_slice %16 {offsets = [0, 0], sizes = [8, 384], strides = [1, 1]} : vector<8x512xbf16> to vector<8x384xbf16>
    %18 = vector.extract_strided_slice %16 {offsets = [0, 1], sizes = [8, 384], strides = [1, 1]} : vector<8x512xbf16> to vector<8x384xbf16>
    %19 = vector.extract_strided_slice %16 {offsets = [0, 33], sizes = [8, 384], strides = [1, 1]} : vector<8x512xbf16> to vector<8x384xbf16>
    %20 = vector.extract_strided_slice %16 {offsets = [0, 34], sizes = [8, 384], strides = [1, 1]} : vector<8x512xbf16> to vector<8x384xbf16>
    %21 = vector.extract_strided_slice %2 {offsets = [3, 0, 0], sizes = [1, 8, 512], strides = [1, 1, 1]} : vector<4x8x512xbf16> to vector<1x8x512xbf16>
    %22 = vector.shape_cast %21 : vector<1x8x512xbf16> to vector<8x512xbf16>
    %23 = vector.extract_strided_slice %22 {offsets = [0, 0], sizes = [8, 384], strides = [1, 1]} : vector<8x512xbf16> to vector<8x384xbf16>
    %24 = vector.extract_strided_slice %22 {offsets = [0, 1], sizes = [8, 384], strides = [1, 1]} : vector<8x512xbf16> to vector<8x384xbf16>
    %25 = vector.extract_strided_slice %22 {offsets = [0, 33], sizes = [8, 384], strides = [1, 1]} : vector<8x512xbf16> to vector<8x384xbf16>
    %26 = vector.extract_strided_slice %22 {offsets = [0, 34], sizes = [8, 384], strides = [1, 1]} : vector<8x512xbf16> to vector<8x384xbf16>
    %27 = tpu.concatenate %5, %6, %7, %8, %11, %12, %13, %14, %17, %18, %19, %20, %23, %24, %25, %26 in 0 : vector<8x384xbf16>, vector<8x384xbf16>, vector<8x384xbf16>, vector<8x384xbf16>, vector<8x384xbf16>, vector<8x384xbf16>, vector<8x384xbf16>, vector<8x384xbf16>, vector<8x384xbf16>, vector<8x384xbf16>, vector<8x384xbf16>, vector<8x384xbf16>, vector<8x384xbf16>, vector<8x384xbf16>, vector<8x384xbf16>, vector<8x384xbf16> -> vector<128x384xbf16>
    %c0_5 = arith.constant 0 : index
    %c0_6 = arith.constant 0 : index
    %28 = vector.load %arg3[%c0_5, %c0_6] : memref<8x128xbf16, #tpu.memory_space<vmem>>, vector<8x128xbf16>
    %cst = arith.constant dense<0.000000e+00> : vector<8x384xf32>
    %29 = tpu.matmul %28, %27, %cst {dimension_numbers = #tpu.dot_dimension_numbers<[1], [0], [0], [1], [0, 0, 1, 1], [], []>} : vector<8x128xbf16>, vector<128x384xbf16>, vector<8x384xf32> -> vector<8x384xf32>
    %cst_7 = arith.constant 0.000000e+00 : f32
    %30 = vector.broadcast %cst_7 : f32 to vector<8x384xf32>
    %31 = arith.cmpf ogt, %29, %30 : vector<8x384xf32>
    %cst_8 = arith.constant 2.000000e-01 : f32
    %32 = vector.broadcast %cst_8 : f32 to vector<8x384xf32>
    %33 = arith.mulf %32, %29 : vector<8x384xf32>
    %34 = arith.select %31, %29, %33 : vector<8x384xi1>, vector<8x384xf32>
    %35 = arith.truncf %34 : vector<8x384xf32> to vector<8x384xbf16>
    %c0_9 = arith.constant 0 : index
    %c0_10 = arith.constant 0 : index
    %36 = vector.load %arg4[%c0_9, %c0_10] : memref<8x384xbf16, #tpu.memory_space<vmem>>, vector<8x384xbf16>
    tpu.vector_store %arg4[%c0_9, %c0_10], %35 {strides = array<i32>} : memref<8x384xbf16, #tpu.memory_space<vmem>>, vector<8x384xbf16>,
    return
  }
  func.func @transform_0(%arg0: i32) -> (i32, i32, i32) {
    %c0_i32 = arith.constant 0 : i32
    %c0_i32_0 = arith.constant 0 : i32
    %c0_i32_1 = arith.constant 0 : i32
    return %c0_i32, %c0_i32_0, %arg0 : i32, i32, i32
  }
  func.func @transform_1(%arg0: i32) -> (i32, i32, i32) {
    %c1_i32 = arith.constant 1 : i32
    %0 = arith.addi %arg0, %c1_i32 : i32
    %c3_i32 = arith.constant 3 : i32
    %1 = arith.muli %0, %c3_i32 : i32
    %c0_i32 = arith.constant 0 : i32
    %c0_i32_0 = arith.constant 0 : i32
    %c0_i32_1 = arith.constant 0 : i32
    return %c0_i32, %c0_i32_0, %1 : i32, i32, i32
  }
  func.func @transform_2(%arg0: i32) -> (i32, i32) {
    %c0_i32 = arith.constant 0 : i32
    %c0_i32_0 = arith.constant 0 : i32
    %c0_i32_1 = arith.constant 0 : i32
    return %c0_i32, %c0_i32_0 : i32, i32
  }
  func.func @transform_3(%arg0: i32) -> (i32, i32) {
    %c0_i32 = arith.constant 0 : i32
    %c0_i32_0 = arith.constant 0 : i32
    return %c0_i32, %arg0 : i32, i32
  }
}

module attributes {stable_mosaic.version = 11 : i64} {
  func.func @_conv_lrelu_kernel(%arg0: i32, %arg1: memref<4x8x128xbf16, #tpu.memory_space<vmem>>, %arg2: memref<4x8x128xbf16, #tpu.memory_space<vmem>>, %arg3: memref<16x128xbf16, #tpu.memory_space<vmem>>, %arg4: memref<16x128xbf16, #tpu.memory_space<vmem>>) attributes {dimension_semantics = [#tpu.dimension_semantics<parallel>], iteration_bounds = array<i64: 5>, scalar_prefetch = 0 : i64, scratch_operands = 0 : i64, tpu.core_type = #tpu.core_type<tc>, window_params = [{transform_indices = @transform_0, window_bounds = array<i64: 4, 8, 128>}, {transform_indices = @transform_1, window_bounds = array<i64: 4, 8, 128>}, {pipeline_mode = #tpu.pipeline_mode<synchronous>, transform_indices = @transform_2, window_bounds = array<i64: 16, 128>}, {transform_indices = @transform_3, window_bounds = array<i64: 16, 128>}]} {
    %c0 = arith.constant 0 : index
    %c0_0 = arith.constant 0 : index
    %c0_1 = arith.constant 0 : index
    %0 = vector.load %arg1[%c0, %c0_0, %c0_1] : memref<4x8x128xbf16, #tpu.memory_space<vmem>>, vector<4x8x128xbf16>
    %c0_2 = arith.constant 0 : index
    %c0_3 = arith.constant 0 : index
    %c0_4 = arith.constant 0 : index
    %1 = vector.load %arg2[%c0_2, %c0_3, %c0_4] : memref<4x8x128xbf16, #tpu.memory_space<vmem>>, vector<4x8x128xbf16>
    %2 = tpu.concatenate %0, %1 in 2 : vector<4x8x128xbf16>, vector<4x8x128xbf16> -> vector<4x8x256xbf16>
    %3 = vector.extract_strided_slice %2 {offsets = [0, 0, 0], sizes = [1, 8, 256], strides = [1, 1, 1]} : vector<4x8x256xbf16> to vector<1x8x256xbf16>
    %4 = vector.shape_cast %3 : vector<1x8x256xbf16> to vector<8x256xbf16>
    %5 = vector.extract_strided_slice %4 {offsets = [0, 0], sizes = [8, 128], strides = [1, 1]} : vector<8x256xbf16> to vector<8x128xbf16>
    %6 = vector.extract_strided_slice %4 {offsets = [0, 1], sizes = [8, 128], strides = [1, 1]} : vector<8x256xbf16> to vector<8x128xbf16>
    %7 = vector.extract_strided_slice %4 {offsets = [0, 17], sizes = [8, 128], strides = [1, 1]} : vector<8x256xbf16> to vector<8x128xbf16>
    %8 = vector.extract_strided_slice %4 {offsets = [0, 18], sizes = [8, 128], strides = [1, 1]} : vector<8x256xbf16> to vector<8x128xbf16>
    %9 = vector.extract_strided_slice %2 {offsets = [1, 0, 0], sizes = [1, 8, 256], strides = [1, 1, 1]} : vector<4x8x256xbf16> to vector<1x8x256xbf16>
    %10 = vector.shape_cast %9 : vector<1x8x256xbf16> to vector<8x256xbf16>
    %11 = vector.extract_strided_slice %10 {offsets = [0, 0], sizes = [8, 128], strides = [1, 1]} : vector<8x256xbf16> to vector<8x128xbf16>
    %12 = vector.extract_strided_slice %10 {offsets = [0, 1], sizes = [8, 128], strides = [1, 1]} : vector<8x256xbf16> to vector<8x128xbf16>
    %13 = vector.extract_strided_slice %10 {offsets = [0, 17], sizes = [8, 128], strides = [1, 1]} : vector<8x256xbf16> to vector<8x128xbf16>
    %14 = vector.extract_strided_slice %10 {offsets = [0, 18], sizes = [8, 128], strides = [1, 1]} : vector<8x256xbf16> to vector<8x128xbf16>
    %15 = vector.extract_strided_slice %2 {offsets = [2, 0, 0], sizes = [1, 8, 256], strides = [1, 1, 1]} : vector<4x8x256xbf16> to vector<1x8x256xbf16>
    %16 = vector.shape_cast %15 : vector<1x8x256xbf16> to vector<8x256xbf16>
    %17 = vector.extract_strided_slice %16 {offsets = [0, 0], sizes = [8, 128], strides = [1, 1]} : vector<8x256xbf16> to vector<8x128xbf16>
    %18 = vector.extract_strided_slice %16 {offsets = [0, 1], sizes = [8, 128], strides = [1, 1]} : vector<8x256xbf16> to vector<8x128xbf16>
    %19 = vector.extract_strided_slice %16 {offsets = [0, 17], sizes = [8, 128], strides = [1, 1]} : vector<8x256xbf16> to vector<8x128xbf16>
    %20 = vector.extract_strided_slice %16 {offsets = [0, 18], sizes = [8, 128], strides = [1, 1]} : vector<8x256xbf16> to vector<8x128xbf16>
    %21 = vector.extract_strided_slice %2 {offsets = [3, 0, 0], sizes = [1, 8, 256], strides = [1, 1, 1]} : vector<4x8x256xbf16> to vector<1x8x256xbf16>
    %22 = vector.shape_cast %21 : vector<1x8x256xbf16> to vector<8x256xbf16>
    %23 = vector.extract_strided_slice %22 {offsets = [0, 0], sizes = [8, 128], strides = [1, 1]} : vector<8x256xbf16> to vector<8x128xbf16>
    %24 = vector.extract_strided_slice %22 {offsets = [0, 1], sizes = [8, 128], strides = [1, 1]} : vector<8x256xbf16> to vector<8x128xbf16>
    %25 = vector.extract_strided_slice %22 {offsets = [0, 17], sizes = [8, 128], strides = [1, 1]} : vector<8x256xbf16> to vector<8x128xbf16>
    %26 = vector.extract_strided_slice %22 {offsets = [0, 18], sizes = [8, 128], strides = [1, 1]} : vector<8x256xbf16> to vector<8x128xbf16>
    %27 = tpu.concatenate %5, %6, %7, %8, %11, %12, %13, %14, %17, %18, %19, %20, %23, %24, %25, %26 in 0 : vector<8x128xbf16>, vector<8x128xbf16>, vector<8x128xbf16>, vector<8x128xbf16>, vector<8x128xbf16>, vector<8x128xbf16>, vector<8x128xbf16>, vector<8x128xbf16>, vector<8x128xbf16>, vector<8x128xbf16>, vector<8x128xbf16>, vector<8x128xbf16>, vector<8x128xbf16>, vector<8x128xbf16>, vector<8x128xbf16>, vector<8x128xbf16> -> vector<128x128xbf16>
    %c0_5 = arith.constant 0 : index
    %c0_6 = arith.constant 0 : index
    %28 = vector.load %arg3[%c0_5, %c0_6] : memref<16x128xbf16, #tpu.memory_space<vmem>>, vector<16x128xbf16>
    %cst = arith.constant dense<0.000000e+00> : vector<16x128xf32>
    %29 = tpu.matmul %28, %27, %cst {dimension_numbers = #tpu.dot_dimension_numbers<[1], [0], [0], [1], [0, 0, 1, 1], [], []>} : vector<16x128xbf16>, vector<128x128xbf16>, vector<16x128xf32> -> vector<16x128xf32>
    %cst_7 = arith.constant 0.000000e+00 : f32
    %30 = vector.broadcast %cst_7 : f32 to vector<16x128xf32>
    %31 = arith.cmpf ogt, %29, %30 : vector<16x128xf32>
    %cst_8 = arith.constant 2.000000e-01 : f32
    %32 = vector.broadcast %cst_8 : f32 to vector<16x128xf32>
    %33 = arith.mulf %32, %29 : vector<16x128xf32>
    %34 = arith.select %31, %29, %33 : vector<16x128xi1>, vector<16x128xf32>
    %35 = arith.truncf %34 : vector<16x128xf32> to vector<16x128xbf16>
    %c0_9 = arith.constant 0 : index
    %c0_10 = arith.constant 0 : index
    %36 = vector.load %arg4[%c0_9, %c0_10] : memref<16x128xbf16, #tpu.memory_space<vmem>>, vector<16x128xbf16>
    tpu.vector_store %arg4[%c0_9, %c0_10], %35 {strides = array<i32>} : memref<16x128xbf16, #tpu.memory_space<vmem>>, vector<16x128xbf16>,
    return
  }
  func.func @transform_0(%arg0: i32) -> (i32, i32, i32) {
    %c0_i32 = arith.constant 0 : i32
    %c0_i32_0 = arith.constant 0 : i32
    %c0_i32_1 = arith.constant 0 : i32
    return %c0_i32, %c0_i32_0, %arg0 : i32, i32, i32
  }
  func.func @transform_1(%arg0: i32) -> (i32, i32, i32) {
    %c1_i32 = arith.constant 1 : i32
    %0 = arith.addi %arg0, %c1_i32 : i32
    %c1_i32_0 = arith.constant 1 : i32
    %1 = arith.muli %0, %c1_i32_0 : i32
    %c0_i32 = arith.constant 0 : i32
    %c0_i32_1 = arith.constant 0 : i32
    %c0_i32_2 = arith.constant 0 : i32
    return %c0_i32, %c0_i32_1, %1 : i32, i32, i32
  }
  func.func @transform_2(%arg0: i32) -> (i32, i32) {
    %c0_i32 = arith.constant 0 : i32
    %c0_i32_0 = arith.constant 0 : i32
    %c0_i32_1 = arith.constant 0 : i32
    return %c0_i32, %c0_i32_0 : i32, i32
  }
  func.func @transform_3(%arg0: i32) -> (i32, i32) {
    %c0_i32 = arith.constant 0 : i32
    %c0_i32_0 = arith.constant 0 : i32
    return %c0_i32, %arg0 : i32, i32
  }
}

module attributes {stable_mosaic.version = 11 : i64} {
  func.func @_conv_lrelu_kernel(%arg0: i32, %arg1: memref<4x16x128xbf16, #tpu.memory_space<vmem>>, %arg2: memref<4x16x128xbf16, #tpu.memory_space<vmem>>, %arg3: memref<32x256xbf16, #tpu.memory_space<vmem>>, %arg4: memref<32x128xbf16, #tpu.memory_space<vmem>>) attributes {dimension_semantics = [#tpu.dimension_semantics<parallel>], iteration_bounds = array<i64: 2>, scalar_prefetch = 0 : i64, scratch_operands = 0 : i64, tpu.core_type = #tpu.core_type<tc>, window_params = [{transform_indices = @transform_0, window_bounds = array<i64: 4, 16, 128>}, {transform_indices = @transform_1, window_bounds = array<i64: 4, 16, 128>}, {pipeline_mode = #tpu.pipeline_mode<synchronous>, transform_indices = @transform_2, window_bounds = array<i64: 32, 256>}, {transform_indices = @transform_3, window_bounds = array<i64: 32, 128>}]} {
    %c0 = arith.constant 0 : index
    %c0_0 = arith.constant 0 : index
    %c0_1 = arith.constant 0 : index
    %0 = vector.load %arg1[%c0, %c0_0, %c0_1] : memref<4x16x128xbf16, #tpu.memory_space<vmem>>, vector<4x16x128xbf16>
    %c0_2 = arith.constant 0 : index
    %c0_3 = arith.constant 0 : index
    %c0_4 = arith.constant 0 : index
    %1 = vector.load %arg2[%c0_2, %c0_3, %c0_4] : memref<4x16x128xbf16, #tpu.memory_space<vmem>>, vector<4x16x128xbf16>
    %2 = tpu.concatenate %0, %1 in 2 : vector<4x16x128xbf16>, vector<4x16x128xbf16> -> vector<4x16x256xbf16>
    %3 = vector.extract_strided_slice %2 {offsets = [0, 0, 0], sizes = [1, 16, 256], strides = [1, 1, 1]} : vector<4x16x256xbf16> to vector<1x16x256xbf16>
    %4 = vector.shape_cast %3 : vector<1x16x256xbf16> to vector<16x256xbf16>
    %5 = vector.extract_strided_slice %4 {offsets = [0, 0], sizes = [16, 128], strides = [1, 1]} : vector<16x256xbf16> to vector<16x128xbf16>
    %6 = vector.extract_strided_slice %4 {offsets = [0, 1], sizes = [16, 128], strides = [1, 1]} : vector<16x256xbf16> to vector<16x128xbf16>
    %7 = vector.extract_strided_slice %4 {offsets = [0, 9], sizes = [16, 128], strides = [1, 1]} : vector<16x256xbf16> to vector<16x128xbf16>
    %8 = vector.extract_strided_slice %4 {offsets = [0, 10], sizes = [16, 128], strides = [1, 1]} : vector<16x256xbf16> to vector<16x128xbf16>
    %9 = vector.extract_strided_slice %2 {offsets = [1, 0, 0], sizes = [1, 16, 256], strides = [1, 1, 1]} : vector<4x16x256xbf16> to vector<1x16x256xbf16>
    %10 = vector.shape_cast %9 : vector<1x16x256xbf16> to vector<16x256xbf16>
    %11 = vector.extract_strided_slice %10 {offsets = [0, 0], sizes = [16, 128], strides = [1, 1]} : vector<16x256xbf16> to vector<16x128xbf16>
    %12 = vector.extract_strided_slice %10 {offsets = [0, 1], sizes = [16, 128], strides = [1, 1]} : vector<16x256xbf16> to vector<16x128xbf16>
    %13 = vector.extract_strided_slice %10 {offsets = [0, 9], sizes = [16, 128], strides = [1, 1]} : vector<16x256xbf16> to vector<16x128xbf16>
    %14 = vector.extract_strided_slice %10 {offsets = [0, 10], sizes = [16, 128], strides = [1, 1]} : vector<16x256xbf16> to vector<16x128xbf16>
    %15 = vector.extract_strided_slice %2 {offsets = [2, 0, 0], sizes = [1, 16, 256], strides = [1, 1, 1]} : vector<4x16x256xbf16> to vector<1x16x256xbf16>
    %16 = vector.shape_cast %15 : vector<1x16x256xbf16> to vector<16x256xbf16>
    %17 = vector.extract_strided_slice %16 {offsets = [0, 0], sizes = [16, 128], strides = [1, 1]} : vector<16x256xbf16> to vector<16x128xbf16>
    %18 = vector.extract_strided_slice %16 {offsets = [0, 1], sizes = [16, 128], strides = [1, 1]} : vector<16x256xbf16> to vector<16x128xbf16>
    %19 = vector.extract_strided_slice %16 {offsets = [0, 9], sizes = [16, 128], strides = [1, 1]} : vector<16x256xbf16> to vector<16x128xbf16>
    %20 = vector.extract_strided_slice %16 {offsets = [0, 10], sizes = [16, 128], strides = [1, 1]} : vector<16x256xbf16> to vector<16x128xbf16>
    %21 = vector.extract_strided_slice %2 {offsets = [3, 0, 0], sizes = [1, 16, 256], strides = [1, 1, 1]} : vector<4x16x256xbf16> to vector<1x16x256xbf16>
    %22 = vector.shape_cast %21 : vector<1x16x256xbf16> to vector<16x256xbf16>
    %23 = vector.extract_strided_slice %22 {offsets = [0, 0], sizes = [16, 128], strides = [1, 1]} : vector<16x256xbf16> to vector<16x128xbf16>
    %24 = vector.extract_strided_slice %22 {offsets = [0, 1], sizes = [16, 128], strides = [1, 1]} : vector<16x256xbf16> to vector<16x128xbf16>
    %25 = vector.extract_strided_slice %22 {offsets = [0, 9], sizes = [16, 128], strides = [1, 1]} : vector<16x256xbf16> to vector<16x128xbf16>
    %26 = vector.extract_strided_slice %22 {offsets = [0, 10], sizes = [16, 128], strides = [1, 1]} : vector<16x256xbf16> to vector<16x128xbf16>
    %27 = tpu.concatenate %5, %6, %7, %8, %11, %12, %13, %14, %17, %18, %19, %20, %23, %24, %25, %26 in 0 : vector<16x128xbf16>, vector<16x128xbf16>, vector<16x128xbf16>, vector<16x128xbf16>, vector<16x128xbf16>, vector<16x128xbf16>, vector<16x128xbf16>, vector<16x128xbf16>, vector<16x128xbf16>, vector<16x128xbf16>, vector<16x128xbf16>, vector<16x128xbf16>, vector<16x128xbf16>, vector<16x128xbf16>, vector<16x128xbf16>, vector<16x128xbf16> -> vector<256x128xbf16>
    %c0_5 = arith.constant 0 : index
    %c0_6 = arith.constant 0 : index
    %28 = vector.load %arg3[%c0_5, %c0_6] : memref<32x256xbf16, #tpu.memory_space<vmem>>, vector<32x256xbf16>
    %cst = arith.constant dense<0.000000e+00> : vector<32x128xf32>
    %29 = tpu.matmul %28, %27, %cst {dimension_numbers = #tpu.dot_dimension_numbers<[1], [0], [0], [1], [0, 0, 1, 1], [], []>} : vector<32x256xbf16>, vector<256x128xbf16>, vector<32x128xf32> -> vector<32x128xf32>
    %cst_7 = arith.constant 0.000000e+00 : f32
    %30 = vector.broadcast %cst_7 : f32 to vector<32x128xf32>
    %31 = arith.cmpf ogt, %29, %30 : vector<32x128xf32>
    %cst_8 = arith.constant 2.000000e-01 : f32
    %32 = vector.broadcast %cst_8 : f32 to vector<32x128xf32>
    %33 = arith.mulf %32, %29 : vector<32x128xf32>
    %34 = arith.select %31, %29, %33 : vector<32x128xi1>, vector<32x128xf32>
    %35 = arith.truncf %34 : vector<32x128xf32> to vector<32x128xbf16>
    %c0_9 = arith.constant 0 : index
    %c0_10 = arith.constant 0 : index
    %36 = vector.load %arg4[%c0_9, %c0_10] : memref<32x128xbf16, #tpu.memory_space<vmem>>, vector<32x128xbf16>
    tpu.vector_store %arg4[%c0_9, %c0_10], %35 {strides = array<i32>} : memref<32x128xbf16, #tpu.memory_space<vmem>>, vector<32x128xbf16>,
    return
  }
  func.func @transform_0(%arg0: i32) -> (i32, i32, i32) {
    %c0_i32 = arith.constant 0 : i32
    %c0_i32_0 = arith.constant 0 : i32
    %c0_i32_1 = arith.constant 0 : i32
    return %c0_i32, %c0_i32_0, %arg0 : i32, i32, i32
  }
  func.func @transform_1(%arg0: i32) -> (i32, i32, i32) {
    %c1_i32 = arith.constant 1 : i32
    %0 = arith.addi %arg0, %c1_i32 : i32
    %c1_i32_0 = arith.constant 1 : i32
    %1 = arith.muli %0, %c1_i32_0 : i32
    %c0_i32 = arith.constant 0 : i32
    %c0_i32_1 = arith.constant 0 : i32
    %c0_i32_2 = arith.constant 0 : i32
    return %c0_i32, %c0_i32_1, %1 : i32, i32, i32
  }
  func.func @transform_2(%arg0: i32) -> (i32, i32) {
    %c0_i32 = arith.constant 0 : i32
    %c0_i32_0 = arith.constant 0 : i32
    %c0_i32_1 = arith.constant 0 : i32
    return %c0_i32, %c0_i32_0 : i32, i32
  }
  func.func @transform_3(%arg0: i32) -> (i32, i32) {
    %c0_i32 = arith.constant 0 : i32
    %c0_i32_0 = arith.constant 0 : i32
    return %c0_i32, %arg0 : i32, i32
  }
}

module attributes {stable_mosaic.version = 11 : i64} {
  func.func @_conv4_out_kernel(%arg0: i32, %arg1: memref<4x32x128xbf16, #tpu.memory_space<vmem>>, %arg2: memref<4x32x128xbf16, #tpu.memory_space<vmem>>, %arg3: memref<64x512xbf16, #tpu.memory_space<vmem>>, %arg4: memref<64x128xf32, #tpu.memory_space<vmem>>, %arg5: memref<128x128xf32, #tpu.memory_space<vmem>>, %arg6: memref<1x128xf32, #tpu.memory_space<vmem>>, %arg7: memref<1x128xf32, #tpu.memory_space<vmem>>) attributes {dimension_semantics = [#tpu.dimension_semantics<arbitrary>], iteration_bounds = array<i64: 1>, scalar_prefetch = 0 : i64, scratch_operands = 1 : i64, tpu.core_type = #tpu.core_type<tc>, window_params = [{transform_indices = @transform_0, window_bounds = array<i64: 4, 32, 128>}, {transform_indices = @transform_1, window_bounds = array<i64: 4, 32, 128>}, {pipeline_mode = #tpu.pipeline_mode<synchronous>, transform_indices = @transform_2, window_bounds = array<i64: 64, 512>}, {transform_indices = @transform_3, window_bounds = array<i64: 64, 128>}, {transform_indices = @transform_4, window_bounds = array<i64: 128, 128>}, {pipeline_mode = #tpu.pipeline_mode<synchronous>, transform_indices = @transform_5, window_bounds = array<i64: 1, 128>}]} {
    %c0_i32 = arith.constant 0 : i32
    %0 = arith.cmpi eq, %arg0, %c0_i32 : i32
    %1 = arith.extui %0 : i1 to i32
    %c0_i32_0 = arith.constant 0 : i32
    %2 = arith.cmpi ne, %1, %c0_i32_0 : i32
    scf.if %2 {
      %cst_22 = arith.constant 0.000000e+00 : f32
      %50 = vector.broadcast %cst_22 : f32 to vector<1x128xf32>
      %c0_23 = arith.constant 0 : index
      %c0_24 = arith.constant 0 : index
      %51 = vector.load %arg7[%c0_23, %c0_24] : memref<1x128xf32, #tpu.memory_space<vmem>>, vector<1x128xf32>
      tpu.vector_store %arg7[%c0_23, %c0_24], %50 {strides = array<i32>} : memref<1x128xf32, #tpu.memory_space<vmem>>, vector<1x128xf32>,
    } else {
    }
    %c0 = arith.constant 0 : index
    %c0_1 = arith.constant 0 : index
    %c0_2 = arith.constant 0 : index
    %3 = vector.load %arg1[%c0, %c0_1, %c0_2] : memref<4x32x128xbf16, #tpu.memory_space<vmem>>, vector<4x32x128xbf16>
    %c0_3 = arith.constant 0 : index
    %c0_4 = arith.constant 0 : index
    %c0_5 = arith.constant 0 : index
    %4 = vector.load %arg2[%c0_3, %c0_4, %c0_5] : memref<4x32x128xbf16, #tpu.memory_space<vmem>>, vector<4x32x128xbf16>
    %5 = tpu.concatenate %3, %4 in 2 : vector<4x32x128xbf16>, vector<4x32x128xbf16> -> vector<4x32x256xbf16>
    %6 = vector.extract_strided_slice %5 {offsets = [0, 0, 0], sizes = [1, 32, 256], strides = [1, 1, 1]} : vector<4x32x256xbf16> to vector<1x32x256xbf16>
    %7 = vector.shape_cast %6 : vector<1x32x256xbf16> to vector<32x256xbf16>
    %8 = vector.extract_strided_slice %7 {offsets = [0, 0], sizes = [32, 128], strides = [1, 1]} : vector<32x256xbf16> to vector<32x128xbf16>
    %9 = vector.extract_strided_slice %7 {offsets = [0, 1], sizes = [32, 128], strides = [1, 1]} : vector<32x256xbf16> to vector<32x128xbf16>
    %10 = vector.extract_strided_slice %7 {offsets = [0, 5], sizes = [32, 128], strides = [1, 1]} : vector<32x256xbf16> to vector<32x128xbf16>
    %11 = vector.extract_strided_slice %7 {offsets = [0, 6], sizes = [32, 128], strides = [1, 1]} : vector<32x256xbf16> to vector<32x128xbf16>
    %12 = vector.extract_strided_slice %5 {offsets = [1, 0, 0], sizes = [1, 32, 256], strides = [1, 1, 1]} : vector<4x32x256xbf16> to vector<1x32x256xbf16>
    %13 = vector.shape_cast %12 : vector<1x32x256xbf16> to vector<32x256xbf16>
    %14 = vector.extract_strided_slice %13 {offsets = [0, 0], sizes = [32, 128], strides = [1, 1]} : vector<32x256xbf16> to vector<32x128xbf16>
    %15 = vector.extract_strided_slice %13 {offsets = [0, 1], sizes = [32, 128], strides = [1, 1]} : vector<32x256xbf16> to vector<32x128xbf16>
    %16 = vector.extract_strided_slice %13 {offsets = [0, 5], sizes = [32, 128], strides = [1, 1]} : vector<32x256xbf16> to vector<32x128xbf16>
    %17 = vector.extract_strided_slice %13 {offsets = [0, 6], sizes = [32, 128], strides = [1, 1]} : vector<32x256xbf16> to vector<32x128xbf16>
    %18 = vector.extract_strided_slice %5 {offsets = [2, 0, 0], sizes = [1, 32, 256], strides = [1, 1, 1]} : vector<4x32x256xbf16> to vector<1x32x256xbf16>
    %19 = vector.shape_cast %18 : vector<1x32x256xbf16> to vector<32x256xbf16>
    %20 = vector.extract_strided_slice %19 {offsets = [0, 0], sizes = [32, 128], strides = [1, 1]} : vector<32x256xbf16> to vector<32x128xbf16>
    %21 = vector.extract_strided_slice %19 {offsets = [0, 1], sizes = [32, 128], strides = [1, 1]} : vector<32x256xbf16> to vector<32x128xbf16>
    %22 = vector.extract_strided_slice %19 {offsets = [0, 5], sizes = [32, 128], strides = [1, 1]} : vector<32x256xbf16> to vector<32x128xbf16>
    %23 = vector.extract_strided_slice %19 {offsets = [0, 6], sizes = [32, 128], strides = [1, 1]} : vector<32x256xbf16> to vector<32x128xbf16>
    %24 = vector.extract_strided_slice %5 {offsets = [3, 0, 0], sizes = [1, 32, 256], strides = [1, 1, 1]} : vector<4x32x256xbf16> to vector<1x32x256xbf16>
    %25 = vector.shape_cast %24 : vector<1x32x256xbf16> to vector<32x256xbf16>
    %26 = vector.extract_strided_slice %25 {offsets = [0, 0], sizes = [32, 128], strides = [1, 1]} : vector<32x256xbf16> to vector<32x128xbf16>
    %27 = vector.extract_strided_slice %25 {offsets = [0, 1], sizes = [32, 128], strides = [1, 1]} : vector<32x256xbf16> to vector<32x128xbf16>
    %28 = vector.extract_strided_slice %25 {offsets = [0, 5], sizes = [32, 128], strides = [1, 1]} : vector<32x256xbf16> to vector<32x128xbf16>
    %29 = vector.extract_strided_slice %25 {offsets = [0, 6], sizes = [32, 128], strides = [1, 1]} : vector<32x256xbf16> to vector<32x128xbf16>
    %30 = tpu.concatenate %8, %9, %10, %11, %14, %15, %16, %17, %20, %21, %22, %23, %26, %27, %28, %29 in 0 : vector<32x128xbf16>, vector<32x128xbf16>, vector<32x128xbf16>, vector<32x128xbf16>, vector<32x128xbf16>, vector<32x128xbf16>, vector<32x128xbf16>, vector<32x128xbf16>, vector<32x128xbf16>, vector<32x128xbf16>, vector<32x128xbf16>, vector<32x128xbf16>, vector<32x128xbf16>, vector<32x128xbf16>, vector<32x128xbf16>, vector<32x128xbf16> -> vector<512x128xbf16>
    %c0_6 = arith.constant 0 : index
    %c0_7 = arith.constant 0 : index
    %31 = vector.load %arg3[%c0_6, %c0_7] : memref<64x512xbf16, #tpu.memory_space<vmem>>, vector<64x512xbf16>
    %cst = arith.constant dense<0.000000e+00> : vector<64x128xf32>
    %32 = tpu.matmul %31, %30, %cst {dimension_numbers = #tpu.dot_dimension_numbers<[1], [0], [0], [1], [0, 0, 1, 1], [], []>} : vector<64x512xbf16>, vector<512x128xbf16>, vector<64x128xf32> -> vector<64x128xf32>
    %cst_8 = arith.constant 0.000000e+00 : f32
    %33 = vector.broadcast %cst_8 : f32 to vector<64x128xf32>
    %34 = arith.cmpf ogt, %32, %33 : vector<64x128xf32>
    %cst_9 = arith.constant 2.000000e-01 : f32
    %35 = vector.broadcast %cst_9 : f32 to vector<64x128xf32>
    %36 = arith.mulf %35, %32 : vector<64x128xf32>
    %37 = arith.select %34, %32, %36 : vector<64x128xi1>, vector<64x128xf32>
    %c0_10 = arith.constant 0 : index
    %c0_11 = arith.constant 0 : index
    %38 = vector.load %arg4[%c0_10, %c0_11] : memref<64x128xf32, #tpu.memory_space<vmem>>, vector<64x128xf32>
    %39 = arith.mulf %37, %38 : vector<64x128xf32>
    %cst_12 = arith.constant dense<0.000000e+00> : vector<128xf32>
    %40 = vector.multi_reduction <add>, %39, %cst_12 [0] : vector<64x128xf32> to vector<128xf32>
    %41 = vector.shape_cast %40 : vector<128xf32> to vector<1x128xf32>
    %c0_13 = arith.constant 0 : index
    %c0_14 = arith.constant 0 : index
    %42 = vector.load %arg7[%c0_13, %c0_14] : memref<1x128xf32, #tpu.memory_space<vmem>>, vector<1x128xf32>
    %c0_15 = arith.constant 0 : index
    %c0_16 = arith.constant 0 : index
    %43 = vector.load %arg5[%c0_15, %c0_16] : memref<128x128xf32, #tpu.memory_space<vmem>>, vector<128x128xf32>
    %cst_17 = arith.constant dense<0.000000e+00> : vector<1x128xf32>
    %44 = tpu.matmul %41, %43, %cst_17 {dimension_numbers = #tpu.dot_dimension_numbers<[1], [0], [0], [1], [0, 0, 1, 1], [], []>} : vector<1x128xf32>, vector<128x128xf32>, vector<1x128xf32> -> vector<1x128xf32>
    %45 = arith.addf %42, %44 : vector<1x128xf32>
    %c0_18 = arith.constant 0 : index
    %c0_19 = arith.constant 0 : index
    %46 = vector.load %arg7[%c0_18, %c0_19] : memref<1x128xf32, #tpu.memory_space<vmem>>, vector<1x128xf32>
    tpu.vector_store %arg7[%c0_18, %c0_19], %45 {strides = array<i32>} : memref<1x128xf32, #tpu.memory_space<vmem>>, vector<1x128xf32>,
    %c0_i32_20 = arith.constant 0 : i32
    %47 = arith.cmpi eq, %arg0, %c0_i32_20 : i32
    %48 = arith.extui %47 : i1 to i32
    %c0_i32_21 = arith.constant 0 : i32
    %49 = arith.cmpi ne, %48, %c0_i32_21 : i32
    scf.if %49 {
      %c0_22 = arith.constant 0 : index
      %c0_23 = arith.constant 0 : index
      %50 = vector.load %arg7[%c0_22, %c0_23] : memref<1x128xf32, #tpu.memory_space<vmem>>, vector<1x128xf32>
      %51 = arith.negf %50 : vector<1x128xf32>
      %52 = math.exp %51 : vector<1x128xf32>
      %cst_24 = arith.constant 1.000000e+00 : f32
      %53 = vector.broadcast %cst_24 : f32 to vector<1x128xf32>
      %54 = arith.addf %53, %52 : vector<1x128xf32>
      %55 = arith.divf %53, %54 : vector<1x128xf32>
      %c0_25 = arith.constant 0 : index
      %c0_26 = arith.constant 0 : index
      %56 = vector.load %arg6[%c0_25, %c0_26] : memref<1x128xf32, #tpu.memory_space<vmem>>, vector<1x128xf32>
      tpu.vector_store %arg6[%c0_25, %c0_26], %55 {strides = array<i32>} : memref<1x128xf32, #tpu.memory_space<vmem>>, vector<1x128xf32>,
    } else {
    }
    return
  }
  func.func @transform_0(%arg0: i32) -> (i32, i32, i32) {
    %c0_i32 = arith.constant 0 : i32
    %c0_i32_0 = arith.constant 0 : i32
    %c0_i32_1 = arith.constant 0 : i32
    return %c0_i32, %c0_i32_0, %arg0 : i32, i32, i32
  }
  func.func @transform_1(%arg0: i32) -> (i32, i32, i32) {
    %c1_i32 = arith.constant 1 : i32
    %0 = arith.addi %arg0, %c1_i32 : i32
    %c1_i32_0 = arith.constant 1 : i32
    %1 = arith.muli %0, %c1_i32_0 : i32
    %c0_i32 = arith.constant 0 : i32
    %c0_i32_1 = arith.constant 0 : i32
    %c0_i32_2 = arith.constant 0 : i32
    return %c0_i32, %c0_i32_1, %1 : i32, i32, i32
  }
  func.func @transform_2(%arg0: i32) -> (i32, i32) {
    %c0_i32 = arith.constant 0 : i32
    %c0_i32_0 = arith.constant 0 : i32
    %c0_i32_1 = arith.constant 0 : i32
    return %c0_i32, %c0_i32_0 : i32, i32
  }
  func.func @transform_3(%arg0: i32) -> (i32, i32) {
    %c0_i32 = arith.constant 0 : i32
    %c0_i32_0 = arith.constant 0 : i32
    return %c0_i32, %arg0 : i32, i32
  }
  func.func @transform_4(%arg0: i32) -> (i32, i32) {
    %c0_i32 = arith.constant 0 : i32
    %c0_i32_0 = arith.constant 0 : i32
    return %arg0, %c0_i32 : i32, i32
  }
  func.func @transform_5(%arg0: i32) -> (i32, i32) {
    %c0_i32 = arith.constant 0 : i32
    %c0_i32_0 = arith.constant 0 : i32
    %c0_i32_1 = arith.constant 0 : i32
    return %c0_i32, %c0_i32_0 : i32, i32
  }
}

</mosaic_0001>

<bundles_post_ra>
// kernel: cnet_d1_forward.4
= control target key start
LH: loop header
LB: loop body
LE: loop exit
PB: predicated region body
PF: predicated region fallthrough
CT: control target
= control target key end

     0   :  { %s2089_s0 = inlined_call_operand.vmem [shape: bf16[4,8,2432], index: 0, kind: input, shape index: {}, may-alias: {0,1}]   ;;  %s2090_s1 = inlined_call_operand.vmem [shape: bf16[4,8,2432], index: 1, kind: input, shape index: {}, may-alias: {0,1}]   ;;  %s2091_s2 = inlined_call_operand.vmem [shape: bf16[8,128], index: 2, kind: input, shape index: {}]   ;;  %s2092_s3 = inlined_call_operand.vmem [shape: bf16[8,2304], index: 3, kind: output, shape index: {}]  }
   0x1   :  { %2093 = sst [smem:[#allocation4_spill]] %s2089_s0 }
   0x2   :  { %s1485_s12 = smov 0   ;;  %s1487_s13 = smov 0  }
   0x3   :  { %s1489_s14 = smov 0   ;;  %s1491_s15 = smov 0  }
   0x4   :  { %s1493_s16 = smov 0  }
   0x5 LB: > { %s1512_s18 = sadd.s32 1, %s1394_s16   ;;  %s20_s20 = sadd.s32 1, %s1390_s15  ;;  %s1394_s16 = sphi %s1493_s16, %s2116_s16   ;;  %s1390_s15 = sphi %s1491_s15, %s2115_s15   ;;  %s1386_s14 = sphi %s1489_s14, %s2114_s14   ;;  %s1382_s13 = sphi %s1487_s13, %s2113_s13   ;;  %s1378_s12 = sphi %s1485_s12, %s2112_s12  }
   0x6   : > { %s17_s19 = ssub.s32 %s1394_s16, %s1512_s18  ;;  %p27_p1 = scmp.ne.s32.totalorder %s1390_s15, %s1386_s14 }
   0x7   : > { %p18_p0 = scmp.eq.s32.totalorder %s17_s19, 0  ;;  %p28_p2 = scmp.eq.s32.totalorder %s1394_s16, 0 }
   0x8   : > { %s44_s21 = smul.u32 3, %s1512_s18  ;;  %s45_s23 = sadd.s32 1, %s1512_s18 }
   0x9   : > { %s1522_s22 = scalar_select %p18_p0, %s1390_s15, %s20_s20  }
   0xa   : > { %p29_p3 = por %p28_p2, %p27_p1  ;;  %s46_s24 = smul.u32 3, %s45_s23 }
   0xb   : > { %p57_p4 = scmp.ne.s32.totalorder %s1382_s13, %s1378_s12  ;;  %s50_s26 = sadd.s32 1, %s1382_s13 }
   0xc   : > { %s47_s25 = ssub.s32 %s44_s21, %s46_s24  ;;  %p1074_p7 = scmp.ge.s32.totalorder %s1394_s16, 6 }
   0xd   : > { %p48_p5 = scmp.eq.s32.totalorder %s47_s25, 0  ;;  %p1528_p6 = por %p57_p4, %p28_p2 }
   0xe   : > { %133 = sbr.rel (%p1074_p7) target bundleno = 188 (0xbc), region = 20 }
   0xf   : > { %s1533_s28 = scalar_select %p48_p5, %s1382_s13, %s50_s26  }
  0x13   : > { %136 = sbr.rel (!%p29_p3) target bundleno = 179 (0xb3), region = 24  ;;  %s138_s29 = sand.u32 (%p29_p3), 1, %s1390_s15  }
  0x14   : > { %s141_s30 = smul.u32 (%p29_p3), 3, %s1394_s16  ;;  %s2095_s0 = sld [smem:[#allocation4_spill]] (%p29_p3) }
  0x15   : > { %s1117_s4 = smul.u32 (%p29_p3), 48, %s138_s29 }
  0x16   : > { %s142_s5 = ssub.s32 (%p29_p3), 19, %s141_s30  ;;  %s1112_s6 = smul.u32 (%p29_p3), 12, %s1394_s16 }
  0x17   : > { %p143_p8 = scmp.lt.s32.totalorder (%p29_p3), %s142_s5, 3  ;;  %s1546_s19 = scalar_lea.vmem (%p29_p3), [#allocation2], %s1117_s4  }
  0x19   : > { %s2118_s5 = smov (!%p143_p8, %s142_s5), 3 }
  0x1a   : > { %s1542_s9 = scalar_lea.vmem %s2095_s0, %s1112_s6   ;;  %s1075_s10 = sshll.u32 %s2118_s5, 4 }
  0x1b   : > { %s1544_s11 = sshll.u32 %s2118_s5, 2  ;;  %p1079_p9 = scmp.eq.s32.totalorder %s1075_s10, 0 }
  0x1c   : > { %p153_p10 = scmp.lt.u32.totalorder (!%p1079_p9), %s1544_s11, 8 }
  0x1d   : > { %152 = sbr.rel (%p1079_p9) target bundleno = 179 (0xb3), region = 28 }
  0x22   : > { %156 = sbr.rel (%p153_p10) target bundleno = 167 (0xa7), region = 32  ;;  %s1550_s20 = sand.u32 (!%p153_p10), 7, %s1544_s11  }
  0x23   : > { %p179_p11 = scmp.eq.s32.totalorder (!%p153_p10), %s1550_s20, 0  ;;  %p1080_p12 = scmp.ne.s32.totalorder (!%p153_p10), %s1550_s20, 0 }
  0x27   : > { %182 = sbr.rel (%p1080_p12) target bundleno = 99 (0x63), region = 47  ;;  %s183_s21 = sshrl.u32 (!%p1080_p12), %s1544_s11, 3 }
  0x28   : > { %s1557_s23 = sshrl.u32 (!%p1080_p12), %s183_s21, 3 }
  0x29   : > { %p1081_p13 = scmp.le.s32.totalorder (!%p1080_p12), %s1557_s23, 0 }
  0x2c   : > { %994 = sbr.rel (%p1081_p13) target bundleno = 82 (0x52), region = 194  ;;  %s2096_s24 = smov (!%p1081_p13), %s1546_s19 }
  0x2d   : > { %s2097_s25 = smov (!%p1081_p13), %s1542_s9  ;;  %s1566_s26 = smov (!%p1081_p13), 0  }
  0x2e   : > { %s1568_s29 = smov (!%p1081_p13), 0  }
  0x31 LB: >> { %v200_v0 = vld [vmem:[%s1402_s25 + $0x18] sm:$0xff]  ;;  %v202_v1 = vld [vmem:[%s1402_s25 + $0x20] sm:$0xff]  ;;  %v204_v2 = vld [vmem:[%s1402_s25 + $0x28] sm:$0xff]  ;;  %s258_s30 = sadd.s32 1, %s1406_s26  ;;  %s188_s29 = sadd.s32 1, %s1410_s29   ;;  %s1410_s29 = sphi %s1568_s29, %s188_s29   ;;  %s1406_s26 = sphi %s1566_s26, %s2100_s26   ;;  %s1402_s25 = sphi %s2097_s25, %s2099_s25   ;;  %s1398_s24 = sphi %s2096_s24, %s2098_s24  }
  0x32   : >> { %201 = vst [vmem:[%s1398_s24 + $0x18] sm:$0xff] %v200_v0  ;;  %v206_v3 = vld [vmem:[%s1402_s25 + $0x30] sm:$0xff]  ;;  %v208_v4 = vld [vmem:[%s1402_s25 + $0x38] sm:$0xff]  ;;  %p259_p0 = scmp.ge.s32.totalorder %s258_s30, %s1557_s23  ;;  %v216_v7 = vld [vmem:[%s1402_s25 + $0x64] sm:$0xff]  ;;  %p187_p1 = scmp.ge.s32.totalorder %s188_s29, %s1557_s23 }
  0x33   : >> { %203 = vst [vmem:[%s1398_s24 + $0x20] sm:$0xff] %v202_v1  ;;  %v198_v5 = vld [vmem:[%s1402_s25 + $0x10] sm:$0xff]  ;;  %v214_v6 = vld [vmem:[%s1402_s25 + $0x5c] sm:$0xff]  ;;  %v224_v11 = vld [vmem:[%s1402_s25 + $0x84] sm:$0xff] }
  0x34   : >> { %205 = vst [vmem:[%s1398_s24 + $0x28] sm:$0xff] %v204_v2  ;;  %s2120_s30 = smov (%p259_p0, %s258_s30), 0  ;;  %v218_v8 = vld [vmem:[%s1402_s25 + $0x6c] sm:$0xff]  ;;  %v220_v9 = vld [vmem:[%s1402_s25 + $0x74] sm:$0xff]  ;;  %v222_v10 = vld [vmem:[%s1402_s25 + $0x7c] sm:$0xff] }
  0x35   : >> { %207 = vst [vmem:[%s1398_s24 + $0x30] sm:$0xff] %v206_v3  ;;  %s1082_s4 = sshll.u32 %s2120_s30, 6  ;;  %v196_v12 = vld [vmem:[%s1402_s25 + $0x8] sm:$0xff]  ;;  %v212_v13 = vld [vmem:[%s1402_s25 + $0x54] sm:$0xff]  ;;  %v228_v14 = vld [vmem:[%s1402_s25 + $0xa0] sm:$0xff]  ;;  %s2100_s26 = smov %s2120_s30 }
  0x36   : >> { %209 = vst [vmem:[%s1398_s24 + $0x38] sm:$0xff] %v208_v4  ;;  %s1604_s5 = scalar_lea.vmem %s1542_s9, %s1082_s4   ;;  %s1607_s6 = scalar_lea.vmem %s1546_s19, %s1082_s4 [#allocation2]   ;;  %v230_v15 = vld [vmem:[%s1402_s25 + $0xa8] sm:$0xff]  ;;  %v232_v16 = vld [vmem:[%s1402_s25 + $0xb0] sm:$0xff]  ;;  %v234_v17 = vld [vmem:[%s1402_s25 + $0xb8] sm:$0xff] }
  0x37   : >> { %199 = vst [vmem:[%s1398_s24 + $0x10] sm:$0xff] %v198_v5  ;;  %v236_v18 = vld [vmem:[%s1402_s25 + $0xc0] sm:$0xff]  ;;  %v238_v19 = vld [vmem:[%s1402_s25 + $0xc8] sm:$0xff]  ;;  %v240_v20 = vld [vmem:[%s1402_s25 + $0xd0] sm:$0xff] }
  0x38   : >> { %215 = vst [vmem:[%s1398_s24 + $0x1c] sm:$0xff] %v214_v6  ;;  %v194_v21 = vld [vmem:[%s1402_s25] sm:$0xff]  ;;  %v210_v22 = vld [vmem:[%s1402_s25 + $0x4c] sm:$0xff]  ;;  %v226_v23 = vld [vmem:[%s1402_s25 + $0x98] sm:$0xff] }
  0x39   : >> { %217 = vst [vmem:[%s1398_s24 + $0x24] sm:$0xff] %v216_v7  ;;  %v242_v24 = vld [vmem:[%s1402_s25 + $0xe4] sm:$0xff]  ;;  %v244_v25 = vld [vmem:[%s1402_s25 + $0xec] sm:$0xff]  ;;  %v246_v26 = vld [vmem:[%s1402_s25 + $0xf4] sm:$0xff] }
  0x3a   : >> { %219 = vst [vmem:[%s1398_s24 + $0x2c] sm:$0xff] %v218_v8  ;;  %v248_v27 = vld [vmem:[%s1402_s25 + $0xfc] sm:$0xff]  ;;  %v250_v28 = vld [vmem:[%s1402_s25 + $0x104] sm:$0xff]  ;;  %v252_v29 = vld [vmem:[%s1402_s25 + $0x10c] sm:$0xff] }
  0x3b   : >> { %221 = vst [vmem:[%s1398_s24 + $0x34] sm:$0xff] %v220_v9  ;;  %v254_v30 = vld [vmem:[%s1402_s25 + $0x114] sm:$0xff]  ;;  %v256_v31 = vld [vmem:[%s1402_s25 + $0x11c] sm:$0xff]  ;;  %s2099_s25 = smov %s1604_s5 }
  0x3c   : >> { %223 = vst [vmem:[%s1398_s24 + $0x3c] sm:$0xff] %v222_v10 }
  0x3d   : >> { %225 = vst [vmem:[%s1398_s24 + $0x44] sm:$0xff] %v224_v11 }
  0x3e   : >> { %197 = vst [vmem:[%s1398_s24 + $0x8] sm:$0xff] %v196_v12 }
  0x3f   : >> { %213 = vst [vmem:[%s1398_s24 + $0x14] sm:$0xff] %v212_v13 }
  0x40   : >> { %229 = vst [vmem:[%s1398_s24 + $0x20] sm:$0xff] %v228_v14 }
  0x41   : >> { %231 = vst [vmem:[%s1398_s24 + $0x28] sm:$0xff] %v230_v15 }
  0x42   : >> { %233 = vst [vmem:[%s1398_s24 + $0x30] sm:$0xff] %v232_v16 }
  0x43   : >> { %235 = vst [vmem:[%s1398_s24 + $0x38] sm:$0xff] %v234_v17 }
  0x44   : >> { %237 = vst [vmem:[%s1398_s24 + $0x40] sm:$0xff] %v236_v18 }
  0x45   : >> { %239 = vst [vmem:[%s1398_s24 + $0x48] sm:$0xff] %v238_v19 }
  0x46   : >> { %241 = vst [vmem:[%s1398_s24 + $0x50] sm:$0xff] %v240_v20 }
  0x47   : >> { %195 = vst [vmem:[%s1398_s24] sm:$0xff] %v194_v21 }
  0x48   : >> { %211 = vst [vmem:[%s1398_s24 + $0xc] sm:$0xff] %v210_v22 }
  0x49   : >> { %227 = vst [vmem:[%s1398_s24 + $0x18] sm:$0xff] %v226_v23 }
  0x4a   : >> { %243 = vst [vmem:[%s1398_s24 + $0x24] sm:$0xff] %v242_v24 }
  0x4b   : >> { %245 = vst [vmem:[%s1398_s24 + $0x2c] sm:$0xff] %v244_v25 }
  0x4c   : >> { %247 = vst [vmem:[%s1398_s24 + $0x34] sm:$0xff] %v246_v26 }
  0x4d   : >> { %249 = vst [vmem:[%s1398_s24 + $0x3c] sm:$0xff] %v248_v27  ;;  %190 = sbr.rel (!%p187_p1) target bundleno = 49 (0x31), region = 200 }
  0x4e   : >> { %251 = vst [vmem:[%s1398_s24 + $0x44] sm:$0xff] %v250_v28 }
  0x4f   : >> { %253 = vst [vmem:[%s1398_s24 + $0x4c] sm:$0xff] %v252_v29 }
  0x50   : >> { %255 = vst [vmem:[%s1398_s24 + $0x54] sm:$0xff] %v254_v30 }
  0x51   : >> { %257 = vst [vmem:[%s1398_s24 + $0x5c] sm:$0xff] %v256_v31  ;;  %s2098_s24 = smov %s1607_s6 }
  0x52 PF: > { %s1669_s7 = sand.u32 7, %s183_s21   ;;  %s1113_s8 = sshll.u32 %s1557_s23, 6 }
  0x53   : > { %s1673_s10 = scalar_lea.vmem %s1542_s9, %s1113_s8   ;;  %s1676_s4 = scalar_lea.vmem %s1546_s19, %s1113_s8 [#allocation2]  }
  0x54   : > { %p1087_p2 = scmp.le.s32.totalorder %s1669_s7, 0 }
  0x55   : > { %s2101_s29 = smov (!%p1087_p2), %s1676_s4  ;;  %s2102_s24 = smov (!%p1087_p2), %s1673_s10 }
  0x56   : > { %1008 = sbr.rel (%p1087_p2) target bundleno = 99 (0x63), region = 205  ;;  %s1685_s25 = smov (!%p1087_p2), 0  }
  0x57   : > { %s1424_s26 = smov (!%p1087_p2), 0  }
  0x5b LB: >> { %v281_v32 = vld [vmem:[%s1418_s24] sm:$0xff]  ;;  %v283_v33 = vld [vmem:[%s1418_s24 + $0x4c] sm:$0xff]  ;;  %v285_v34 = vld [vmem:[%s1418_s24 + $0x98] sm:$0xff]  ;;  %s289_s21 = sadd.s32 1, %s1422_s25  ;;  %s275_s26 = sadd.s32 1, %s1426_s26   ;;  %s1426_s26 = sphi %s1424_s26, %s275_s26   ;;  %s1422_s25 = sphi %s1685_s25, %s2103_s25   ;;  %s1418_s24 = sphi %s2102_s24, %s294_s24   ;;  %s1414_s29 = sphi %s2101_s29, %s295_s29  }
  0x5c   : >> { %282 = vst [vmem:[%s1414_s29] sm:$0xff] %v281_v32  ;;  %v287_v35 = vld [vmem:[%s1418_s24 + $0xe4] sm:$0xff]  ;;  %p290_p3 = scmp.ge.s32.totalorder %s289_s21, %s1669_s7  ;;  %p274_p4 = scmp.ge.s32.totalorder %s275_s26, %s1669_s7 }
  0x5d   : >> { %284 = vst [vmem:[%s1414_s29 + $0xc] sm:$0xff] %v283_v33 }
  0x5e   : >> { %286 = vst [vmem:[%s1414_s29 + $0x18] sm:$0xff] %v285_v34  ;;  %s2122_s21 = smov (%p290_p3, %s289_s21), 0  ;;  %277 = sbr.rel (!%p274_p4) target bundleno = 91 (0x5b), region = 211 }
  0x5f   : >> { %288 = vst [vmem:[%s1414_s29 + $0x24] sm:$0xff] %v287_v35  ;;  %s1088_s23 = sshll.u32 %s2122_s21, 3  ;;  %s2103_s25 = smov %s2122_s21 }
  0x60   : >> { %s294_s24 = scalar_lea.vmem %s1673_s10, %s1088_s23   ;;  %s295_s29 = scalar_lea.vmem %s1676_s4, %s1088_s23 [#allocation2]  }
  0x63 PF: > { %298 = sbr.rel (%p179_p11) target bundleno = 167 (0xa7), region = 65  ;;  %s300_s30 = ssub.s32 (!%p179_p11), %s1544_s11, %s1550_s20 }
  0x64   : > { %s304_s5 = sshrl.u32 (!%p179_p11), %s1544_s11, 3  ;;  %s1706_s6 = scalar_lea.vmem (!%p179_p11), %s1542_s9, %s300_s30 }
  0x65   : > { %s1709_s8 = scalar_lea.vmem (!%p179_p11), %s1546_s19, %s300_s30 [#allocation2]  ;;  %s1713_s25 = sshrl.u32 (!%p179_p11), %s304_s5, 3 }
  0x66   : > { %p1090_p5 = scmp.le.s32.totalorder (!%p179_p11), %s1713_s25, 0 }
  0x68   : > { %1022 = sbr.rel (%p1090_p5) target bundleno = 142 (0x8e), region = 216  ;;  %s2104_s7 = smov (!%p1090_p5), %s1546_s19 }
  0x69   : > { %s2105_s10 = smov (!%p1090_p5), %s1542_s9  ;;  %s1722_s4 = smov (!%p1090_p5), 0  }
  0x6a   : > { %s1724_s29 = smov (!%p1090_p5), 0  }
  0x6d LB: >> { %v321_v36 = vld [vmem:[%s1434_s10 + $0x18] sm:$0xff]  ;;  %v323_v37 = vld [vmem:[%s1434_s10 + $0x20] sm:$0xff]  ;;  %v325_v38 = vld [vmem:[%s1434_s10 + $0x28] sm:$0xff]  ;;  %s379_s24 = sadd.s32 1, %s1438_s4  ;;  %s309_s29 = sadd.s32 1, %s1442_s29   ;;  %s1442_s29 = sphi %s1724_s29, %s309_s29   ;;  %s1438_s4 = sphi %s1722_s4, %s2108_s4   ;;  %s1434_s10 = sphi %s2105_s10, %s2107_s10   ;;  %s1430_s7 = sphi %s2104_s7, %s2106_s7  }
  0x6e   : >> { %322 = vst [vmem:[%s1430_s7 + $0x18] sm:$0xff] %v321_v36  ;;  %v327_v39 = vld [vmem:[%s1434_s10 + $0x30] sm:$0xff]  ;;  %v329_v40 = vld [vmem:[%s1434_s10 + $0x38] sm:$0xff]  ;;  %p380_p7 = scmp.ge.s32.totalorder %s379_s24, %s1713_s25  ;;  %v337_v43 = vld [vmem:[%s1434_s10 + $0x64] sm:$0xff]  ;;  %p308_p8 = scmp.ge.s32.totalorder %s309_s29, %s1713_s25 }
  0x6f   : >> { %324 = vst [vmem:[%s1430_s7 + $0x20] sm:$0xff] %v323_v37  ;;  %v319_v41 = vld [vmem:[%s1434_s10 + $0x10] sm:$0xff]  ;;  %v335_v42 = vld [vmem:[%s1434_s10 + $0x5c] sm:$0xff]  ;;  %v345_v47 = vld [vmem:[%s1434_s10 + $0x84] sm:$0xff] }
  0x70   : >> { %326 = vst [vmem:[%s1430_s7 + $0x28] sm:$0xff] %v325_v38  ;;  %s2124_s24 = smov (%p380_p7, %s379_s24), 0  ;;  %v339_v44 = vld [vmem:[%s1434_s10 + $0x6c] sm:$0xff]  ;;  %v341_v45 = vld [vmem:[%s1434_s10 + $0x74] sm:$0xff]  ;;  %v343_v46 = vld [vmem:[%s1434_s10 + $0x7c] sm:$0xff] }
  0x71   : >> { %328 = vst [vmem:[%s1430_s7 + $0x30] sm:$0xff] %v327_v39  ;;  %s1091_s26 = sshll.u32 %s2124_s24, 6  ;;  %v317_v48 = vld [vmem:[%s1434_s10 + $0x8] sm:$0xff]  ;;  %v333_v49 = vld [vmem:[%s1434_s10 + $0x54] sm:$0xff]  ;;  %v349_v50 = vld [vmem:[%s1434_s10 + $0xa0] sm:$0xff]  ;;  %s2108_s4 = smov %s2124_s24 }
  0x72   : >> { %330 = vst [vmem:[%s1430_s7 + $0x38] sm:$0xff] %v329_v40  ;;  %s1760_s21 = scalar_lea.vmem %s1542_s9, %s1091_s26   ;;  %s1763_s23 = scalar_lea.vmem %s1546_s19, %s1091_s26 [#allocation2]   ;;  %v351_v51 = vld [vmem:[%s1434_s10 + $0xa8] sm:$0xff]  ;;  %v353_v52 = vld [vmem:[%s1434_s10 + $0xb0] sm:$0xff]  ;;  %v355_v53 = vld [vmem:[%s1434_s10 + $0xb8] sm:$0xff] }
  0x73   : >> { %320 = vst [vmem:[%s1430_s7 + $0x10] sm:$0xff] %v319_v41  ;;  %v357_v54 = vld [vmem:[%s1434_s10 + $0xc0] sm:$0xff]  ;;  %v359_v55 = vld [vmem:[%s1434_s10 + $0xc8] sm:$0xff]  ;;  %v361_v56 = vld [vmem:[%s1434_s10 + $0xd0] sm:$0xff] }
  0x74   : >> { %336 = vst [vmem:[%s1430_s7 + $0x1c] sm:$0xff] %v335_v42  ;;  %v315_v57 = vld [vmem:[%s1434_s10] sm:$0xff]  ;;  %v331_v58 = vld [vmem:[%s1434_s10 + $0x4c] sm:$0xff]  ;;  %v347_v59 = vld [vmem:[%s1434_s10 + $0x98] sm:$0xff] }
  0x75   : >> { %338 = vst [vmem:[%s1430_s7 + $0x24] sm:$0xff] %v337_v43  ;;  %v363_v60 = vld [vmem:[%s1434_s10 + $0xe4] sm:$0xff]  ;;  %v365_v61 = vld [vmem:[%s1434_s10 + $0xec] sm:$0xff]  ;;  %v367_v62 = vld [vmem:[%s1434_s10 + $0xf4] sm:$0xff] }
  0x76   : >> { %340 = vst [vmem:[%s1430_s7 + $0x2c] sm:$0xff] %v339_v44  ;;  %v369_v63 = vld [vmem:[%s1434_s10 + $0xfc] sm:$0xff]  ;;  %v371_v0 = vld [vmem:[%s1434_s10 + $0x104] sm:$0xff]  ;;  %v373_v1 = vld [vmem:[%s1434_s10 + $0x10c] sm:$0xff] }
  0x77   : >> { %342 = vst [vmem:[%s1430_s7 + $0x34] sm:$0xff] %v341_v45  ;;  %v375_v2 = vld [vmem:[%s1434_s10 + $0x114] sm:$0xff]  ;;  %v377_v3 = vld [vmem:[%s1434_s10 + $0x11c] sm:$0xff]  ;;  %s2107_s10 = smov %s1760_s21 }
  0x78   : >> { %344 = vst [vmem:[%s1430_s7 + $0x3c] sm:$0xff] %v343_v46 }
  0x79   : >> { %346 = vst [vmem:[%s1430_s7 + $0x44] sm:$0xff] %v345_v47 }
  0x7a   : >> { %318 = vst [vmem:[%s1430_s7 + $0x8] sm:$0xff] %v317_v48 }
  0x7b   : >> { %334 = vst [vmem:[%s1430_s7 + $0x14] sm:$0xff] %v333_v49 }
  0x7c   : >> { %350 = vst [vmem:[%s1430_s7 + $0x20] sm:$0xff] %v349_v50 }
  0x7d   : >> { %352 = vst [vmem:[%s1430_s7 + $0x28] sm:$0xff] %v351_v51 }
  0x7e   : >> { %354 = vst [vmem:[%s1430_s7 + $0x30] sm:$0xff] %v353_v52 }
  0x7f   : >> { %356 = vst [vmem:[%s1430_s7 + $0x38] sm:$0xff] %v355_v53 }
  0x80   : >> { %358 = vst [vmem:[%s1430_s7 + $0x40] sm:$0xff] %v357_v54 }
  0x81   : >> { %360 = vst [vmem:[%s1430_s7 + $0x48] sm:$0xff] %v359_v55 }
  0x82   : >> { %362 = vst [vmem:[%s1430_s7 + $0x50] sm:$0xff] %v361_v56 }
  0x83   : >> { %316 = vst [vmem:[%s1430_s7] sm:$0xff] %v315_v57 }
  0x84   : >> { %332 = vst [vmem:[%s1430_s7 + $0xc] sm:$0xff] %v331_v58 }
  0x85   : >> { %348 = vst [vmem:[%s1430_s7 + $0x18] sm:$0xff] %v347_v59 }
  0x86   : >> { %364 = vst [vmem:[%s1430_s7 + $0x24] sm:$0xff] %v363_v60 }
  0x87   : >> { %366 = vst [vmem:[%s1430_s7 + $0x2c] sm:$0xff] %v365_v61 }
  0x88   : >> { %368 = vst [vmem:[%s1430_s7 + $0x34] sm:$0xff] %v367_v62 }
  0x89   : >> { %370 = vst [vmem:[%s1430_s7 + $0x3c] sm:$0xff] %v369_v63  ;;  %311 = sbr.rel (!%p308_p8) target bundleno = 109 (0x6d), region = 222 }
  0x8a   : >> { %372 = vst [vmem:[%s1430_s7 + $0x44] sm:$0xff] %v371_v0 }
  0x8b   : >> { %374 = vst [vmem:[%s1430_s7 + $0x4c] sm:$0xff] %v373_v1 }
  0x8c   : >> { %376 = vst [vmem:[%s1430_s7 + $0x54] sm:$0xff] %v375_v2 }
  0x8d   : >> { %378 = vst [vmem:[%s1430_s7 + $0x5c] sm:$0xff] %v377_v3  ;;  %s2106_s7 = smov %s1763_s23 }
  0x8e PF: > { %s1825_s30 = sand.u32 7, %s304_s5   ;;  %s1115_s26 = sshll.u32 %s1713_s25, 6 }
  0x8f   : > { %s1829_s17 = scalar_lea.vmem %s1542_s9, %s1115_s26   ;;  %s1832_s0 = scalar_lea.vmem %s1546_s19, %s1115_s26 [#allocation2]  }
  0x90   : > { %p1096_p9 = scmp.le.s32.totalorder %s1825_s30, 0 }
  0x91   : > { %s2109_s29 = smov (!%p1096_p9), %s1832_s0  ;;  %s2110_s7 = smov (!%p1096_p9), %s1829_s17 }
  0x92   : > { %1036 = sbr.rel (%p1096_p9) target bundleno = 159 (0x9f), region = 227  ;;  %s1452_s10 = smov (!%p1096_p9), 0  }
  0x93   : > { %s1456_s4 = smov (!%p1096_p9), 0  }
  0x97 LB: >> { %v402_v4 = vld [vmem:[%s1450_s7] sm:$0xff]  ;;  %v404_v5 = vld [vmem:[%s1450_s7 + $0x4c] sm:$0xff]  ;;  %v406_v6 = vld [vmem:[%s1450_s7 + $0x98] sm:$0xff]  ;;  %s410_s5 = sadd.s32 1, %s1454_s10  ;;  %s396_s4 = sadd.s32 1, %s1458_s4   ;;  %s1458_s4 = sphi %s1456_s4, %s396_s4   ;;  %s1454_s10 = sphi %s1452_s10, %s1453_s10   ;;  %s1450_s7 = sphi %s2110_s7, %s415_s7   ;;  %s1446_s29 = sphi %s2109_s29, %s416_s29  }
  0x98   : >> { %403 = vst [vmem:[%s1446_s29] sm:$0xff] %v402_v4  ;;  %v408_v7 = vld [vmem:[%s1450_s7 + $0xe4] sm:$0xff]  ;;  %p411_p10 = scmp.ge.s32.totalorder %s410_s5, %s1825_s30  ;;  %p395_p11 = scmp.ge.s32.totalorder %s396_s4, %s1825_s30 }
  0x99   : >> { %405 = vst [vmem:[%s1446_s29 + $0xc] sm:$0xff] %v404_v5 }
  0x9a   : >> { %407 = vst [vmem:[%s1446_s29 + $0x18] sm:$0xff] %v406_v6  ;;  %s2126_s5 = smov (%p411_p10, %s410_s5), 0  ;;  %398 = sbr.rel (!%p395_p11) target bundleno = 151 (0x97), region = 233 }
  0x9b   : >> { %409 = vst [vmem:[%s1446_s29 + $0x24] sm:$0xff] %v408_v7  ;;  %s1097_s25 = sshll.u32 %s2126_s5, 3  ;;  %s1453_s10 = smov %s2126_s5  }
  0x9c   : >> { %s415_s7 = scalar_lea.vmem %s1829_s17, %s1097_s25   ;;  %s416_s29 = scalar_lea.vmem %s1832_s0, %s1097_s25 [#allocation2]  }
  0x9f PF: > { %s1460_s24 = smov 1  }
  0xa0   : > { %s417_s21 = sshll.u32 %s1460_s24, %s1550_s20 }
  0xa1   : > { %s1099_s23 = sadd.s32 4294967295, %s417_s21 }
  0xa2   : > { %v427_v8 = vld [vmem:[%s1706_s6] sm:%s1099_s23]  ;;  %v429_v9 = vld [vmem:[%s1706_s6 + $0x4c] sm:%s1099_s23] }
  0xa3   : > { %428 = vst [vmem:[%s1709_s8] sm:%s1099_s23] %v427_v8  ;;  %v431_v10 = vld [vmem:[%s1706_s6 + $0x98] sm:%s1099_s23] }
  0xa4   : > { %430 = vst [vmem:[%s1709_s8 + $0xc] sm:%s1099_s23] %v429_v9  ;;  %v433_v11 = vld [vmem:[%s1706_s6 + $0xe4] sm:%s1099_s23] }
  0xa5   : > { %432 = vst [vmem:[%s1709_s8 + $0x18] sm:%s1099_s23] %v431_v10 }
  0xa6   : > { %434 = vst [vmem:[%s1709_s8 + $0x24] sm:%s1099_s23] %v433_v11 }
  0xa7 PF: > { %p1100_p12 = scmp.ge.u32.totalorder %s1544_s11, 8 }
  0xa8   : > { %s1461_s0 = smov (!%p1100_p12), 1  }
  0xa9   : > { %159 = sbr.rel (%p1100_p12) target bundleno = 179 (0xb3), region = 36  ;;  %s160_s17 = sshll.u32 (!%p1100_p12), %s1461_s0, %s1544_s11 }
  0xaa   : > { %s1101_s20 = sadd.s32 (!%p1100_p12), 4294967295, %s160_s17 }
  0xae   : > { %v170_v12 = vld [vmem:[%s1542_s9] sm:%s1101_s20]  ;;  %v172_v13 = vld [vmem:[%s1542_s9 + $0x4c] sm:%s1101_s20] }
  0xaf   : > { %171 = vst [vmem:[%s1546_s19] sm:%s1101_s20] %v170_v12  ;;  %v174_v14 = vld [vmem:[%s1542_s9 + $0x98] sm:%s1101_s20] }
  0xb0   : > { %173 = vst [vmem:[%s1546_s19 + $0xc] sm:%s1101_s20] %v172_v13  ;;  %v176_v15 = vld [vmem:[%s1542_s9 + $0xe4] sm:%s1101_s20] }
  0xb1   : > { %175 = vst [vmem:[%s1546_s19 + $0x18] sm:%s1101_s20] %v174_v14 }
  0xb2   : > { %177 = vst [vmem:[%s1546_s19 + $0x24] sm:%s1101_s20] %v176_v15 }
  0xb3 PF: > { %438 = sbr.rel (!%p1528_p6) target bundleno = 188 (0xbc), region = 90  ;;  %s440_s6 = sand.u32 (%p1528_p6), 1, %s1382_s13  }
  0xb4   : > { %s958_s8 = smul.u32 (%p1528_p6), 12, %s1394_s16  ;;  %s1102_s11 = sshll.u32 (%p1528_p6), %s440_s6, 4 }
  0xb5   : > { %s442_s9 = scalar_lea.vmem (%p1528_p6), [#allocation3], %s1102_s11 }
  0xb6   : > { %s959_s29 = scalar_lea.vmem (%p1528_p6), %s2090_s1, %s958_s8 }
  0xb7   : > { %v1103_v16 = vld [vmem:[%s959_s29 + $0xc] sm:$0xf] (%p1528_p6)  ;;  %v1104_v17 = vld [vmem:[%s959_s29 + $0x58] sm:$0xf] (%p1528_p6)  ;;  %v1105_v18 = vld [vmem:[%s959_s29 + $0xa4] sm:$0xf] (%p1528_p6) }
  0xb8   : > { %464 = vst [vmem:[%s442_s9] sm:$0xf] %v1103_v16  ;;  %v1106_v19 = vld [vmem:[%s959_s29 + $0xf0] sm:$0xf] }
  0xb9   : > { %466 = vst [vmem:[%s442_s9 + $0x4] sm:$0xf] %v1104_v17 }
  0xba   : > { %468 = vst [vmem:[%s442_s9 + $0x8] sm:$0xf] %v1105_v18 }
  0xbb   : > { %470 = vst [vmem:[%s442_s9 + $0xc] sm:$0xf] %v1106_v19 }
  0xbc PF: > { %p1107_p6 = scmp.ge.s32.totalorder %s1394_s16, 1  ;;  %p501_p13 = scmp.lt.s32.totalorder %s1394_s16, 7 }
  0xbe   : > { %p502_p0 = pnand %p1107_p6, %p501_p13 }
  0xbf   : > { %s515_s27 = sand.u32 (!%p502_p0), 1, %s1378_s12   ;;  %s508_s7 = sand.u32 (!%p502_p0), 1, %s1386_s14  }
  0xc0   : > { %505 = sbr.rel (%p502_p0) target bundleno = 576 (0x240), region = 131  ;;  %s1108_s19 = sshll.u32 (!%p502_p0), %s515_s27, 4 }
  0xc1   : > { %s1881_s10 = scalar_lea.vmem (!%p502_p0), [#allocation3], %s1108_s19  ;;  %s1118_s4 = smul.u32 (!%p502_p0), 48, %s508_s7 }
  0xc2   : > { %s1462_s5 = smov (!%p502_p0), 95   ;;  %s1463_s25 = smov (!%p502_p0), 94  }
  0xc3   : > { %s1886_s24 = scalar_lea.vmem (!%p502_p0), [#allocation2], %s1118_s4  ;;  %s1464_s12 = smov (!%p502_p0), 127  }
  0xc4   : > { %s2111_s23 = sadd.s32 (!%p502_p0), 4294967295, %s1394_s16  }
  0xc5   : > { %v566_v20 = vld [vmem:[%s1881_s10 + $0xc] sm:$0xf]  ;;  %v561_v25 = vld [vmem:[%s1886_s24 + $0x24] sm:$0xff]  ;;  %v560_v32 = vld [vmem:[%s1886_s24 + $0x20] sm:$0xf]  ;;  %vm624_vm0 = vcmask 777216  }
  0xc6   : > { %738 = vrot.lane.b32.xlu0 %v566_v20, %s1462_s5  ;;  %v720_v21 = vrot.slane %v566_v20, 4  ;;  %v562_v22 = vld [vmem:[%s1886_s24 + $0x2c] sm:$0xf]  ;;  %v584_v27 = vunpack.c.l.b16 %v561_v25  ;;  %v585_v28 = vunpack.c.h.b16 %v561_v25  ;;  %v583_v33 = vunpack.c.l.b16 %v560_v32  ;;  %v565_v36 = vld [vmem:[%s1881_s10 + $0x8] sm:$0xf]  ;;  %v559_v39 = vld [vmem:[%s1886_s24 + $0x18] sm:$0xff] }
  0xc7   : > { %v586_v23 = vunpack.c.l.b16 %v562_v22  ;;  %v682_v38 = vrot.slane %v565_v36, 4  ;;  %v581_v40 = vunpack.c.l.b16 %v559_v39  ;;  %v582_v41 = vunpack.c.h.b16 %v559_v39  ;;  %v558_v45 = vld [vmem:[%s1886_s24 + $0x14] sm:$0xf]  ;;  %v564_v49 = vld [vmem:[%s1881_s10 + $0x4] sm:$0xf]  ;;  %v557_v52 = vld [vmem:[%s1886_s24 + $0xc] sm:$0xff] }
  0xc8   : > { %749 = vrot.lane.b32.xlu1 %v720_v21, %s1463_s25  ;;  %727 = vrot.lane.b32.xlu2 %v720_v21, %s1464_s12  ;;  %v1898_v29 = vpack.c.b16 %v584_v27, %v584_v27  ;;  %v1900_v30 = vpack.c.b16 %v585_v28, %v585_v28  ;;  %v1910_v35 = vpack.c.b16 %v583_v33, %v583_v33  ;;  %v580_v46 = vunpack.c.l.b16 %v558_v45  ;;  %v556_v58 = vld [vmem:[%s1886_s24 + $0x8] sm:$0xf]  ;;  %v563_v62 = vld [vmem:[%s1881_s10] sm:$0xf]  ;;  %s549_s0 = smul.u32 3, %s2111_s23 }
  0xc9   : > { %v1890_v24 = vpack.c.b16 %v586_v23, %v586_v23  ;;  %v1925_v42 = vpack.c.b16 %v581_v40, %v581_v40  ;;  %v1927_v43 = vpack.c.b16 %v582_v41, %v582_v41  ;;  %v644_v51 = vrot.slane %v564_v49, 4  ;;  %v555_v3 = vld [vmem:[%s1886_s24] sm:$0xff] }
  0xca   : > { %v717_v31 = vrot.slane %v1898_v29, 4  ;;  %v718_v34 = vrot.slane %v1900_v30, 4  ;;  %v681_v37 = vrot.slane %v1910_v35, 4  ;;  %v1937_v48 = vpack.c.b16 %v580_v46, %v580_v46  ;;  %p550_p1 = scmp.lt.s32.totalorder %s549_s0, 17 }
  0xcb   : > { %v719_v26 = vrot.slane %v1890_v24, 4  ;;  %v679_v44 = vrot.slane %v1925_v42, 4  ;;  %v680_v47 = vrot.slane %v1927_v43, 4  ;;  %v578_v53 = vunpack.c.l.b16 %v557_v52 }
  0xcc   : > { %v643_v50 = vrot.slane %v1937_v48, 4  ;;  %v579_v54 = vunpack.c.h.b16 %v557_v52  ;;  %v577_v59 = vunpack.c.l.b16 %v556_v58  ;;  %v603_v1 = vrot.slane %v563_v62, 4  ;;  %s2128_s0 = smov (!%p550_p1, %s549_s0), 17 }
  0xcd   : > { %v1952_v55 = vpack.c.b16 %v578_v53, %v578_v53  ;;  %v575_v4 = vunpack.c.l.b16 %v555_v3  ;;  %v576_v5 = vunpack.c.h.b16 %v555_v3  ;;  %vm636_vm1 = vcmask 769024   ;;  %s1109_s17 = sshll.u32 %s2128_s0, 2 }
  0xce   : > { %736 = vrot.lane.b32.xlu0 %v1890_v24, %s1462_s5  ;;  %v1954_v56 = vpack.c.b16 %v579_v54, %v579_v54  ;;  %v1964_v61 = vpack.c.b16 %v577_v59, %v577_v59  ;;  %vm612_vm2 = vcmask 1039360   ;;  %vm754_vm3 = vcmask 1043456   ;;  %s553_s8 = scalar_lea.vmem %s2092_s3, %s1109_s17 }
  0xcf   : > { %v641_v57 = vrot.slane %v1952_v55, 4  ;;  %v1979_v6 = vpack.c.b16 %v575_v4, %v575_v4  ;;  %v1981_v8 = vpack.c.b16 %v576_v5, %v576_v5 }
  0xd0   : > { %747 = vrot.lane.b32.xlu1 %v719_v26, %s1463_s25  ;;  %725 = vrot.lane.b32.xlu2 %v719_v26, %s1464_s12  ;;  %v642_v60 = vrot.slane %v1954_v56, 4  ;;  %v602_v63 = vrot.slane %v1964_v61, 4 }
  0xd1   : > { %v600_v9 = vrot.slane %v1979_v6, 4  ;;  %v601_v12 = vrot.slane %v1981_v8, 4 }
  0xd6   : > { %732 = vrot.lane.b32.xlu0 %v1898_v29, %s1462_s5 }
  0xd8   : > { %734 = vrot.lane.b32.xlu1 %v1900_v30, %s1462_s5  ;;  %743 = vrot.lane.b32.xlu2 %v717_v31, %s1463_s25 }
  0xde   : > { %745 = vrot.lane.b32.xlu0 %v718_v34, %s1463_s25 }
  0xe0   : > { %698 = vrot.lane.b32.xlu1 %v1910_v35, %s1462_s5  ;;  %700 = vrot.lane.b32.xlu2 %v565_v36, %s1462_s5 }
  0xe6   : > { %709 = vrot.lane.b32.xlu0 %v681_v37, %s1463_s25 }
  0xe8   : > { %711 = vrot.lane.b32.xlu1 %v682_v38, %s1463_s25  ;;  %721 = vrot.lane.b32.xlu2 %v717_v31, %s1464_s12 }
  0xee   : > { %723 = vrot.lane.b32.xlu0 %v718_v34, %s1464_s12 }
  0xf0   : > { %687 = vrot.lane.b32.xlu1 %v681_v37, %s1464_s12  ;;  %689 = vrot.lane.b32.xlu2 %v682_v38, %s1464_s12 }
  0xf6   : > { %694 = vrot.lane.b32.xlu0 %v1925_v42, %s1462_s5 }
  0xf8   : > { %696 = vrot.lane.b32.xlu1 %v1927_v43, %s1462_s5  ;;  %705 = vrot.lane.b32.xlu2 %v679_v44, %s1463_s25 }
  0xfe   : > { %707 = vrot.lane.b32.xlu0 %v680_v47, %s1463_s25 }
 0x100   : > { %660 = vrot.lane.b32.xlu1 %v1937_v48, %s1462_s5  ;;  %662 = vrot.lane.b32.xlu2 %v564_v49, %s1462_s5 }
 0x106   : > { %671 = vrot.lane.b32.xlu0 %v643_v50, %s1463_s25 }
 0x108   : > { %673 = vrot.lane.b32.xlu1 %v644_v51, %s1463_s25  ;;  %683 = vrot.lane.b32.xlu2 %v679_v44, %s1464_s12 }
 0x10e   : > { %685 = vrot.lane.b32.xlu0 %v680_v47, %s1464_s12 }
 0x110   : > { %649 = vrot.lane.b32.xlu1 %v643_v50, %s1464_s12  ;;  %651 = vrot.lane.b32.xlu2 %v644_v51, %s1464_s12 }
 0x116   : > { %656 = vrot.lane.b32.xlu0 %v1952_v55, %s1462_s5 }
 0x118   : > { %658 = vrot.lane.b32.xlu1 %v1954_v56, %s1462_s5  ;;  %667 = vrot.lane.b32.xlu2 %v641_v57, %s1463_s25 }
 0x11e   : > { %669 = vrot.lane.b32.xlu0 %v642_v60, %s1463_s25 }
 0x120   : > { %620 = vrot.lane.b32.xlu1 %v1964_v61, %s1462_s5  ;;  %622 = vrot.lane.b32.xlu2 %v563_v62, %s1462_s5 }
 0x122   : > { %v728_v0 = vpop.permute.xlu2 %727 }
 0x126   : > { %632 = vrot.lane.b32.xlu0 %v602_v63, %s1463_s25 }
 0x128   : > { %634 = vrot.lane.b32.xlu1 %v603_v1, %s1463_s25  ;;  %645 = vrot.lane.b32.xlu2 %v641_v57, %s1464_s12 }
 0x12a   : > { %v726_v2 = vpop.permute.xlu2 %725 }
 0x12b   : > { %v731_v20 = vsel %vm612_vm2, %v726_v2, %v728_v0 }
 0x12c   : > { %v837_v22 = vsel %vm754_vm3, %v1890_v24, %v731_v20 }
 0x12e   : > { %647 = vrot.lane.b32.xlu0 %v642_v60, %s1464_s12 }
 0x130   : > { %608 = vrot.lane.b32.xlu1 %v602_v63, %s1464_s12  ;;  %610 = vrot.lane.b32.xlu2 %v603_v1, %s1464_s12 }
 0x132   : > { %v744_v7 = vpop.permute.xlu2 %743 }
 0x136   : > { %616 = vrot.lane.b32.xlu0 %v1979_v6, %s1462_s5 }
 0x138   : > { %v739_v10 = vpop.permute.xlu0 %738  ;;  %618 = vrot.lane.b32.xlu1 %v1981_v8, %s1462_s5  ;;  %628 = vrot.lane.b32.xlu2 %v600_v9, %s1463_s25 }
 0x13a   : > { %v750_v11 = vpop.permute.xlu1 %749  ;;  %v701_v13 = vpop.permute.xlu2 %700 }
 0x13e   : > { %630 = vrot.lane.b32.xlu0 %v601_v12, %s1463_s25 }
 0x140   : > { %v737_v14 = vpop.permute.xlu0 %736  ;;  %604 = vrot.lane.b32.xlu1 %v600_v9, %s1464_s12  ;;  %606 = vrot.lane.b32.xlu2 %v601_v12, %s1464_s12 }
 0x141   : > { %v742_v17 = vsel %vm624_vm0, %v737_v14, %v739_v10 }
 0x142   : > { %v748_v15 = vpop.permute.xlu1 %747  ;;  %v722_v16 = vpop.permute.xlu2 %721 }
 0x143   : > { %v753_v18 = vsel %vm636_vm1, %v748_v15, %v750_v11 }
 0x144   : > { %v849_v19 = vsel %vm754_vm3, %v742_v17, %v753_v18 }
 0x145   : > { %878 = vmatpush.bf16.msra.mxu2 %v849_v19 }
 0x148   : > { %v733_v21 = vpop.permute.xlu0 %732 }
 0x149   : > { %879 = vmatpush.bf16.msra.mxu2 %v837_v22 }
 0x14a   : > { %v735_v23 = vpop.permute.xlu1 %734  ;;  %v690_v25 = vpop.permute.xlu2 %689 }
 0x14b   : > { %v740_v27 = vsel %vm624_vm0, %v733_v21, %v735_v23  ;;  %v741_v28 = vsel %vm624_vm0, %v735_v23, %v737_v14 }
 0x150   : > { %v746_v26 = vpop.permute.xlu0 %745 }
 0x151   : > { %v751_v31 = vsel %vm636_vm1, %v744_v7, %v746_v26  ;;  %v752_v32 = vsel %vm636_vm1, %v746_v26, %v748_v15 }
 0x152   : > { %v699_v33 = vpop.permute.xlu1 %698  ;;  %v841_v34 = vsel %vm754_vm3, %v740_v27, %v751_v31  ;;  %v845_v36 = vsel %vm754_vm3, %v741_v28, %v752_v32  ;;  %v706_v24 = vpop.permute.xlu2 %705 }
 0x153   : > { %852 = vmatpush.bf16.msra.mxu0 %v841_v34  ;;  %865 = vmatpush.bf16.msra.mxu1 %v845_v36  ;;  %v704_v39 = vsel %vm624_vm0, %v699_v33, %v701_v13 }
 0x158   : > { %v710_v37 = vpop.permute.xlu0 %709 }
 0x15a   : > { %v712_v38 = vpop.permute.xlu1 %711  ;;  %v663_v45 = vpop.permute.xlu2 %662 }
 0x15b   : > { %v715_v40 = vsel %vm636_vm1, %v710_v37, %v712_v38 }
 0x15c   : > { %v825_v41 = vsel %vm754_vm3, %v704_v39, %v715_v40 }
 0x15d   : > { %880 = vmatpush.bf16.msra.mxu2 %v825_v41 }
 0x160   : > { %v724_v44 = vpop.permute.xlu0 %723 }
 0x161   : > { %v729_v46 = vsel %vm612_vm2, %v722_v16, %v724_v44  ;;  %v730_v47 = vsel %vm612_vm2, %v724_v44, %v726_v2 }
 0x162   : > { %v688_v49 = vpop.permute.xlu1 %687  ;;  %v829_v50 = vsel %vm754_vm3, %v1898_v29, %v729_v46  ;;  %v833_v51 = vsel %vm754_vm3, %v1900_v30, %v730_v47  ;;  %v684_v58 = vpop.permute.xlu2 %683  ;;  %v851_v46 = vld [vmem:[%s2091_s2] sm:$0xf] }
 0x163   : > { %v693_v52 = vsel %vm612_vm2, %v688_v49, %v690_v25  ;;  %853 = vmatpush.bf16.msra.mxu0 %v829_v50  ;;  %866 = vmatpush.bf16.msra.mxu1 %v833_v51 }
 0x164   : > { %v813_v53 = vsel %vm754_vm3, %v1910_v35, %v693_v52 }
 0x165   : > { %881 = vmatpush.bf16.msra.mxu2 %v813_v53 }
 0x168   : > { %v695_v54 = vpop.permute.xlu0 %694 }
 0x16a   : > { %v697_v57 = vpop.permute.xlu1 %696  ;;  %v652_v35 = vpop.permute.xlu2 %651 }
 0x16b   : > { %v702_v60 = vsel %vm624_vm0, %v695_v54, %v697_v57  ;;  %v703_v62 = vsel %vm624_vm0, %v697_v57, %v699_v33 }
 0x170   : > { %v708_v59 = vpop.permute.xlu0 %707 }
 0x171   : > { %v713_v29 = vsel %vm636_vm1, %v706_v24, %v708_v59  ;;  %v714_v30 = vsel %vm636_vm1, %v708_v59, %v710_v37 }
 0x172   : > { %v661_v63 = vpop.permute.xlu1 %660  ;;  %v817_v0 = vsel %vm754_vm3, %v702_v60, %v713_v29  ;;  %v821_v1 = vsel %vm754_vm3, %v703_v62, %v714_v30  ;;  %v668_v9 = vpop.permute.xlu2 %667 }
 0x173   : > { %854 = vmatpush.bf16.msra.mxu0 %v817_v0  ;;  %867 = vmatpush.bf16.msra.mxu1 %v821_v1  ;;  %v666_v4 = vsel %vm624_vm0, %v661_v63, %v663_v45 }
 0x178   : > { %v672_v2 = vpop.permute.xlu0 %671 }
 0x17a   : > { %v674_v3 = vpop.permute.xlu1 %673  ;;  %v623_v18 = vpop.permute.xlu2 %622 }
 0x17b   : > { %v677_v5 = vsel %vm636_vm1, %v672_v2, %v674_v3 }
 0x17c   : > { %v801_v7 = vsel %vm754_vm3, %v666_v4, %v677_v5 }
 0x17d   : > { %882 = vmatpush.bf16.msra.mxu2 %v801_v7 }
 0x180   : > { %v686_v10 = vpop.permute.xlu0 %685 }
 0x181   : > { %v691_v11 = vsel %vm612_vm2, %v684_v58, %v686_v10  ;;  %v692_v12 = vsel %vm612_vm2, %v686_v10, %v688_v49 }
 0x182   : > { %v650_v13 = vpop.permute.xlu1 %649  ;;  %v805_v14 = vsel %vm754_vm3, %v1925_v42, %v691_v11  ;;  %v809_v15 = vsel %vm754_vm3, %v1927_v43, %v692_v12  ;;  %v646_v25 = vpop.permute.xlu2 %645 }
 0x183   : > { %v655_v16 = vsel %vm612_vm2, %v650_v13, %v652_v35  ;;  %855 = vmatpush.bf16.msra.mxu0 %v805_v14  ;;  %868 = vmatpush.bf16.msra.mxu1 %v809_v15 }
 0x184   : > { %v789_v17 = vsel %vm754_vm3, %v1937_v48, %v655_v16 }
 0x185   : > { %883 = vmatpush.bf16.msra.mxu2 %v789_v17 }
 0x188   : > { %v657_v19 = vpop.permute.xlu0 %656 }
 0x18a   : > { %v659_v20 = vpop.permute.xlu1 %658  ;;  %v611_v34 = vpop.permute.xlu2 %610 }
 0x18b   : > { %v664_v22 = vsel %vm624_vm0, %v657_v19, %v659_v20  ;;  %v665_v23 = vsel %vm624_vm0, %v659_v20, %v661_v63 }
 0x190   : > { %v670_v21 = vpop.permute.xlu0 %669 }
 0x191   : > { %v675_v42 = vsel %vm636_vm1, %v668_v9, %v670_v21  ;;  %v676_v43 = vsel %vm636_vm1, %v670_v21, %v672_v2 }
 0x192   : > { %v621_v26 = vpop.permute.xlu1 %620  ;;  %v793_v27 = vsel %vm754_vm3, %v664_v22, %v675_v42  ;;  %v797_v28 = vsel %vm754_vm3, %v665_v23, %v676_v43  ;;  %v629_v47 = vpop.permute.xlu2 %628 }
 0x193   : > { %856 = vmatpush.bf16.msra.mxu0 %v793_v27  ;;  %869 = vmatpush.bf16.msra.mxu1 %v797_v28  ;;  %v627_v32 = vsel %vm624_vm0, %v621_v26, %v623_v18 }
 0x198   : > { %v633_v48 = vpop.permute.xlu0 %632 }
 0x19a   : > { %v635_v31 = vpop.permute.xlu1 %634 }
 0x19b   : > { %v639_v33 = vsel %vm636_vm1, %v633_v48, %v635_v31 }
 0x19c   : > { %v777_v36 = vsel %vm754_vm3, %v627_v32, %v639_v33 }
 0x19d   : > { %884 = vmatpush.bf16.msra.mxu2 %v777_v36 }
 0x1a0   : > { %v648_v24 = vpop.permute.xlu0 %647 }
 0x1a1   : > { %v653_v37 = vsel %vm612_vm2, %v646_v25, %v648_v24  ;;  %v654_v38 = vsel %vm612_vm2, %v648_v24, %v650_v13 }
 0x1a2   : > { %v609_v39 = vpop.permute.xlu1 %608  ;;  %v781_v40 = vsel %vm754_vm3, %v1952_v55, %v653_v37  ;;  %v785_v41 = vsel %vm754_vm3, %v1954_v56, %v654_v38  ;;  %v607_v55 = vpop.permute.xlu2 %606 }
 0x1a3   : > { %v615_v44 = vsel %vm612_vm2, %v609_v39, %v611_v34  ;;  %857 = vmatpush.bf16.msra.mxu0 %v781_v40  ;;  %870 = vmatpush.bf16.msra.mxu1 %v785_v41  ;;  %v614_v59 = vsel %vm612_vm2, %v607_v55, %v609_v39 }
 0x1a4   : > { %v765_v45 = vsel %vm754_vm3, %v1964_v61, %v615_v44  ;;  %v761_v29 = vsel %vm754_vm3, %v1981_v8, %v614_v59 }
 0x1a5   : > { %885 = vmatpush.bf16.msra.mxu2 %v765_v45 }
 0x1a8   : > { %v617_v49 = vpop.permute.xlu0 %616  ;;  %886 = vmatmul.bf16.vlgmr.msra.gmra.mxu2 %v851_v46 }
 0x1aa   : > { %v619_v50 = vpop.permute.xlu1 %618 }
 0x1ab   : > { %v625_v56 = vsel %vm624_vm0, %v617_v49, %v619_v50  ;;  %v626_v52 = vsel %vm624_vm0, %v619_v50, %v621_v26 }
 0x1b0   : > { %v631_v51 = vpop.permute.xlu0 %630 }
 0x1b1   : > { %v637_v53 = vsel %vm636_vm1, %v629_v47, %v631_v51  ;;  %v638_v61 = vsel %vm636_vm1, %v631_v51, %v633_v48 }
 0x1b2   : > { %v769_v54 = vsel %vm754_vm3, %v625_v56, %v637_v53  ;;  %v773_v57 = vsel %vm754_vm3, %v626_v52, %v638_v61  ;;  %v605_v58 = vpop.permute.xlu1 %604 }
 0x1b3   : > { %858 = vmatpush.bf16.msra.mxu0 %v769_v54  ;;  %871 = vmatpush.bf16.msra.mxu1 %v773_v57  ;;  %v613_v60 = vsel %vm612_vm2, %v605_v58, %v607_v55 }
 0x1b4   : > { %v757_v62 = vsel %vm754_vm3, %v1979_v6, %v613_v60 }
 0x1b7   : > { %859 = vmatpush.bf16.msra.mxu0 %v757_v62  ;;  %872 = vmatpush.bf16.msra.mxu1 %v761_v29 }
 0x1ba   : > { %860 = vmatmul.bf16.vlgmr.msra.gmra.mxu0 %v851_v46  ;;  %873 = vmatmul.bf16.vlgmr.msra.gmra.mxu1 %v851_v46 }
 0x22b   : > { %v887_v30 = vpop.f32.mrf.mxu2 }
 0x22c   : > { %vm893_vm4 = vcmp.gt.f32.partialorder %v887_v30, 0.0  ;;  %v896_v63 = vmul.f32 0.2, %v887_v30 }
 0x22e   : > { %v899_v6 = vsel %vm893_vm4, %v887_v30, %v896_v63 }
 0x22f   : > { %v901_v0 = vpack.c.bf16 %v899_v6, %v899_v6 }
 0x231   : > { %903 = vst [vmem:[%s553_s8 + $0x8] sm:$0xf] %v901_v0 }
 0x233   : > { %v889_v8 = vpop.f32.mrf.mxu2 }
 0x237   : > { %v861_v1 = vpop.f32.mrf.mxu0  ;;  %v874_v35 = vpop.f32.mrf.mxu1 }
 0x238   : > { %vm891_vm5 = vcmp.gt.f32.partialorder %v861_v1, 0.0  ;;  %v894_v2 = vmul.f32 0.2, %v861_v1  ;;  %vm892_vm6 = vcmp.gt.f32.partialorder %v874_v35, 0.0  ;;  %v895_v3 = vmul.f32 0.2, %v874_v35 }
 0x23a   : > { %v897_v4 = vsel %vm891_vm5, %v861_v1, %v894_v2  ;;  %v898_v5 = vsel %vm892_vm6, %v874_v35, %v895_v3 }
 0x23b   : > { %v900_v7 = vpack.c.bf16 %v898_v5, %v897_v4 }
 0x23d   : > { %902 = vst [vmem:[%s553_s8] sm:$0xff] %v900_v7 }
 0x23f   : > { %v863_v9 = vpop.f32.mrf.mxu0  ;;  %v876_v10 = vpop.f32.mrf.mxu1 }
 0x240 PF: > { %p10_p2 = scmp.ge.s32.totalorder %s1512_s18, 8   ;;  %s2112_s12 = smov %s1382_s13 }
 0x241   : > { %s2113_s13 = smov %s1533_s28  ;;  %s2114_s14 = smov %s1390_s15 }
 0x242   : > { %s2115_s15 = smov %s1522_s22  ;;  %s2116_s16 = smov %s1512_s18 }
 0x243   :  { %12 = sbr.rel (!%p10_p2) target bundleno = 5 (0x5), region = 244 }

// kernel: cnet_d1_forward.5
= control target key start
LH: loop header
LB: loop body
LE: loop exit
PB: predicated region body
PF: predicated region fallthrough
CT: control target
= control target key end

     0   :  { %s716_s12 = smov 0   ;;  %s718_s13 = smov 0   ;;  %s879_s0 = inlined_call_operand.vmem [shape: bf16[4,8,768], index: 0, kind: input, shape index: {}, may-alias: {0,1}]   ;;  %s880_s1 = inlined_call_operand.vmem [shape: bf16[4,8,768], index: 1, kind: input, shape index: {}, may-alias: {0,1}]   ;;  %s881_s2 = inlined_call_operand.vmem [shape: bf16[16,128], index: 2, kind: input, shape index: {}]   ;;  %s882_s3 = inlined_call_operand.vmem [shape: bf16[16,640], index: 3, kind: output, shape index: {}]  }
   0x1   :  { %s720_s14 = smov 0   ;;  %s722_s15 = smov 0  }
   0x2   :  { %s724_s16 = smov 0  }
   0x3 LB: > { %s580_s17 = sadd.s32 4294967295, %s691_s16   ;;  %s743_s18 = sadd.s32 1, %s691_s16   ;;  %s691_s16 = sphi %s724_s16, %s889_s16   ;;  %s687_s15 = sphi %s722_s15, %s888_s15   ;;  %s683_s14 = sphi %s720_s14, %s887_s14   ;;  %s679_s13 = sphi %s718_s13, %s886_s13   ;;  %s675_s12 = sphi %s716_s12, %s885_s12  }
   0x4   : > { %s17_s19 = ssub.s32 %s691_s16, %s743_s18  ;;  %s20_s20 = sadd.s32 1, %s687_s15 }
   0x5   : > { %p18_p0 = scmp.eq.s32.totalorder %s17_s19, 0  ;;  %p27_p1 = scmp.ne.s32.totalorder %s687_s15, %s683_s14 }
   0x6   : > { %p28_p2 = scmp.eq.s32.totalorder %s691_s16, 0  ;;  %s44_s21 = sadd.s32 1, %s743_s18 }
   0x7   : > { %s753_s22 = scalar_select %p18_p0, %s687_s15, %s20_s20  }
   0x8   : > { %p29_p3 = por %p28_p2, %p27_p1  ;;  %s45_s23 = ssub.s32 %s743_s18, %s44_s21 }
   0x9   : > { %p46_p4 = scmp.eq.s32.totalorder %s45_s23, 0  ;;  %s48_s24 = sadd.s32 1, %s679_s13 }
   0xa   : > { %p55_p5 = scmp.ne.s32.totalorder %s679_s13, %s675_s12  ;;  %p106_p6 = scmp.eq.s32.totalorder %s580_s17, 4 }
   0xb   : > { %s762_s25 = scalar_select %p46_p4, %s679_s13, %s48_s24  }
   0xc   : > { %p764_p7 = por %p55_p5, %p28_p2  ;;  %p768_p8 = por %p106_p6, %p27_p1 }
   0xd   : > { %p583_p9 = scmp.ge.s32.totalorder %s691_s16, 5 }
   0xf   : > { %131 = sbr.rel (%p583_p9) target bundleno = 36 (0x24), region = 20 }
  0x14   : > { %134 = sbr.rel (!%p29_p3) target bundleno = 28 (0x1c), region = 24  ;;  %s136_s28 = sand.u32 (%p29_p3), 1, %s687_s15  }
  0x15   : > { %s585_s29 = sshll.u32 (%p29_p3), %s691_s16, 2  ;;  %s584_s30 = sshll.u32 (%p29_p3), %s136_s28, 4 }
  0x16   : > { %s140_s6 = scalar_lea.vmem (%p29_p3), %s879_s0, %s585_s29  ;;  %s138_s7 = scalar_lea.vmem (%p29_p3), [#allocation2], %s584_s30 }
  0x17   : > { %v157_v0 = vld [vmem:[%s140_s6] sm:$0xf] (%p29_p3)  ;;  %v159_v1 = vld [vmem:[%s140_s6 + $0x18] sm:$0xf] (%p29_p3)  ;;  %v161_v2 = vld [vmem:[%s140_s6 + $0x30] sm:$0xf] (%p29_p3) }
  0x18   : > { %158 = vst [vmem:[%s138_s7] sm:$0xf] (%p29_p3), %v157_v0  ;;  %v163_v3 = vld [vmem:[%s140_s6 + $0x48] sm:$0xf] (%p29_p3) }
  0x19   : > { %160 = vst [vmem:[%s138_s7 + $0x4] sm:$0xf] %v159_v1 }
  0x1a   : > { %162 = vst [vmem:[%s138_s7 + $0x8] sm:$0xf] %v161_v2 }
  0x1b   : > { %164 = vst [vmem:[%s138_s7 + $0xc] sm:$0xf] %v163_v3 }
  0x1c PF: > { %196 = sbr.rel (!%p764_p7) target bundleno = 36 (0x24), region = 65  ;;  %s198_s8 = sand.u32 (%p764_p7), 1, %s679_s13  }
  0x1d   : > { %s587_s9 = sshll.u32 (%p764_p7), %s691_s16, 2  ;;  %s586_s10 = sshll.u32 (%p764_p7), %s198_s8, 4 }
  0x1e   : > { %s524_s20 = scalar_lea.vmem (%p764_p7), %s880_s1, %s587_s9  ;;  %s200_s21 = scalar_lea.vmem (%p764_p7), [#allocation3], %s586_s10 }
  0x1f   : > { %v588_v4 = vld [vmem:[%s524_s20 + $0x4] sm:$0xf] (%p764_p7)  ;;  %v589_v5 = vld [vmem:[%s524_s20 + $0x1c] sm:$0xf] (%p764_p7)  ;;  %v590_v6 = vld [vmem:[%s524_s20 + $0x34] sm:$0xf] (%p764_p7) }
  0x20   : > { %221 = vst [vmem:[%s200_s21] sm:$0xf] (%p764_p7), %v588_v4  ;;  %v591_v7 = vld [vmem:[%s524_s20 + $0x4c] sm:$0xf] (%p764_p7) }
  0x21   : > { %223 = vst [vmem:[%s200_s21 + $0x4] sm:$0xf] %v589_v5 }
  0x22   : > { %225 = vst [vmem:[%s200_s21 + $0x8] sm:$0xf] %v590_v6 }
  0x23   : > { %227 = vst [vmem:[%s200_s21 + $0xc] sm:$0xf] %v591_v7 }
  0x24 PF: > { %p592_p10 = scmp.ge.s32.totalorder %s691_s16, 1  ;;  %p258_p11 = scmp.lt.s32.totalorder %s691_s16, 6 }
  0x26   : > { %p259_p12 = pnand %p592_p10, %p258_p11 }
  0x27   : > { %s265_s23 = sand.u32 (!%p259_p12), 1, %s683_s14   ;;  %s272_s26 = sand.u32 (!%p259_p12), 1, %s675_s12  }
  0x28   : > { %262 = sbr.rel (%p259_p12) target bundleno = 375 (0x177), region = 106  ;;  %s593_s24 = sshll.u32 (!%p259_p12), %s265_s23, 4 }
  0x29   : > { %s791_s28 = scalar_lea.vmem (!%p259_p12), [#allocation2], %s593_s24  ;;  %s594_s29 = sshll.u32 (!%p259_p12), %s272_s26, 4 }
  0x2a   : > { %s693_s30 = smov (!%p259_p12), 111   ;;  %s694_s4 = smov (!%p259_p12), 110  }
  0x2b   : > { %s695_s5 = smov (!%p259_p12), 127   ;;  %s274_s12 = scalar_lea.vmem (!%p259_p12), [#allocation3], %s594_s29 }
  0x2c   : > { %s595_s8 = sshll.u32 (!%p259_p12), %s265_s23, 3 }
  0x2d   : > { %v794_v8 = vld [vmem:[%s791_s28 + $0xc] sm:$0xf]  ;;  %v301_v12 = vld [vmem:[%s791_s28 + $0x8] sm:$0xf]  ;;  %v300_v16 = vld [vmem:[%s791_s28 + $0x4] sm:$0xf] }
  0x2e   : > { %376 = vrot.lane.b32.xlu0 %v794_v8, %s693_s30  ;;  %v369_v9 = vrot.slane %v794_v8, 4  ;;  %v306_v10 = vld [vmem:[%s274_s12 + $0xc] sm:$0xf]  ;;  %v305_v13 = vld [vmem:[%s274_s12 + $0x8] sm:$0xf]  ;;  %v350_v14 = vrot.slane %v301_v12, 4 }
  0x2f   : > { %v370_v11 = vrot.slane %v306_v10, 4  ;;  %v351_v15 = vrot.slane %v305_v13, 4  ;;  %v304_v17 = vld [vmem:[%s274_s12 + $0x4] sm:$0xf]  ;;  %v331_v18 = vrot.slane %v300_v16, 4  ;;  %vm321_vm0 = vcmask 908288  }
  0x30   : > { %381 = vrot.lane.b32.xlu1 %v369_v9, %s694_s4  ;;  %371 = vrot.lane.b32.xlu2 %v369_v9, %s695_s5  ;;  %v332_v19 = vrot.slane %v304_v17, 4  ;;  %v819_v20 = vld [vmem:[%s791_s28] sm:$0xf]  ;;  %vm327_vm1 = vcmask 900096   ;;  %vm315_vm2 = vcmask 1039360   ;;  %vm386_vm3 = vcmask 1043456  }
  0x31   : > { %v303_v21 = vld [vmem:[%s274_s12] sm:$0xf]  ;;  %v309_v22 = vrot.slane %v819_v20, 4  ;;  %s297_s9 = scalar_lea.vmem [#allocation4], %s595_s8  ;;  %s601_s10 = sshll.u32 (%p768_p8), %s580_s17, 2 }
  0x32   : > { %v310_v23 = vrot.slane %v303_v21, 4  ;;  %v604_v4 = vld [vmem:[%s881_s2] sm:$0xff]  ;;  %s459_s14 = scalar_lea.vmem (%p768_p8), %s882_s3, %s601_s10 }
  0x36   : > { %378 = vrot.lane.b32.xlu0 %v306_v10, %s693_s30 }
  0x38   : > { %383 = vrot.lane.b32.xlu1 %v370_v11, %s694_s4  ;;  %373 = vrot.lane.b32.xlu2 %v370_v11, %s695_s5 }
  0x3e   : > { %357 = vrot.lane.b32.xlu0 %v301_v12, %s693_s30 }
  0x40   : > { %359 = vrot.lane.b32.xlu1 %v305_v13, %s693_s30  ;;  %362 = vrot.lane.b32.xlu2 %v350_v14, %s694_s4 }
  0x46   : > { %364 = vrot.lane.b32.xlu0 %v351_v15, %s694_s4 }
  0x48   : > { %352 = vrot.lane.b32.xlu1 %v350_v14, %s695_s5  ;;  %354 = vrot.lane.b32.xlu2 %v351_v15, %s695_s5 }
  0x4e   : > { %338 = vrot.lane.b32.xlu0 %v300_v16, %s693_s30 }
  0x50   : > { %340 = vrot.lane.b32.xlu1 %v304_v17, %s693_s30  ;;  %343 = vrot.lane.b32.xlu2 %v331_v18, %s694_s4 }
  0x56   : > { %345 = vrot.lane.b32.xlu0 %v332_v19, %s694_s4 }
  0x58   : > { %333 = vrot.lane.b32.xlu1 %v331_v18, %s695_s5  ;;  %335 = vrot.lane.b32.xlu2 %v332_v19, %s695_s5 }
  0x5e   : > { %317 = vrot.lane.b32.xlu0 %v819_v20, %s693_s30 }
  0x60   : > { %319 = vrot.lane.b32.xlu1 %v303_v21, %s693_s30  ;;  %323 = vrot.lane.b32.xlu2 %v309_v22, %s694_s4 }
  0x66   : > { %325 = vrot.lane.b32.xlu0 %v310_v23, %s694_s4 }
  0x68   : > { %311 = vrot.lane.b32.xlu1 %v309_v22, %s695_s5  ;;  %313 = vrot.lane.b32.xlu2 %v310_v23, %s695_s5 }
  0x8a   : > { %v372_v24 = vpop.permute.xlu2 %371 }
  0x92   : > { %v374_v25 = vpop.permute.xlu2 %373 }
  0x93   : > { %v375_v34 = vsel %vm315_vm2, %v372_v24, %v374_v25 }
  0x94   : > { %v413_v36 = vsel %vm386_vm3, %v794_v8, %v375_v34 }
  0x9a   : > { %v363_v28 = vpop.permute.xlu2 %362 }
  0xa0   : > { %v377_v26 = vpop.permute.xlu0 %376 }
  0xa2   : > { %v382_v27 = vpop.permute.xlu1 %381  ;;  %v355_v37 = vpop.permute.xlu2 %354 }
  0xa8   : > { %v379_v29 = vpop.permute.xlu0 %378 }
  0xa9   : > { %v380_v31 = vsel %vm321_vm0, %v377_v26, %v379_v29 }
  0xaa   : > { %v384_v30 = vpop.permute.xlu1 %383  ;;  %v344_v44 = vpop.permute.xlu2 %343 }
  0xab   : > { %v385_v32 = vsel %vm327_vm1, %v382_v27, %v384_v30 }
  0xac   : > { %v417_v33 = vsel %vm386_vm3, %v380_v31, %v385_v32 }
  0xad   : > { %427 = vmatpush.bf16.msra.mxu0 %v417_v33 }
  0xb0   : > { %v358_v35 = vpop.permute.xlu0 %357 }
  0xb1   : > { %428 = vmatpush.bf16.msra.mxu0 %v413_v36 }
  0xb2   : > { %v360_v38 = vpop.permute.xlu1 %359  ;;  %v336_v49 = vpop.permute.xlu2 %335 }
  0xb3   : > { %v361_v40 = vsel %vm321_vm0, %v358_v35, %v360_v38 }
  0xb8   : > { %v365_v39 = vpop.permute.xlu0 %364 }
  0xb9   : > { %v366_v41 = vsel %vm327_vm1, %v363_v28, %v365_v39 }
  0xba   : > { %v353_v42 = vpop.permute.xlu1 %352  ;;  %v409_v43 = vsel %vm386_vm3, %v361_v40, %v366_v41  ;;  %v324_v57 = vpop.permute.xlu2 %323 }
  0xbb   : > { %429 = vmatpush.bf16.msra.mxu0 %v409_v43  ;;  %v356_v45 = vsel %vm315_vm2, %v353_v42, %v355_v37 }
  0xbc   : > { %v405_v46 = vsel %vm386_vm3, %v301_v12, %v356_v45 }
  0xbf   : > { %430 = vmatpush.bf16.msra.mxu0 %v405_v46 }
  0xc0   : > { %v339_v47 = vpop.permute.xlu0 %338 }
  0xc2   : > { %v341_v48 = vpop.permute.xlu1 %340  ;;  %v314_v61 = vpop.permute.xlu2 %313 }
  0xc3   : > { %v342_v51 = vsel %vm321_vm0, %v339_v47, %v341_v48 }
  0xc8   : > { %v346_v50 = vpop.permute.xlu0 %345 }
  0xc9   : > { %v347_v52 = vsel %vm327_vm1, %v344_v44, %v346_v50 }
  0xca   : > { %v334_v53 = vpop.permute.xlu1 %333  ;;  %v401_v54 = vsel %vm386_vm3, %v342_v51, %v347_v52 }
  0xcb   : > { %431 = vmatpush.bf16.msra.mxu0 %v401_v54  ;;  %v337_v55 = vsel %vm315_vm2, %v334_v53, %v336_v49 }
  0xcc   : > { %v397_v56 = vsel %vm386_vm3, %v300_v16, %v337_v55 }
  0xcf   : > { %432 = vmatpush.bf16.msra.mxu0 %v397_v56 }
  0xd0   : > { %v318_v58 = vpop.permute.xlu0 %317 }
  0xd2   : > { %v320_v59 = vpop.permute.xlu1 %319 }
  0xd3   : > { %v322_v62 = vsel %vm321_vm0, %v318_v58, %v320_v59 }
  0xd8   : > { %v326_v60 = vpop.permute.xlu0 %325 }
  0xd9   : > { %v328_v63 = vsel %vm327_vm1, %v324_v57, %v326_v60 }
  0xda   : > { %v393_v0 = vsel %vm386_vm3, %v322_v62, %v328_v63  ;;  %v312_v1 = vpop.permute.xlu1 %311 }
  0xdb   : > { %433 = vmatpush.bf16.msra.mxu0 %v393_v0  ;;  %v316_v2 = vsel %vm315_vm2, %v312_v1, %v314_v61 }
  0xdc   : > { %v389_v3 = vsel %vm386_vm3, %v819_v20, %v316_v2 }
  0xdf   : > { %434 = vmatpush.bf16.msra.mxu0 %v389_v3 }
  0xe2   : > { %435 = vmatmul.bf16.vlgmr.msra.gmra.mxu0 %v604_v4 }
 0x15f   : > { %v436_v5 = vpop.f32.mrf.mxu0 }
 0x160   : > { %v443_v6 = vmul.f32 0.2, %v436_v5  ;;  %vm441_vm4 = vcmp.gt.f32.partialorder %v436_v5, 0.0 }
 0x162   : > { %v445_v9 = vsel %vm441_vm4, %v436_v5, %v443_v6 }
 0x167   : > { %v438_v7 = vpop.f32.mrf.mxu0 }
 0x168   : > { %vm442_vm5 = vcmp.gt.f32.partialorder %v438_v7, 0.0  ;;  %v444_v8 = vmul.f32 0.2, %v438_v7 }
 0x169   : > { %457 = sbr.rel (!%p768_p8) target bundleno = 375 (0x177), region = 118 }
 0x16a   : > { %v446_v10 = vsel %vm442_vm5, %v438_v7, %v444_v8 }
 0x16b   : > { %v608_v11 = vpack.c.bf16 %v446_v10, %v445_v9 }
 0x16d   : > { %609 = vst [vmem:[%s297_s9] sm:$0xff] %v608_v11  }
 0x174   : > { %v476_v12 = vld [vmem:[%s297_s9] sm:$0xf]  ;;  %v478_v13 = vld [vmem:[%s297_s9 + $0x4] sm:$0xf] }
 0x175   : > { %477 = vst [vmem:[%s459_s14] sm:$0xf] %v476_v12 }
 0x176   : > { %479 = vst [vmem:[%s459_s14 + $0x14] sm:$0xf] %v478_v13 }
 0x177 PF: > { %p10_p13 = scmp.ge.s32.totalorder %s743_s18, 7   ;;  %s885_s12 = smov %s679_s13 }
 0x178   : > { %s886_s13 = smov %s762_s25  ;;  %s887_s14 = smov %s687_s15 }
 0x179   : > { %s888_s15 = smov %s753_s22  ;;  %s889_s16 = smov %s743_s18 }
 0x17a   :  { %12 = sbr.rel (!%p10_p13) target bundleno = 3 (0x3), region = 198 }

// kernel: cnet_d1_forward.6
= control target key start
LH: loop header
LB: loop body
LE: loop exit
PB: predicated region body
PF: predicated region fallthrough
CT: control target
= control target key end

     0   :  { %s902_s12 = smov 0   ;;  %s904_s13 = smov 0   ;;  %s1066_s0 = inlined_call_operand.vmem [shape: bf16[4,16,384], index: 0, kind: input, shape index: {}, may-alias: {0,1}]   ;;  %s1067_s1 = inlined_call_operand.vmem [shape: bf16[4,16,384], index: 1, kind: input, shape index: {}, may-alias: {0,1}]   ;;  %s1068_s2 = inlined_call_operand.vmem [shape: bf16[32,256], index: 2, kind: input, shape index: {}]   ;;  %s1069_s3 = inlined_call_operand.vmem [shape: bf16[32,256], index: 3, kind: output, shape index: {}]  }
   0x1   :  { %s906_s14 = smov 0   ;;  %s908_s15 = smov 0  }
   0x2   :  { %s910_s16 = smov 0  }
   0x3 LB: > { %s685_s17 = sadd.s32 4294967295, %s877_s16   ;;  %s929_s18 = sadd.s32 1, %s877_s16   ;;  %s877_s16 = sphi %s910_s16, %s1076_s16   ;;  %s873_s15 = sphi %s908_s15, %s1075_s15   ;;  %s869_s14 = sphi %s906_s14, %s1074_s14   ;;  %s865_s13 = sphi %s904_s13, %s1073_s13   ;;  %s861_s12 = sphi %s902_s12, %s1072_s12  }
   0x4   : > { %s17_s19 = ssub.s32 %s877_s16, %s929_s18  ;;  %s20_s20 = sadd.s32 1, %s873_s15 }
   0x5   : > { %p18_p0 = scmp.eq.s32.totalorder %s17_s19, 0  ;;  %p27_p1 = scmp.ne.s32.totalorder %s873_s15, %s869_s14 }
   0x6   : > { %p28_p2 = scmp.eq.s32.totalorder %s877_s16, 0  ;;  %s44_s21 = sadd.s32 1, %s929_s18 }
   0x7   : > { %s939_s22 = scalar_select %p18_p0, %s873_s15, %s20_s20  }
   0x8   : > { %p29_p3 = por %p28_p2, %p27_p1  ;;  %s45_s23 = ssub.s32 %s929_s18, %s44_s21 }
   0x9   : > { %p46_p4 = scmp.eq.s32.totalorder %s45_s23, 0  ;;  %s48_s24 = sadd.s32 1, %s865_s13 }
   0xa   : > { %p55_p5 = scmp.ne.s32.totalorder %s865_s13, %s861_s12  ;;  %p106_p6 = scmp.eq.s32.totalorder %s685_s17, 1 }
   0xb   : > { %s948_s25 = scalar_select %p46_p4, %s865_s13, %s48_s24  }
   0xc   : > { %p950_p7 = por %p55_p5, %p28_p2  ;;  %p954_p8 = por %p106_p6, %p27_p1 }
   0xd   : > { %p688_p9 = scmp.ge.s32.totalorder %s877_s16, 2 }
   0xf   : > { %131 = sbr.rel (%p688_p9) target bundleno = 44 (0x2c), region = 20 }
  0x14   : > { %134 = sbr.rel (!%p29_p3) target bundleno = 32 (0x20), region = 24  ;;  %s136_s28 = sand.u32 (%p29_p3), 1, %s873_s15  }
  0x15   : > { %s690_s29 = sshll.u32 (%p29_p3), %s877_s16, 2  ;;  %s689_s30 = sshll.u32 (%p29_p3), %s136_s28, 5 }
  0x16   : > { %s140_s6 = scalar_lea.vmem (%p29_p3), %s1066_s0, %s690_s29  ;;  %s138_s7 = scalar_lea.vmem (%p29_p3), [#allocation2], %s689_s30 }
  0x17   : > { %v157_v0 = vld [vmem:[%s140_s6] sm:$0xf] (%p29_p3)  ;;  %v159_v1 = vld [vmem:[%s140_s6 + $0xc] sm:$0xf] (%p29_p3)  ;;  %v161_v2 = vld [vmem:[%s140_s6 + $0x18] sm:$0xf] (%p29_p3) }
  0x18   : > { %158 = vst [vmem:[%s138_s7] sm:$0xf] (%p29_p3), %v157_v0  ;;  %v163_v3 = vld [vmem:[%s140_s6 + $0x24] sm:$0xf] (%p29_p3)  ;;  %v165_v4 = vld [vmem:[%s140_s6 + $0x30] sm:$0xf] (%p29_p3) }
  0x19   : > { %160 = vst [vmem:[%s138_s7 + $0x4] sm:$0xf] %v159_v1  ;;  %v167_v5 = vld [vmem:[%s140_s6 + $0x3c] sm:$0xf]  ;;  %v169_v6 = vld [vmem:[%s140_s6 + $0x48] sm:$0xf] }
  0x1a   : > { %162 = vst [vmem:[%s138_s7 + $0x8] sm:$0xf] %v161_v2  ;;  %v171_v7 = vld [vmem:[%s140_s6 + $0x54] sm:$0xf] }
  0x1b   : > { %164 = vst [vmem:[%s138_s7 + $0xc] sm:$0xf] %v163_v3 }
  0x1c   : > { %166 = vst [vmem:[%s138_s7 + $0x10] sm:$0xf] %v165_v4 }
  0x1d   : > { %168 = vst [vmem:[%s138_s7 + $0x14] sm:$0xf] %v167_v5 }
  0x1e   : > { %170 = vst [vmem:[%s138_s7 + $0x18] sm:$0xf] %v169_v6 }
  0x1f   : > { %172 = vst [vmem:[%s138_s7 + $0x1c] sm:$0xf] %v171_v7 }
  0x20 PF: > { %212 = sbr.rel (!%p950_p7) target bundleno = 44 (0x2c), region = 65  ;;  %s214_s8 = sand.u32 (%p950_p7), 1, %s865_s13  }
  0x21   : > { %s692_s9 = sshll.u32 (%p950_p7), %s877_s16, 2  ;;  %s691_s10 = sshll.u32 (%p950_p7), %s214_s8, 5 }
  0x22   : > { %s629_s20 = scalar_lea.vmem (%p950_p7), %s1067_s1, %s692_s9  ;;  %s216_s21 = scalar_lea.vmem (%p950_p7), [#allocation3], %s691_s10 }
  0x23   : > { %v693_v8 = vld [vmem:[%s629_s20 + $0x4] sm:$0xf] (%p950_p7)  ;;  %v694_v9 = vld [vmem:[%s629_s20 + $0x10] sm:$0xf] (%p950_p7)  ;;  %v695_v10 = vld [vmem:[%s629_s20 + $0x1c] sm:$0xf] (%p950_p7) }
  0x24   : > { %237 = vst [vmem:[%s216_s21] sm:$0xf] (%p950_p7), %v693_v8  ;;  %v696_v11 = vld [vmem:[%s629_s20 + $0x28] sm:$0xf] (%p950_p7)  ;;  %v697_v12 = vld [vmem:[%s629_s20 + $0x34] sm:$0xf] (%p950_p7) }
  0x25   : > { %239 = vst [vmem:[%s216_s21 + $0x4] sm:$0xf] %v694_v9  ;;  %v698_v13 = vld [vmem:[%s629_s20 + $0x40] sm:$0xf]  ;;  %v699_v14 = vld [vmem:[%s629_s20 + $0x4c] sm:$0xf] }
  0x26   : > { %241 = vst [vmem:[%s216_s21 + $0x8] sm:$0xf] %v695_v10  ;;  %v700_v15 = vld [vmem:[%s629_s20 + $0x58] sm:$0xf] }
  0x27   : > { %243 = vst [vmem:[%s216_s21 + $0xc] sm:$0xf] %v696_v11 }
  0x28   : > { %245 = vst [vmem:[%s216_s21 + $0x10] sm:$0xf] %v697_v12 }
  0x29   : > { %247 = vst [vmem:[%s216_s21 + $0x14] sm:$0xf] %v698_v13 }
  0x2a   : > { %249 = vst [vmem:[%s216_s21 + $0x18] sm:$0xf] %v699_v14 }
  0x2b   : > { %251 = vst [vmem:[%s216_s21 + $0x1c] sm:$0xf] %v700_v15 }
  0x2c PF: > { %p701_p10 = scmp.ge.s32.totalorder %s877_s16, 1  ;;  %p290_p11 = scmp.lt.s32.totalorder %s877_s16, 3 }
  0x2e   : > { %p291_p12 = pnand %p701_p10, %p290_p11 }
  0x2f   : > { %s297_s23 = sand.u32 (!%p291_p12), 1, %s869_s14   ;;  %s304_s26 = sand.u32 (!%p291_p12), 1, %s861_s12  }
  0x30   : > { %294 = sbr.rel (%p291_p12) target bundleno = 391 (0x187), region = 106  ;;  %s702_s24 = sshll.u32 (!%p291_p12), %s297_s23, 5 }
  0x31   : > { %s299_s28 = scalar_lea.vmem (!%p291_p12), [#allocation2], %s702_s24  ;;  %s703_s29 = sshll.u32 (!%p291_p12), %s304_s26, 5 }
  0x32   : > { %s879_s30 = smov (!%p291_p12), 118   ;;  %s880_s4 = smov (!%p291_p12), 119  }
  0x33   : > { %s306_s5 = scalar_lea.vmem (!%p291_p12), [#allocation3], %s703_s29  ;;  %s881_s12 = smov (!%p291_p12), 127  }
  0x35   : > { %v977_v16 = vld [vmem:[%s299_s28 + $0x18] sm:$0xff]  ;;  %v979_v17 = vld [vmem:[%s299_s28 + $0x8] sm:$0xff]  ;;  %v761_v20 = vld [vmem:[%s306_s5] sm:$0xff]  ;;  %vm409_vm0 = vcmask 965632   ;;  %vm402_vm1 = vcmask 973824   ;;  %vm395_vm2 = vcmask 1039360  }
  0x36   : > { %460 = vrot.lane.b32.xlu1 %v977_v16, %s879_s30  ;;  %424 = vrot.lane.b32.xlu0 %v979_v17, %s879_s30  ;;  %v764_v18 = vld [vmem:[%s306_s5 + $0x18] sm:$0xff]  ;;  %v762_v19 = vld [vmem:[%s306_s5 + $0x8] sm:$0xff]  ;;  %s754_s14 = sshll.u32 (%p954_p8), %s685_s17, 2 }
  0x37   : > { %418 = vrot.lane.b32.xlu2 %v979_v17, %s880_s4  ;;  %v987_v21 = vld [vmem:[%s299_s28] sm:$0xff]  ;;  %v989_v22 = vld [vmem:[%s299_s28 + $0x10] sm:$0xff]  ;;  %v766_v61 = vld [vmem:[%s1068_s2 + $0x4] sm:$0xf0]  ;;  %s556_s8 = scalar_lea.vmem (%p954_p8), %s1069_s3, %s754_s14 }
  0x38   : > { %v763_v23 = vld [vmem:[%s306_s5 + $0x10] sm:$0xff]  ;;  %v739_v60 = vld [vmem:[%s1068_s2] sm:$0xf]  ;;  %v768_v63 = vld [vmem:[%s1068_s2 + $0x14] sm:$0xf0] }
  0x39   : > { %v747_v62 = vld [vmem:[%s1068_s2 + $0x10] sm:$0xf]  ;;  %v765_v0 = vld [vmem:[%s1068_s2 + $0x4] sm:$0xf]  ;;  %v741_v1 = vld [vmem:[%s1068_s2 + $0x8] sm:$0xf0]  ;;  %v740_v4 = vor.u32 %v766_v61, %v739_v60 }
  0x3a   : > { %v767_v2 = vld [vmem:[%s1068_s2 + $0x14] sm:$0xf]  ;;  %v749_v3 = vld [vmem:[%s1068_s2 + $0x18] sm:$0xf0]  ;;  %v748_v5 = vor.u32 %v768_v63, %v747_v62  ;;  %v744_v6 = vor.u32 %v765_v0, %v741_v1 }
  0x3b   : > { %v752_v7 = vor.u32 %v767_v2, %v749_v3 }
  0x3e   : > { %462 = vrot.lane.b32.xlu1 %v764_v18, %s879_s30  ;;  %426 = vrot.lane.b32.xlu0 %v762_v19, %s879_s30 }
  0x3f   : > { %420 = vrot.lane.b32.xlu2 %v762_v19, %s880_s4 }
  0x46   : > { %456 = vrot.lane.b32.xlu1 %v764_v18, %s880_s4  ;;  %454 = vrot.lane.b32.xlu0 %v977_v16, %s880_s4 }
  0x47   : > { %412 = vrot.lane.b32.xlu2 %v979_v17, %s881_s12 }
  0x4e   : > { %448 = vrot.lane.b32.xlu1 %v977_v16, %s881_s12  ;;  %414 = vrot.lane.b32.xlu0 %v762_v19, %s881_s12 }
  0x4f   : > { %450 = vrot.lane.b32.xlu2 %v764_v18, %s881_s12 }
  0x56   : > { %407 = vrot.lane.b32.xlu1 %v761_v20, %s879_s30  ;;  %405 = vrot.lane.b32.xlu0 %v987_v21, %s879_s30 }
  0x57   : > { %442 = vrot.lane.b32.xlu2 %v989_v22, %s879_s30 }
  0x5e   : > { %398 = vrot.lane.b32.xlu1 %v987_v21, %s880_s4  ;;  %444 = vrot.lane.b32.xlu0 %v763_v23, %s879_s30 }
  0x5f   : > { %400 = vrot.lane.b32.xlu2 %v761_v20, %s880_s4 }
  0x66   : > { %438 = vrot.lane.b32.xlu1 %v763_v23, %s880_s4  ;;  %436 = vrot.lane.b32.xlu0 %v989_v22, %s880_s4 }
  0x67   : > { %391 = vrot.lane.b32.xlu2 %v987_v21, %s881_s12 }
  0x6e   : > { %430 = vrot.lane.b32.xlu1 %v989_v22, %s881_s12  ;;  %393 = vrot.lane.b32.xlu0 %v761_v20, %s881_s12 }
  0x6f   : > { %432 = vrot.lane.b32.xlu2 %v763_v23, %s881_s12  ;;  %s704_s12 = sshll.u32 %s297_s23, 4 }
  0x70   : > { %s329_s6 = scalar_lea.vmem [#allocation4], %s704_s12 }
  0x91   : > { %v419_v24 = vpop.permute.xlu2 %418 }
  0x99   : > { %v421_v25 = vpop.permute.xlu2 %420 }
  0x9a   : > { %v422_v33 = vsel %vm402_vm1, %v419_v24, %v421_v25 }
  0xa1   : > { %v413_v28 = vpop.permute.xlu2 %412 }
  0xa8   : > { %v461_v26 = vpop.permute.xlu1 %460  ;;  %v425_v27 = vpop.permute.xlu0 %424 }
  0xa9   : > { %v451_v34 = vpop.permute.xlu2 %450 }
  0xb0   : > { %v463_v29 = vpop.permute.xlu1 %462  ;;  %v427_v30 = vpop.permute.xlu0 %426 }
  0xb1   : > { %v428_v31 = vsel %vm409_vm0, %v425_v27, %v427_v30  ;;  %v464_v32 = vsel %vm409_vm0, %v461_v26, %v463_v29  ;;  %v443_v38 = vpop.permute.xlu2 %442 }
  0xb2   : > { %490 = vmatpush.bf16.msra.mxu0 %v428_v31  ;;  %780 = vmatpush.bf16.msra.mxu2 %v428_v31 }
  0xb3   : > { %509 = vmatpush.bf16.msra.mxu1 %v464_v32  ;;  %788 = vmatpush.bf16.msra.mxu3 %v464_v32 }
  0xb6   : > { %491 = vmatpush.bf16.msra.mxu0 %v422_v33  ;;  %781 = vmatpush.bf16.msra.mxu2 %v422_v33 }
  0xb8   : > { %v457_v35 = vpop.permute.xlu1 %456  ;;  %v455_v36 = vpop.permute.xlu0 %454 }
  0xb9   : > { %v458_v37 = vsel %vm402_vm1, %v455_v36, %v457_v35  ;;  %v401_v46 = vpop.permute.xlu2 %400 }
  0xba   : > { %510 = vmatpush.bf16.msra.mxu1 %v458_v37  ;;  %789 = vmatpush.bf16.msra.mxu3 %v458_v37 }
  0xc0   : > { %v449_v39 = vpop.permute.xlu1 %448  ;;  %v415_v40 = vpop.permute.xlu0 %414 }
  0xc1   : > { %v416_v41 = vsel %vm395_vm2, %v413_v28, %v415_v40  ;;  %v452_v42 = vsel %vm395_vm2, %v449_v39, %v451_v34  ;;  %v392_v51 = vpop.permute.xlu2 %391 }
  0xc2   : > { %492 = vmatpush.bf16.msra.mxu0 %v416_v41  ;;  %782 = vmatpush.bf16.msra.mxu2 %v416_v41 }
  0xc3   : > { %511 = vmatpush.bf16.msra.mxu1 %v452_v42  ;;  %790 = vmatpush.bf16.msra.mxu3 %v452_v42 }
  0xc6   : > { %493 = vmatpush.bf16.msra.mxu0 %v979_v17  ;;  %783 = vmatpush.bf16.msra.mxu2 %v979_v17 }
  0xc7   : > { %512 = vmatpush.bf16.msra.mxu1 %v977_v16  ;;  %791 = vmatpush.bf16.msra.mxu3 %v977_v16 }
  0xc8   : > { %v408_v43 = vpop.permute.xlu1 %407  ;;  %v406_v44 = vpop.permute.xlu0 %405 }
  0xc9   : > { %v410_v45 = vsel %vm409_vm0, %v406_v44, %v408_v43  ;;  %v433_v55 = vpop.permute.xlu2 %432 }
  0xca   : > { %494 = vmatpush.bf16.msra.mxu0 %v410_v45  ;;  %784 = vmatpush.bf16.msra.mxu2 %v410_v45 }
  0xd0   : > { %v399_v47 = vpop.permute.xlu1 %398  ;;  %v445_v48 = vpop.permute.xlu0 %444 }
  0xd1   : > { %v403_v49 = vsel %vm402_vm1, %v399_v47, %v401_v46  ;;  %v446_v50 = vsel %vm409_vm0, %v443_v38, %v445_v48 }
  0xd2   : > { %495 = vmatpush.bf16.msra.mxu0 %v403_v49  ;;  %785 = vmatpush.bf16.msra.mxu2 %v403_v49 }
  0xd3   : > { %513 = vmatpush.bf16.msra.mxu1 %v446_v50  ;;  %792 = vmatpush.bf16.msra.mxu3 %v446_v50 }
  0xd8   : > { %v439_v52 = vpop.permute.xlu1 %438  ;;  %v437_v53 = vpop.permute.xlu0 %436 }
  0xd9   : > { %v440_v54 = vsel %vm402_vm1, %v437_v53, %v439_v52 }
  0xda   : > { %514 = vmatpush.bf16.msra.mxu1 %v440_v54  ;;  %793 = vmatpush.bf16.msra.mxu3 %v440_v54 }
  0xe0   : > { %v431_v56 = vpop.permute.xlu1 %430  ;;  %v394_v57 = vpop.permute.xlu0 %393 }
  0xe1   : > { %v396_v58 = vsel %vm395_vm2, %v392_v51, %v394_v57  ;;  %v434_v59 = vsel %vm395_vm2, %v431_v56, %v433_v55 }
  0xe2   : > { %496 = vmatpush.bf16.msra.mxu0 %v396_v58  ;;  %786 = vmatpush.bf16.msra.mxu2 %v396_v58 }
  0xe3   : > { %515 = vmatpush.bf16.msra.mxu1 %v434_v59  ;;  %794 = vmatpush.bf16.msra.mxu3 %v434_v59 }
  0xe6   : > { %497 = vmatpush.bf16.msra.mxu0 %v987_v21  ;;  %787 = vmatpush.bf16.msra.mxu2 %v987_v21 }
  0xe7   : > { %516 = vmatpush.bf16.msra.mxu1 %v989_v22  ;;  %795 = vmatpush.bf16.msra.mxu3 %v989_v22 }
  0xe9   : > { %498 = vmatmul.bf16.vlgmr.msra.gmra.mxu0 %v740_v4  ;;  %503 = vmatmul.bf16.vlgmr.msra.gmra.mxu2 %v748_v5 }
  0xea   : > { %517 = vmatmul.bf16.vlgmr.msra.gmra.mxu1 %v744_v6  ;;  %522 = vmatmul.bf16.vlgmr.msra.gmra.mxu3 %v752_v7 }
 0x166   : > { %v499_v8 = vpop.f32.mrf.mxu0 }
 0x167   : > { %v518_v9 = vpop.f32.mrf.mxu1 }
 0x168   : > { %v519_v10 = vadd.f32 %v518_v9, %v499_v8 }
 0x16a   : > { %v532_v15 = vmul.f32 0.2, %v519_v10  ;;  %vm528_vm3 = vcmp.gt.f32.partialorder %v519_v10, 0.0 }
 0x16c   : > { %v504_v11 = vpop.f32.mrf.mxu2  ;;  %v536_v19 = vsel %vm528_vm3, %v519_v10, %v532_v15 }
 0x16d   : > { %v523_v12 = vpop.f32.mrf.mxu3 }
 0x16e   : > { %v501_v13 = vpop.f32.mrf.mxu0  ;;  %v524_v17 = vadd.f32 %v523_v12, %v504_v11 }
 0x16f   : > { %v520_v14 = vpop.f32.mrf.mxu1 }
 0x170   : > { %v521_v16 = vadd.f32 %v520_v14, %v501_v13  ;;  %v534_v24 = vmul.f32 0.2, %v524_v17  ;;  %vm530_vm5 = vcmp.gt.f32.partialorder %v524_v17, 0.0 }
 0x172   : > { %vm529_vm4 = vcmp.gt.f32.partialorder %v521_v16, 0.0  ;;  %v533_v18 = vmul.f32 0.2, %v521_v16  ;;  %v538_v27 = vsel %vm530_vm5, %v524_v17, %v534_v24 }
 0x174   : > { %v537_v20 = vsel %vm529_vm4, %v521_v16, %v533_v18  ;;  %v506_v21 = vpop.f32.mrf.mxu2 }
 0x175   : > { %v772_v22 = vpack.c.bf16 %v537_v20, %v536_v19  ;;  %v525_v23 = vpop.f32.mrf.mxu3 }
 0x176   : > { %v526_v25 = vadd.f32 %v525_v23, %v506_v21 }
 0x177   : > { %773 = vst [vmem:[%s329_s6] sm:$0xff] %v772_v22  }
 0x178   : > { %vm531_vm6 = vcmp.gt.f32.partialorder %v526_v25, 0.0  ;;  %v535_v26 = vmul.f32 0.2, %v526_v25 }
 0x179   : > { %554 = sbr.rel (!%p954_p8) target bundleno = 391 (0x187), region = 118 }
 0x17a   : > { %v539_v28 = vsel %vm531_vm6, %v526_v25, %v535_v26 }
 0x17b   : > { %v777_v29 = vpack.c.bf16 %v539_v28, %v538_v27 }
 0x17d   : > { %779 = vst [vmem:[%s329_s6 + $0x8] sm:$0xff] %v777_v29  }
 0x17e   : > { %v573_v30 = vld [vmem:[%s329_s6] sm:$0xf]  ;;  %v575_v31 = vld [vmem:[%s329_s6 + $0x4] sm:$0xf] }
 0x17f   : > { %574 = vst [vmem:[%s556_s8] sm:$0xf] %v573_v30 }
 0x180   : > { %576 = vst [vmem:[%s556_s8 + $0x8] sm:$0xf] %v575_v31 }
 0x184   : > { %v577_v32 = vld [vmem:[%s329_s6 + $0x8] sm:$0xf]  ;;  %v579_v33 = vld [vmem:[%s329_s6 + $0xc] sm:$0xf] }
 0x185   : > { %578 = vst [vmem:[%s556_s8 + $0x10] sm:$0xf] %v577_v32 }
 0x186   : > { %580 = vst [vmem:[%s556_s8 + $0x18] sm:$0xf] %v579_v33 }
 0x187 PF: > { %p10_p13 = scmp.ge.s32.totalorder %s929_s18, 4   ;;  %s1072_s12 = smov %s865_s13 }
 0x188   : > { %s1073_s13 = smov %s948_s25  ;;  %s1074_s14 = smov %s873_s15 }
 0x189   : > { %s1075_s15 = smov %s939_s22  ;;  %s1076_s16 = smov %s929_s18 }
 0x18a   :  { %12 = sbr.rel (!%p10_p13) target bundleno = 3 (0x3), region = 198 }

// kernel: cnet_d1_forward.7
= control target key start
LH: loop header
LB: loop body
LE: loop exit
PB: predicated region body
PF: predicated region fallthrough
CT: control target
= control target key end

     0   :  { %s1028_s19 = smov 122   ;;  %vm389_vm0 = vcmask 998400   ;;  %vm376_vm1 = vcmask 1006592   ;;  %vm363_vm2 = vcmask 1039360   ;;  %s1448_s0 = inlined_call_operand.vmem [shape: bf16[4,32,256], index: 0, kind: input, shape index: {}, may-alias: {0,1}]   ;;  %s1449_s1 = inlined_call_operand.vmem [shape: bf16[4,32,256], index: 1, kind: input, shape index: {}, may-alias: {0,1}]   ;;  %s1450_s2 = inlined_call_operand.vmem [shape: bf16[64,512], index: 2, kind: input, shape index: {}]   ;;  %s1451_s3 = inlined_call_operand.vmem [shape: f32[64,128], index: 3, kind: input, shape index: {}]   ;;  %s1452_s4 = inlined_call_operand.vmem [shape: f32[128,128], index: 4, kind: input, shape index: {}]   ;;  %s1453_s5 = inlined_call_operand.vmem [shape: f32[1,128], index: 5, kind: output, shape index: {}]  }
   0x1   :  { %v56_v0 = vld [vmem:[%s1448_s0 + $0x70] sm:$0xf]  ;;  %v58_v1 = vld [vmem:[%s1448_s0 + $0x78] sm:$0xf]  ;;  %v857_v4 = vld [vmem:[%s1449_s1 + $0x74] sm:$0xf] }
   0x2   :  { %57 = vst [vmem:[#allocation3 + $0x38] sm:$0xf] %v56_v0  ;;  %v48_v2 = vld [vmem:[%s1448_s0 + $0x50] sm:$0xf]  ;;  %v50_v3 = vld [vmem:[%s1448_s0 + $0x58] sm:$0xf] }
   0x3   :  { %59 = vst [vmem:[#allocation3 + $0x3c] sm:$0xf] %v58_v1  ;;  %v858_v5 = vld [vmem:[%s1449_s1 + $0x7c] sm:$0xf]  ;;  %v853_v6 = vld [vmem:[%s1449_s1 + $0x54] sm:$0xf] }
   0x4   :  { %49 = vst [vmem:[#allocation3 + $0x28] sm:$0xf] %v48_v2  ;;  %v854_v7 = vld [vmem:[%s1449_s1 + $0x5c] sm:$0xf]  ;;  %v849_v8 = vld [vmem:[%s1449_s1 + $0x34] sm:$0xf] }
   0x5   :  { %51 = vst [vmem:[#allocation3 + $0x2c] sm:$0xf] %v50_v3  ;;  %v850_v9 = vld [vmem:[%s1449_s1 + $0x3c] sm:$0xf]  ;;  %v40_v10 = vld [vmem:[%s1448_s0 + $0x30] sm:$0xf] }
   0x6   :  { %163 = vst [vmem:[#allocation4 + $0x38] sm:$0xf] %v857_v4  ;;  %v42_v12 = vld [vmem:[%s1448_s0 + $0x38] sm:$0xf]  ;;  %v32_v13 = vld [vmem:[%s1448_s0 + $0x10] sm:$0xf] }
   0x7   :  { %165 = vst [vmem:[#allocation4 + $0x3c] sm:$0xf] %v858_v5  ;;  %v34_v15 = vld [vmem:[%s1448_s0 + $0x18] sm:$0xf]  ;;  %v52_v16 = vld [vmem:[%s1448_s0 + $0x60] sm:$0xf] }
   0x8   :  { %155 = vst [vmem:[#allocation4 + $0x28] sm:$0xf] %v853_v6  ;;  %v54_v17 = vld [vmem:[%s1448_s0 + $0x68] sm:$0xf]  ;;  %v851_v18 = vld [vmem:[%s1449_s1 + $0x44] sm:$0xf] }
   0x9   :  { %157 = vst [vmem:[#allocation4 + $0x2c] sm:$0xf] %v854_v7  ;;  %v852_v20 = vld [vmem:[%s1449_s1 + $0x4c] sm:$0xf]  ;;  %v845_v21 = vld [vmem:[%s1449_s1 + $0x14] sm:$0xf] }
   0xa   :  { %v1095_v11 = vld [vmem:[#allocation3 + $0x38] sm:$0xff]  ;;  %147 = vst [vmem:[#allocation4 + $0x18] sm:$0xf] %v849_v8  ;;  %v843_v24 = vld [vmem:[%s1449_s1 + $0x4] sm:$0xf] }
   0xb   :  { %149 = vst [vmem:[#allocation4 + $0x1c] sm:$0xf] %v850_v9  ;;  %494 = vrot.lane.b32.xlu1 %v1095_v11, %s1028_s19  ;;  %v846_v23 = vld [vmem:[%s1449_s1 + $0x1c] sm:$0xf]  ;;  %v844_v25 = vld [vmem:[%s1449_s1 + $0xc] sm:$0xf] }
   0xc   :  { %v1105_v14 = vld [vmem:[#allocation3 + $0x28] sm:$0xff]  ;;  %41 = vst [vmem:[#allocation3 + $0x18] sm:$0xf] %v40_v10  ;;  %v28_v26 = vld [vmem:[%s1448_s0] sm:$0xf] }
   0xd   :  { %43 = vst [vmem:[#allocation3 + $0x1c] sm:$0xf] %v42_v12  ;;  %458 = vrot.lane.b32.xlu0 %v1105_v14, %s1028_s19  ;;  %v30_v28 = vld [vmem:[%s1448_s0 + $0x8] sm:$0xf]  ;;  %v44_v29 = vld [vmem:[%s1448_s0 + $0x40] sm:$0xf] }
   0xe   :  { %33 = vst [vmem:[#allocation3 + $0x8] sm:$0xf] %v32_v13  ;;  %v1121_v19 = vld [vmem:[#allocation4 + $0x38] sm:$0xff]  ;;  %v46_v31 = vld [vmem:[%s1448_s0 + $0x48] sm:$0xf] }
   0xf   :  { %35 = vst [vmem:[#allocation3 + $0xc] sm:$0xf] %v34_v15  ;;  %v847_v32 = vld [vmem:[%s1449_s1 + $0x24] sm:$0xf]  ;;  %v848_v34 = vld [vmem:[%s1449_s1 + $0x2c] sm:$0xf] }
  0x10   :  { %53 = vst [vmem:[#allocation3 + $0x30] sm:$0xf] %v52_v16  ;;  %v1129_v22 = vld [vmem:[#allocation4 + $0x28] sm:$0xff]  ;;  %v855_v35 = vld [vmem:[%s1449_s1 + $0x64] sm:$0xf] }
  0x11   :  { %55 = vst [vmem:[#allocation3 + $0x34] sm:$0xf] %v54_v17  ;;  %v856_v37 = vld [vmem:[%s1449_s1 + $0x6c] sm:$0xf]  ;;  %v36_v38 = vld [vmem:[%s1448_s0 + $0x20] sm:$0xf] }
  0x12   :  { %151 = vst [vmem:[#allocation4 + $0x20] sm:$0xf] %v851_v18  ;;  %v1155_v30 = vld [vmem:[#allocation4 + $0x18] sm:$0xff]  ;;  %v38_v39 = vld [vmem:[%s1448_s0 + $0x28] sm:$0xf]  ;;  %s1029_s0 = smov 123  }
  0x13   :  { %153 = vst [vmem:[#allocation4 + $0x24] sm:$0xf] %v852_v20  ;;  %496 = vrot.lane.b32.xlu1 %v1121_v19, %s1028_s19  ;;  %s1030_s1 = smov 127  }
  0x14   :  { %139 = vst [vmem:[#allocation4 + $0x8] sm:$0xf] %v845_v21  ;;  %v1165_v33 = vld [vmem:[#allocation3 + $0x18] sm:$0xff] }
  0x15   :  { %141 = vst [vmem:[#allocation4 + $0xc] sm:$0xf] %v846_v23  ;;  %460 = vrot.lane.b32.xlu0 %v1129_v22, %s1028_s19 }
  0x16   :  { %v1147_v27 = vld [vmem:[#allocation3 + $0x8] sm:$0xff]  ;;  %135 = vst [vmem:[#allocation4] sm:$0xf] %v843_v24 }
  0x17   :  { %137 = vst [vmem:[#allocation4 + $0x4] sm:$0xf] %v844_v25  ;;  %385 = vrot.lane.b32.xlu2 %v1147_v27, %s1028_s19 }
  0x18   :  { %29 = vst [vmem:[#allocation3] sm:$0xf] %v28_v26  ;;  %v1186_v40 = vld [vmem:[#allocation3 + $0x30] sm:$0xff] }
  0x19   :  { %31 = vst [vmem:[#allocation3 + $0x4] sm:$0xf] %v30_v28 }
  0x1a   :  { %45 = vst [vmem:[#allocation3 + $0x20] sm:$0xf] %v44_v29  ;;  %v1000_v41 = vld [vmem:[#allocation4 + $0x20] sm:$0xff] }
  0x1b   :  { %47 = vst [vmem:[#allocation3 + $0x24] sm:$0xf] %v46_v31  ;;  %424 = vrot.lane.b32.xlu1 %v1155_v30, %s1028_s19 }
  0x1c   :  { %v997_v36 = vld [vmem:[#allocation4 + $0x8] sm:$0xff]  ;;  %143 = vst [vmem:[#allocation4 + $0x10] sm:$0xf] %v847_v32 }
  0x1d   :  { %145 = vst [vmem:[#allocation4 + $0x14] sm:$0xf] %v848_v34  ;;  %422 = vrot.lane.b32.xlu0 %v1165_v33, %s1028_s19 }
  0x1e   :  { %159 = vst [vmem:[#allocation4 + $0x30] sm:$0xf] %v855_v35  ;;  %v996_v43 = vld [vmem:[#allocation4] sm:$0xff] }
  0x1f   :  { %161 = vst [vmem:[#allocation4 + $0x34] sm:$0xf] %v856_v37  ;;  %387 = vrot.lane.b32.xlu2 %v997_v36, %s1028_s19 }
  0x20   :  { %37 = vst [vmem:[#allocation3 + $0x10] sm:$0xf] %v36_v38  ;;  %v1196_v44 = vld [vmem:[#allocation3] sm:$0xff] }
  0x21   :  { %39 = vst [vmem:[#allocation3 + $0x14] sm:$0xf] %v38_v39 }
  0x22   :  { %v1191_v42 = vld [vmem:[#allocation3 + $0x20] sm:$0xff] }
  0x23   :  { %490 = vrot.lane.b32.xlu1 %v1186_v40, %s1028_s19 }
  0x24   :  { %v998_v46 = vld [vmem:[#allocation4 + $0x10] sm:$0xff] }
  0x25   :  { %456 = vrot.lane.b32.xlu0 %v1000_v41, %s1028_s19 }
  0x26   :  { %v1002_v45 = vld [vmem:[#allocation4 + $0x30] sm:$0xff] }
  0x27   :  { %454 = vrot.lane.b32.xlu2 %v1191_v42, %s1028_s19 }
  0x28   :  { %v1203_v47 = vld [vmem:[#allocation3 + $0x10] sm:$0xff] }
  0x2b   :  { %383 = vrot.lane.b32.xlu1 %v996_v43, %s1028_s19 }
  0x2d   :  { %381 = vrot.lane.b32.xlu0 %v1196_v44, %s1028_s19 }
  0x2f   :  { %492 = vrot.lane.b32.xlu2 %v1002_v45, %s1028_s19 }
  0x33   :  { %446 = vrot.lane.b32.xlu1 %v1105_v14, %s1029_s0 }
  0x35   :  { %420 = vrot.lane.b32.xlu0 %v998_v46, %s1028_s19 }
  0x37   :  { %418 = vrot.lane.b32.xlu2 %v1203_v47, %s1028_s19 }
  0x3b   :  { %484 = vrot.lane.b32.xlu1 %v1121_v19, %s1029_s0 }
  0x3d   :  { %482 = vrot.lane.b32.xlu0 %v1095_v11, %s1029_s0 }
  0x3f   :  { %448 = vrot.lane.b32.xlu2 %v1129_v22, %s1029_s0 }
  0x43   :  { %410 = vrot.lane.b32.xlu1 %v1165_v33, %s1029_s0 }
  0x45   :  { %374 = vrot.lane.b32.xlu0 %v997_v36, %s1029_s0 }
  0x47   :  { %372 = vrot.lane.b32.xlu2 %v1147_v27, %s1029_s0 }
  0x4b   :  { %444 = vrot.lane.b32.xlu1 %v1000_v41, %s1029_s0 }
  0x4d   :  { %442 = vrot.lane.b32.xlu0 %v1191_v42, %s1029_s0 }
  0x4f   :  { %412 = vrot.lane.b32.xlu2 %v1155_v30, %s1029_s0 }
  0x53   :  { %368 = vrot.lane.b32.xlu1 %v1196_v44, %s1029_s0 }
  0x55   :  { %480 = vrot.lane.b32.xlu0 %v1002_v45, %s1029_s0 }
  0x57   :  { %478 = vrot.lane.b32.xlu2 %v1186_v40, %s1029_s0 }
  0x5b   :  { %408 = vrot.lane.b32.xlu1 %v998_v46, %s1029_s0 }
  0x5d   :  { %406 = vrot.lane.b32.xlu0 %v1203_v47, %s1029_s0 }
  0x5f   :  { %370 = vrot.lane.b32.xlu2 %v996_v43, %s1029_s0 }
  0x63   :  { %470 = vrot.lane.b32.xlu1 %v1095_v11, %s1030_s1 }
  0x65   :  { %436 = vrot.lane.b32.xlu0 %v1129_v22, %s1030_s1 }
  0x67   :  { %434 = vrot.lane.b32.xlu2 %v1105_v14, %s1030_s1 }
  0x6b   :  { %361 = vrot.lane.b32.xlu1 %v997_v36, %s1030_s1 }
  0x6d   :  { %359 = vrot.lane.b32.xlu0 %v1147_v27, %s1030_s1 }
  0x6f   :  { %472 = vrot.lane.b32.xlu2 %v1121_v19, %s1030_s1 }
  0x71   :  { %v386_v48 = vpop.permute.xlu2 %385 }
  0x73   :  { %430 = vrot.lane.b32.xlu1 %v1191_v42, %s1030_s1 }
  0x75   :  { %400 = vrot.lane.b32.xlu0 %v1155_v30, %s1030_s1 }
  0x77   :  { %398 = vrot.lane.b32.xlu2 %v1165_v33, %s1030_s1 }
  0x79   :  { %v388_v49 = vpop.permute.xlu2 %387 }
  0x7a   :  { %v391_v50 = vsel %vm389_vm0, %v386_v48, %v388_v49 }
  0x7b   :  { %468 = vrot.lane.b32.xlu1 %v1002_v45, %s1030_s1  ;;  %598 = vmatpush.bf16.msra.mxu0 %v391_v50 }
  0x7d   :  { %466 = vrot.lane.b32.xlu0 %v1186_v40, %s1030_s1  ;;  %v495_v51 = vpop.permute.xlu1 %494 }
  0x7f   :  { %v459_v52 = vpop.permute.xlu0 %458  ;;  %432 = vrot.lane.b32.xlu2 %v1000_v41, %s1030_s1 }
  0x81   :  { %v455_v53 = vpop.permute.xlu2 %454 }
  0x83   :  { %394 = vrot.lane.b32.xlu1 %v1203_v47, %s1030_s1 }
  0x85   :  { %357 = vrot.lane.b32.xlu0 %v996_v43, %s1030_s1  ;;  %v497_v54 = vpop.permute.xlu1 %496 }
  0x86   :  { %v499_v55 = vsel %vm389_vm0, %v495_v51, %v497_v54 }
  0x87   :  { %v461_v56 = vpop.permute.xlu0 %460  ;;  %685 = vmatpush.bf16.msra.mxu3 %v499_v55  ;;  %355 = vrot.lane.b32.xlu2 %v1196_v44, %s1030_s1 }
  0x88   :  { %v463_v57 = vsel %vm389_vm0, %v459_v52, %v461_v56  ;;  %v933_v56 = vld [vmem:[%s1450_s2 + $0x8] sm:$0xf] }
  0x89   :  { %656 = vmatpush.bf16.msra.mxu2 %v463_v57  ;;  %v493_v58 = vpop.permute.xlu2 %492  ;;  %v1007_v57 = vld [vmem:[%s1450_s2 + $0x14] sm:$0xf0] }
  0x8d   :  { %v425_v59 = vpop.permute.xlu1 %424 }
  0x8f   :  { %v423_v60 = vpop.permute.xlu0 %422  ;;  %396 = vrot.lane.b32.xlu2 %v998_v46, %s1030_s1 }
  0x90   :  { %v427_v61 = vsel %vm389_vm0, %v423_v60, %v425_v59  ;;  %v934_v59 = vor.u32 %v1007_v57, %v933_v56  ;;  %v780_v56 = vld [vmem:[%s1452_s4 + $0x60] sm:$0xff] }
  0x91   :  { %627 = vmatpush.bf16.msra.mxu1 %v427_v61  ;;  %v419_v62 = vpop.permute.xlu2 %418 }
  0x95   :  { %v491_v63 = vpop.permute.xlu1 %490 }
  0x96   :  { %v498_v0 = vsel %vm389_vm0, %v491_v63, %v493_v58  ;;  %v1005_v63 = vld [vmem:[%s1450_s2 + $0xc] sm:$0xf] }
  0x97   :  { %v457_v1 = vpop.permute.xlu0 %456  ;;  %686 = vmatpush.bf16.msra.mxu3 %v498_v0  ;;  %v935_v0 = vld [vmem:[%s1450_s2 + $0x18] sm:$0xf0] }
  0x98   :  { %v462_v2 = vsel %vm389_vm0, %v455_v53, %v457_v1 }
  0x99   :  { %657 = vmatpush.bf16.msra.mxu2 %v462_v2  ;;  %v449_v3 = vpop.permute.xlu2 %448 }
  0x9d   :  { %v384_v4 = vpop.permute.xlu1 %383 }
  0x9f   :  { %v382_v5 = vpop.permute.xlu0 %381 }
  0xa0   :  { %v390_v6 = vsel %vm389_vm0, %v382_v5, %v384_v4  ;;  %v927_v4 = vld [vmem:[%s1450_s2 + $0x10] sm:$0xf0]  ;;  %v949_v5 = vld [vmem:[%s1450_s2 + $0x28] sm:$0xf] }
  0xa1   :  { %599 = vmatpush.bf16.msra.mxu0 %v390_v6  ;;  %v373_v7 = vpop.permute.xlu2 %372  ;;  %v1011_v6 = vld [vmem:[%s1450_s2 + $0x34] sm:$0xf0] }
  0xa5   :  { %v447_v8 = vpop.permute.xlu1 %446 }
  0xa6   :  { %v451_v9 = vsel %vm376_vm1, %v447_v8, %v449_v3  ;;  %v938_v3 = vor.u32 %v1005_v63, %v935_v0  ;;  %v950_v8 = vor.u32 %v1011_v6, %v949_v5  ;;  %v775_v5 = vld [vmem:[%s1452_s4 + $0x38] sm:$0xff]  ;;  %v774_v6 = vld [vmem:[%s1452_s4 + $0x30] sm:$0xff] }
  0xa7   :  { %v421_v10 = vpop.permute.xlu0 %420  ;;  %658 = vmatpush.bf16.msra.mxu2 %v451_v9 }
  0xa8   :  { %v426_v12 = vsel %vm389_vm0, %v419_v62, %v421_v10  ;;  %v951_v10 = vld [vmem:[%s1450_s2 + $0x38] sm:$0xf0] }
  0xa9   :  { %628 = vmatpush.bf16.msra.mxu1 %v426_v12  ;;  %v413_v13 = vpop.permute.xlu2 %412 }
  0xad   :  { %v485_v15 = vpop.permute.xlu1 %484 }
  0xaf   :  { %v483_v16 = vpop.permute.xlu0 %482 }
  0xb0   :  { %v487_v17 = vsel %vm376_vm1, %v483_v16, %v485_v15  ;;  %v1015_v15 = vld [vmem:[%s1450_s2 + $0x54] sm:$0xf0]  ;;  %v941_v16 = vld [vmem:[%s1450_s2 + $0x20] sm:$0xf] }
  0xb1   :  { %687 = vmatpush.bf16.msra.mxu3 %v487_v17  ;;  %v479_v18 = vpop.permute.xlu2 %478  ;;  %v1010_v17 = vld [vmem:[%s1450_s2 + $0x2c] sm:$0xf0] }
  0xb5   :  { %v411_v19 = vpop.permute.xlu1 %410 }
  0xb6   :  { %v415_v20 = vsel %vm376_vm1, %v411_v19, %v413_v13  ;;  %v1008_v13 = vld [vmem:[%s1450_s2 + $0x24] sm:$0xf] }
  0xb7   :  { %v375_v21 = vpop.permute.xlu0 %374  ;;  %629 = vmatpush.bf16.msra.mxu1 %v415_v20  ;;  %v942_v20 = vor.u32 %v1010_v17, %v941_v16 }
  0xb8   :  { %v378_v22 = vsel %vm376_vm1, %v373_v7, %v375_v21  ;;  %v1013_v21 = vld [vmem:[%s1450_s2 + $0x4c] sm:$0xf] }
  0xb9   :  { %600 = vmatpush.bf16.msra.mxu0 %v378_v22  ;;  %v371_v23 = vpop.permute.xlu2 %370  ;;  %v967_v22 = vld [vmem:[%s1450_s2 + $0x58] sm:$0xf0] }
  0xbd   :  { %v445_v24 = vpop.permute.xlu1 %444 }
  0xbf   :  { %v443_v25 = vpop.permute.xlu0 %442 }
  0xc0   :  { %v450_v26 = vsel %vm376_vm1, %v443_v25, %v445_v24  ;;  %v1012_v24 = vld [vmem:[%s1450_s2 + $0x44] sm:$0xf]  ;;  %v959_v25 = vld [vmem:[%s1450_s2 + $0x50] sm:$0xf0] }
  0xc1   :  { %659 = vmatpush.bf16.msra.mxu2 %v450_v26  ;;  %v435_v28 = vpop.permute.xlu2 %434  ;;  %v981_v26 = vld [vmem:[%s1450_s2 + $0x68] sm:$0xf] }
  0xc5   :  { %v369_v29 = vpop.permute.xlu1 %368 }
  0xc6   :  { %v377_v30 = vsel %vm376_vm1, %v369_v29, %v371_v23  ;;  %v970_v23 = vor.u32 %v1013_v21, %v967_v22  ;;  %v957_v29 = vld [vmem:[%s1450_s2 + $0x40] sm:$0xf] }
  0xc7   :  { %v481_v31 = vpop.permute.xlu0 %480  ;;  %601 = vmatpush.bf16.msra.mxu0 %v377_v30  ;;  %v1014_v30 = vld [vmem:[%s1450_s2 + $0x4c] sm:$0xf0] }
  0xc8   :  { %v486_v32 = vsel %vm376_vm1, %v479_v18, %v481_v31  ;;  %v962_v31 = vor.u32 %v1012_v24, %v959_v25  ;;  %v769_v24 = vld [vmem:[%s1452_s4 + $0x8] sm:$0xff] }
  0xc9   :  { %688 = vmatpush.bf16.msra.mxu3 %v486_v32  ;;  %v473_v34 = vpop.permute.xlu2 %472 }
  0xcd   :  { %v409_v35 = vpop.permute.xlu1 %408 }
  0xcf   :  { %v407_v36 = vpop.permute.xlu0 %406 }
  0xd0   :  { %v414_v37 = vsel %vm376_vm1, %v407_v36, %v409_v35  ;;  %v1017_v35 = vld [vmem:[%s1450_s2 + $0x6c] sm:$0xf]  ;;  %v983_v36 = vld [vmem:[%s1450_s2 + $0x78] sm:$0xf0] }
  0xd1   :  { %630 = vmatpush.bf16.msra.mxu1 %v414_v37  ;;  %v399_v39 = vpop.permute.xlu2 %398  ;;  %v986_v37 = vor.u32 %v1017_v35, %v983_v36 }
  0xd5   :  { %v471_v38 = vpop.permute.xlu1 %470 }
  0xd6   :  { %v475_v41 = vsel %vm363_vm2, %v471_v38, %v473_v34  ;;  %v958_v34 = vor.u32 %v1014_v30, %v957_v29  ;;  %v1016_v38 = vld [vmem:[%s1450_s2 + $0x64] sm:$0xf] }
  0xd7   :  { %v437_v43 = vpop.permute.xlu0 %436  ;;  %689 = vmatpush.bf16.msra.mxu3 %v475_v41  ;;  %v973_v41 = vld [vmem:[%s1450_s2 + $0x60] sm:$0xf] }
  0xd8   :  { %v439_v45 = vsel %vm363_vm2, %v435_v28, %v437_v43  ;;  %v1019_v28 = vld [vmem:[%s1450_s2 + $0x74] sm:$0xf0]  ;;  %v1018_v43 = vld [vmem:[%s1450_s2 + $0x6c] sm:$0xf0]  ;;  %v768_v29 = vld [vmem:[%s1452_s4] sm:$0xff] }
  0xd9   :  { %660 = vmatpush.bf16.msra.mxu2 %v439_v45  ;;  %v433_v49 = vpop.permute.xlu2 %432  ;;  %v982_v32 = vor.u32 %v1019_v28, %v981_v26 }
  0xdd   :  { %v362_v46 = vpop.permute.xlu1 %361 }
  0xdf   :  { %v360_v48 = vpop.permute.xlu0 %359 }
  0xe0   :  { %v365_v50 = vsel %vm363_vm2, %v360_v48, %v362_v46  ;;  %v974_v46 = vor.u32 %v1018_v43, %v973_v41 }
  0xe1   :  { %602 = vmatpush.bf16.msra.mxu0 %v365_v50  ;;  %v356_v55 = vpop.permute.xlu2 %355  ;;  %v782_v50 = vld [vmem:[%s1452_s4 + $0x70] sm:$0xff] }
  0xe5   :  { %v431_v51 = vpop.permute.xlu1 %430 }
  0xe6   :  { %v438_v52 = vsel %vm363_vm2, %v431_v51, %v433_v49  ;;  %v783_v49 = vld [vmem:[%s1452_s4 + $0x78] sm:$0xff] }
  0xe7   :  { %v401_v53 = vpop.permute.xlu0 %400  ;;  %661 = vmatpush.bf16.msra.mxu2 %v438_v52 }
  0xe8   :  { %v403_v54 = vsel %vm363_vm2, %v399_v39, %v401_v53  ;;  %v975_v39 = vld [vmem:[%s1450_s2 + $0x70] sm:$0xf0] }
  0xe9   :  { %631 = vmatpush.bf16.msra.mxu1 %v403_v54  ;;  %v397_v62 = vpop.permute.xlu2 %396  ;;  %v978_v45 = vor.u32 %v1016_v38, %v975_v39 }
  0xeb   :  { %662 = vmatpush.bf16.msra.mxu2 %v1105_v14 }
  0xed   :  { %v469_v58 = vpop.permute.xlu1 %468 }
  0xef   :  { %v467_v60 = vpop.permute.xlu0 %466  ;;  %663 = vmatpush.bf16.msra.mxu2 %v1191_v42 }
  0xf0   :  { %v474_v61 = vsel %vm363_vm2, %v467_v60, %v469_v58 }
  0xf1   :  { %690 = vmatpush.bf16.msra.mxu3 %v474_v61  ;;  %v779_v61 = vld [vmem:[%s1452_s4 + $0x58] sm:$0xff] }
  0xf2   :  { %664 = vmatmul.bf16.vlgmr.msra.gmra.mxu2 %v934_v59 }
  0xf5   :  { %691 = vmatpush.bf16.msra.mxu3 %v1095_v11  ;;  %v395_v14 = vpop.permute.xlu1 %394  ;;  %v1004_v11 = vld [vmem:[%s1450_s2 + $0x4] sm:$0xf] }
  0xf6   :  { %v402_v1 = vsel %vm363_vm2, %v395_v14, %v397_v62  ;;  %v930_v7 = vor.u32 %v1004_v11, %v927_v4  ;;  %v778_v62 = vld [vmem:[%s1452_s4 + $0x50] sm:$0xff] }
  0xf7   :  { %v358_v2 = vpop.permute.xlu0 %357  ;;  %632 = vmatpush.bf16.msra.mxu1 %v402_v1 }
  0xf8   :  { %v364_v42 = vsel %vm363_vm2, %v356_v55, %v358_v2  ;;  %v781_v55 = vld [vmem:[%s1452_s4 + $0x68] sm:$0xff] }
  0xf9   :  { %603 = vmatpush.bf16.msra.mxu0 %v364_v42  ;;  %692 = vmatpush.bf16.msra.mxu3 %v1186_v40  ;;  %v925_v40 = vld [vmem:[%s1450_s2] sm:$0xf]  ;;  %v777_v2 = vld [vmem:[%s1452_s4 + $0x48] sm:$0xff] }
  0xfa   :  { %v776_v42 = vld [vmem:[%s1452_s4 + $0x40] sm:$0xff] }
  0xfb   :  { %633 = vmatpush.bf16.msra.mxu1 %v1165_v33  ;;  %v1006_v33 = vld [vmem:[%s1450_s2 + $0xc] sm:$0xf0] }
  0xfc   :  { %693 = vmatmul.bf16.vlgmr.msra.gmra.mxu3 %v938_v3  ;;  %v926_v9 = vor.u32 %v1006_v33, %v925_v40 }
  0xfd   :  { %604 = vmatpush.bf16.msra.mxu0 %v1147_v27  ;;  %v1009_v27 = vld [vmem:[%s1450_s2 + $0x2c] sm:$0xf] }
  0xfe   :  { %v954_v12 = vor.u32 %v1009_v27, %v951_v10  ;;  %v773_v27 = vld [vmem:[%s1452_s4 + $0x28] sm:$0xff]  ;;  %v772_v10 = vld [vmem:[%s1452_s4 + $0x20] sm:$0xff] }
  0xff   :  { %634 = vmatpush.bf16.msra.mxu1 %v1203_v47  ;;  %v965_v47 = vld [vmem:[%s1450_s2 + $0x48] sm:$0xf] }
 0x100   :  { %v966_v19 = vor.u32 %v1015_v15, %v965_v47 }
 0x101   :  { %605 = vmatpush.bf16.msra.mxu0 %v1196_v44  ;;  %v943_v44 = vld [vmem:[%s1450_s2 + $0x30] sm:$0xf0] }
 0x102   :  { %635 = vmatmul.bf16.vlgmr.msra.gmra.mxu1 %v930_v7  ;;  %669 = vmatmul.bf16.gmra.mxu2 %v950_v8  ;;  %v946_v18 = vor.u32 %v1008_v13, %v943_v44  ;;  %v771_v44 = vld [vmem:[%s1452_s4 + $0x18] sm:$0xff] }
 0x104   :  { %606 = vmatmul.bf16.vlgmr.msra.gmra.mxu0 %v926_v9 }
 0x105   :  { %784 = vmatpush.msrb.mxu0 %v783_v49 }
 0x107   :  { %785 = vmatpush.msrb.mxu0 %v782_v50 }
 0x109   :  { %786 = vmatpush.msrb.mxu0 %v781_v55 }
 0x10b   :  { %787 = vmatpush.msrb.mxu0 %v780_v56  ;;  %v740_v56 = vld [vmem:[%s1451_s3 + $0x10] sm:$0xff] }
 0x10c   :  { %698 = vmatmul.bf16.gmra.mxu3 %v954_v12 }
 0x10d   :  { %788 = vmatpush.msrb.mxu0 %v779_v61 }
 0x10f   :  { %789 = vmatpush.msrb.mxu0 %v778_v62  ;;  %v741_v62 = vld [vmem:[%s1451_s3 + $0x18] sm:$0xff] }
 0x111   :  { %790 = vmatpush.msrb.mxu0 %v777_v2 }
 0x112   :  { %640 = vmatmul.bf16.gmra.mxu1 %v946_v18  ;;  %674 = vmatmul.bf16.gmra.mxu2 %v966_v19  ;;  %v770_v18 = vld [vmem:[%s1452_s4 + $0x10] sm:$0xff] }
 0x113   :  { %791 = vmatpush.msrb.mxu0 %v776_v42 }
 0x114   :  { %611 = vmatmul.bf16.gmra.mxu0 %v942_v20 }
 0x115   :  { %792 = vmatpush.msrb.mxu0 %v775_v5 }
 0x117   :  { %793 = vmatpush.msrb.mxu0 %v774_v6 }
 0x119   :  { %794 = vmatpush.msrb.mxu0 %v773_v27 }
 0x11b   :  { %795 = vmatpush.msrb.mxu0 %v772_v10 }
 0x11c   :  { %703 = vmatmul.bf16.gmra.mxu3 %v970_v23 }
 0x11d   :  { %796 = vmatpush.msrb.mxu0 %v771_v44 }
 0x11f   :  { %797 = vmatpush.msrb.mxu0 %v770_v18 }
 0x121   :  { %798 = vmatpush.msrb.mxu0 %v769_v24 }
 0x122   :  { %645 = vmatmul.bf16.gmra.mxu1 %v962_v31  ;;  %679 = vmatmul.bf16.gmra.mxu2 %v982_v32 }
 0x123   :  { %799 = vmatpush.msrb.mxu0 %v768_v29 }
 0x124   :  { %616 = vmatmul.bf16.gmra.mxu0 %v958_v34 }
 0x12c   :  { %708 = vmatmul.bf16.gmra.mxu3 %v986_v37 }
 0x132   :  { %650 = vmatmul.bf16.gmra.mxu1 %v978_v45 }
 0x134   :  { %621 = vmatmul.bf16.gmra.mxu0 %v974_v46 }
 0x175   :  { %v665_v48 = vpop.f32.mrf.mxu2 }
 0x17d   :  { %v667_v51 = vpop.f32.mrf.mxu2 }
 0x17f   :  { %v694_v52 = vpop.f32.mrf.mxu3  ;;  %v636_v53 = vpop.f32.mrf.mxu1 }
 0x181   :  { %v607_v54 = vpop.f32.mrf.mxu0 }
 0x182   :  { %v637_v12 = vadd.f32 %v636_v53, %v607_v54  ;;  %v738_v54 = vld [vmem:[%s1451_s3] sm:$0xff] }
 0x184   :  { %v666_v19 = vadd.f32 %v665_v48, %v637_v12  ;;  %v739_v48 = vld [vmem:[%s1451_s3 + $0x8] sm:$0xff]  ;;  %v744_v12 = vld [vmem:[%s1451_s3 + $0x30] sm:$0xff] }
 0x185   :  { %v670_v60 = vpop.f32.mrf.mxu2 }
 0x186   :  { %v695_v30 = vadd.f32 %v694_v52, %v666_v19 }
 0x187   :  { %v696_v57 = vpop.f32.mrf.mxu3  ;;  %v638_v58 = vpop.f32.mrf.mxu1 }
 0x188   :  { %v722_v38 = vmul.f32 0.2, %v695_v30  ;;  %vm714_vm4 = vcmp.gt.f32.partialorder %v695_v30, 0.0 }
 0x189   :  { %v609_v59 = vpop.f32.mrf.mxu0 }
 0x18a   :  { %v639_v9 = vadd.f32 %v638_v58, %v609_v59  ;;  %v730_v53 = vsel %vm714_vm4, %v695_v30, %v722_v38  ;;  %v1031_v59 = vmov 0.0  }
 0x18b   :  { %234 = vst [vmem:[#allocation2] sm:$0x1] %v1031_v59 }
 0x18c   :  { %v668_v47 = vadd.f32 %v667_v51, %v639_v9 }
 0x18d   :  { %v672_v1 = vpop.f32.mrf.mxu2 }
 0x18e   :  { %v697_v25 = vadd.f32 %v696_v57, %v668_v47 }
 0x18f   :  { %v699_v14 = vpop.f32.mrf.mxu3  ;;  %v641_v63 = vpop.f32.mrf.mxu1 }
 0x190   :  { %v723_v34 = vmul.f32 0.2, %v697_v25  ;;  %vm715_vm3 = vcmp.gt.f32.partialorder %v697_v25, 0.0 }
 0x191   :  { %v612_v0 = vpop.f32.mrf.mxu0 }
 0x192   :  { %v642_v13 = vadd.f32 %v641_v63, %v612_v0  ;;  %v731_v46 = vsel %vm715_vm3, %v697_v25, %v723_v34  ;;  %v746_v0 = vmul.f32 %v738_v54, %v730_v53  ;;  %v767_v34 = vld [vmem:[#allocation2] sm:$0x1] }
 0x194   :  { %v671_v20 = vadd.f32 %v670_v60, %v642_v13  ;;  %v747_v60 = vmul.f32 %v739_v48, %v731_v46 }
 0x195   :  { %v675_v40 = vpop.f32.mrf.mxu2 }
 0x196   :  { %v700_v31 = vadd.f32 %v699_v14, %v671_v20  ;;  %v745_v20 = vld [vmem:[%s1451_s3 + $0x38] sm:$0xff] }
 0x197   :  { %v701_v3 = vpop.f32.mrf.mxu3  ;;  %v643_v11 = vpop.f32.mrf.mxu1 }
 0x198   :  { %v724_v39 = vmul.f32 0.2, %v700_v31  ;;  %vm716_vm5 = vcmp.gt.f32.partialorder %v700_v31, 0.0 }
 0x199   :  { %v614_v4 = vpop.f32.mrf.mxu0 }
 0x19a   :  { %v644_v15 = vadd.f32 %v643_v11, %v614_v4  ;;  %v732_v55 = vsel %vm716_vm5, %v700_v31, %v724_v39  ;;  %v754_v4 = vadd.f32 %v747_v60, %v746_v0 }
 0x19c   :  { %v673_v26 = vadd.f32 %v672_v1, %v644_v15  ;;  %v748_v1 = vmul.f32 %v740_v56, %v732_v55 }
 0x19d   :  { %v677_v16 = vpop.f32.mrf.mxu2 }
 0x19e   :  { %v702_v35 = vadd.f32 %v701_v3, %v673_v26  ;;  %v742_v3 = vld [vmem:[%s1451_s3 + $0x20] sm:$0xff] }
 0x19f   :  { %v704_v33 = vpop.f32.mrf.mxu3  ;;  %v646_v7 = vpop.f32.mrf.mxu1 }
 0x1a0   :  { %v725_v49 = vmul.f32 0.2, %v702_v35  ;;  %vm717_vm6 = vcmp.gt.f32.partialorder %v702_v35, 0.0 }
 0x1a1   :  { %v617_v8 = vpop.f32.mrf.mxu0 }
 0x1a2   :  { %v647_v21 = vadd.f32 %v646_v7, %v617_v8  ;;  %v733_v61 = vsel %vm717_vm6, %v702_v35, %v725_v49  ;;  %v755_v8 = vadd.f32 %v754_v4, %v748_v1 }
 0x1a3   :  { %v749_v5 = vmul.f32 %v741_v62, %v733_v61 }
 0x1a4   :  { %v676_v32 = vadd.f32 %v675_v40, %v647_v21 }
 0x1a5   :  { %v680_v43 = vpop.f32.mrf.mxu2  ;;  %v756_v44 = vadd.f32 %v755_v8, %v749_v5 }
 0x1a6   :  { %v705_v41 = vadd.f32 %v704_v33, %v676_v32  ;;  %v743_v33 = vld [vmem:[%s1451_s3 + $0x28] sm:$0xff] }
 0x1a7   :  { %v648_v17 = vpop.f32.mrf.mxu1  ;;  %v706_v22 = vpop.f32.mrf.mxu3 }
 0x1a8   :  { %v726_v57 = vmul.f32 0.2, %v705_v41  ;;  %vm718_vm7 = vcmp.gt.f32.partialorder %v705_v41, 0.0 }
 0x1a9   :  { %v619_v23 = vpop.f32.mrf.mxu0 }
 0x1aa   :  { %v649_v28 = vadd.f32 %v648_v17, %v619_v23  ;;  %v734_v42 = vsel %vm718_vm7, %v705_v41, %v726_v57 }
 0x1ab   :  { %v750_v9 = vmul.f32 %v742_v3, %v734_v42 }
 0x1ac   :  { %v678_v36 = vadd.f32 %v677_v16, %v649_v28 }
 0x1ad   :  { %v682_v27 = vpop.f32.mrf.mxu2  ;;  %v757_v17 = vadd.f32 %v756_v44, %v750_v9 }
 0x1ae   :  { %v707_v50 = vadd.f32 %v706_v22, %v678_v36 }
 0x1af   :  { %v651_v37 = vpop.f32.mrf.mxu1  ;;  %v709_v52 = vpop.f32.mrf.mxu3 }
 0x1b0   :  { %v727_v14 = vmul.f32 0.2, %v707_v50  ;;  %vm719_vm8 = vcmp.gt.f32.partialorder %v707_v50, 0.0 }
 0x1b1   :  { %v622_v45 = vpop.f32.mrf.mxu0 }
 0x1b2   :  { %v652_v51 = vadd.f32 %v651_v37, %v622_v45  ;;  %v735_v40 = vsel %vm719_vm8, %v707_v50, %v727_v14 }
 0x1b3   :  { %v751_v47 = vmul.f32 %v743_v33, %v735_v40 }
 0x1b4   :  { %v681_v58 = vadd.f32 %v680_v43, %v652_v51 }
 0x1b5   :  { %v758_v21 = vadd.f32 %v757_v17, %v751_v47 }
 0x1b6   :  { %v710_v63 = vadd.f32 %v709_v52, %v681_v58 }
 0x1b7   :  { %v653_v2 = vpop.f32.mrf.mxu1  ;;  %v711_v15 = vpop.f32.mrf.mxu3 }
 0x1b8   :  { %v728_v11 = vmul.f32 0.2, %v710_v63  ;;  %vm720_vm9 = vcmp.gt.f32.partialorder %v710_v63, 0.0 }
 0x1b9   :  { %v624_v6 = vpop.f32.mrf.mxu0 }
 0x1ba   :  { %v654_v7 = vadd.f32 %v653_v2, %v624_v6  ;;  %v736_v10 = vsel %vm720_vm9, %v710_v63, %v728_v11 }
 0x1bb   :  { %v752_v18 = vmul.f32 %v744_v12, %v736_v10 }
 0x1bc   :  { %v683_v13 = vadd.f32 %v682_v27, %v654_v7 }
 0x1bd   :  { %v759_v24 = vadd.f32 %v758_v21, %v752_v18 }
 0x1be   :  { %v712_v16 = vadd.f32 %v711_v15, %v683_v13 }
 0x1c0   :  { %vm721_vm10 = vcmp.gt.f32.partialorder %v712_v16, 0.0  ;;  %v729_v19 = vmul.f32 0.2, %v712_v16 }
 0x1c2   :  { %v737_v22 = vsel %vm721_vm10, %v712_v16, %v729_v19 }
 0x1c3   :  { %v753_v23 = vmul.f32 %v745_v20, %v737_v22 }
 0x1c5   :  { %v760_v25 = vadd.f32 %v759_v24, %v753_v23 }
 0x1c7   :  { %v761_v26 = vrot.slane %v760_v25, 4 }
 0x1c9   :  { %v762_v28 = vadd.f32 %v761_v26, %v760_v25 }
 0x1cb   :  { %v763_v29 = vrot.slane %v762_v28, 2 }
 0x1cd   :  { %v764_v30 = vadd.f32 %v763_v29, %v762_v28 }
 0x1cf   :  { %v765_v31 = vrot.slane %v764_v30, 1 }
 0x1d1   :  { %v766_v32 = vadd.f32 %v765_v31, %v764_v30 }
 0x1d3   :  { %800 = vmatmul.f32.vlgmr.msrb.gmra.mxu0 %v766_v32 }
 0x250   :  { %v801_v35 = vpop.f32.mrf.mxu0 }
 0x251   :  { %v804_v36 = vadd.f32 %v801_v35, %v767_v34 }
 0x253   :  { %805 = vst [vmem:[#allocation2] sm:$0x1] %v804_v36 }
 0x25a   :  { %v809_v37 = vld [vmem:[#allocation2] sm:$0x1] }
 0x25b   :  { %v987_v38 = vmul.f32 -1.442695, %v809_v37 }
 0x25d   :  { %1024 = vpow2.f32 %v987_v38 }
 0x263   :  { %v1025_v39 = vpop.eup %1024 }
 0x264   :  { %v813_v41 = vadd.f32 1.0, %v1025_v39 }
 0x266   :  { %1026 = vrcp.f32 %v813_v41  ;;  %v825_v48 = vand.u32 2147483648, %v813_v41  ;;  %v823_v50 = vand.u32 2147483647, %v813_v41  ;;  %vm819_vm12 = vweird.f32 %v813_v41 }
 0x268   :  { %v826_v52 = vor.u32 1.1754944e-38, %v825_v48  ;;  %vm824_vm14 = vcmp.eq.f32.partialorder %v823_v50, 8.507059e+37 }
 0x26c   :  { %v1027_v43 = vpop.eup %1026 }
 0x26d   :  { %v815_v45 = vmul.f32 %v1027_v43, %v813_v41  ;;  %vm820_vm11 = vweird.f32 %v1027_v43 }
 0x26e   :  { %vm821_vm13 = vmor %vm819_vm12, %vm820_vm11 }
 0x26f   :  { %v816_v46 = vsub.f32 1.0, %v815_v45 }
 0x271   :  { %v817_v49 = vmul.f32 %v1027_v43, %v816_v46 }
 0x273   :  { %v818_v51 = vadd.f32 %v1027_v43, %v817_v49 }
 0x275   :  { %v822_v53 = vsel %vm821_vm13, %v1027_v43, %v818_v51 }
 0x276   :  { %v827_v54 = vsel %vm824_vm14, %v826_v52, %v822_v53 }
 0x277   :  { %829 = vst [vmem:[%s1453_s5] sm:$0x1] %v827_v54 }

</bundles_post_ra>
